<compile_context>
chip_gen: v6e
topology: v6e:2x2x1
jax: 0.10.0
libtpu: 0.0.40
codegen_flags: <defaults>
</compile_context>

<pallas_src>
import numpy as np
import jax
import jax.numpy as jnp
from jax import lax
from jax.experimental import pallas as pl
from jax.experimental.pallas import tpu as pltpu

EXPANSION = 4
BN_EPS = 1e-5
LANE = 128


def _round_up(c, m=LANE):
    return ((c + m - 1) // m) * m


def _pad_axis(a, size, axis):
    pad = size - a.shape[axis]
    if pad == 0:
        return a
    widths = [(0, 0)] * a.ndim
    widths[axis] = (0, pad)
    return jnp.pad(a, widths)


def bottleneck_pallas(x_nhwc, params):
    """x_nhwc: (N, H, W, Cin) float32. Returns (N, H, W, Cin) float32."""
    N, H, W, Cin = x_nhwc.shape
    P = params["w1"].shape[1]            # planes
    Cout = params["w3"].shape[1]         # planes * expansion == Cin
    assert Cout == Cin, "downsample is None -> residual add requires Cin == Cout"
    M = H * W
    assert W % 8 == 0 and M % 8 == 0 and H >= 2 and W >= 2

    C2 = _round_up(P)                    # lane-padded bottleneck width (128)
    f32, bf16 = jnp.float32, jnp.bfloat16

    # ---- wrapper-side prep: fold BN scales into conv weights, pad only P->C2 ----
    w1s = params["w1"] * params["s1"]                      # (Cin, P)
    w2s = params["w2"] * params["s2"]                      # (3,3,P,P), scale per out-chan
    w3s = params["w3"] * params["s3"]                      # (P, Cout)

    w1p = _pad_axis(w1s, C2, 1).astype(bf16)               # (Cin, C2)
    w2p = _pad_axis(_pad_axis(w2s, C2, 2), C2, 3)          # (3,3,C2,C2)
    w2c = w2p.reshape(3, 3 * C2, C2).astype(bf16)          # [ky, kx*C2+ci, co]
    w3p = _pad_axis(w3s, C2, 0).astype(bf16)               # (C2, Cout)
    b1 = _pad_axis(params["b1"], C2, 1).astype(f32)        # (1, C2)
    b2 = _pad_axis(params["b2"], C2, 1).astype(f32)        # (1, C2)
    b3 = params["b3"].astype(f32)                          # (1, Cout)

    # Column index per flattened pixel, for the dx=+-1 boundary masks.
    cidx = jnp.asarray((np.arange(M, dtype=np.float32) % W).reshape(M, 1))

    # True-width activations in HBM (no lane padding -> 8x less activation DMA).
    xf = x_nhwc.reshape(N, M, Cin)

    def kernel(x_ref, c_ref, w1_ref, b1_ref, w2_ref, b2_ref, w3_ref, b3_ref,
               out_ref, u_ref, acc_ref):
        # ---- stage 1: 1x1 conv (BN scale folded into w1) + bias + ReLU ----
        t1 = jnp.dot(x_ref[0].astype(bf16), w1_ref[...],
                     preferred_element_type=f32)           # (M, C2) f32
        t1 = jnp.maximum(t1 + b1_ref[...], 0.0)

        # ---- stage 2: 3x3 conv (stride 1, pad 1) ----
        # dx shifts: XLU roll by one flattened row + edge mask (VPU). dy shifts:
        # handled on the accumulation side with 8-row-aligned output-row offsets.
        c = c_ref[...]                                                    # (M,1) col idx
        u_m1 = jnp.where(c > 0.5, pltpu.roll(t1, shift=1, axis=0), 0.0)   # u[m]=t1[m-1]
        u_p1 = jnp.where(c < (W - 1) - 0.5,
                         pltpu.roll(t1, shift=M - 1, axis=0), 0.0)        # u[m]=t1[m+1]
        u_ref[:, 0:C2] = u_m1.astype(bf16)          # kx = 0 (dx = -1)
        u_ref[:, C2:2 * C2] = t1.astype(bf16)       # kx = 1 (dx =  0)
        u_ref[:, 2 * C2:3 * C2] = u_p1.astype(bf16)  # kx = 2 (dx = +1)

        # ky = 1 (dy = 0): all output rows
        acc_ref[...] = jnp.dot(u_ref[...], w2_ref[1], preferred_element_type=f32)
        # ky = 0 (dy = -1): out rows [W, M) read input rows [0, M-W)
        acc_ref[W:M, :] += jnp.dot(u_ref[0:M - W, :], w2_ref[0],
                                   preferred_element_type=f32)
        # ky = 2 (dy = +1): out rows [0, M-W) read input rows [W, M)
        acc_ref[0:M - W, :] += jnp.dot(u_ref[W:M, :], w2_ref[2],
                                       preferred_element_type=f32)

        t2 = jnp.maximum(acc_ref[...] + b2_ref[...], 0.0).astype(bf16)    # (M, C2)

        # ---- stage 3: 1x1 conv to true Cout + bias, residual add, final ReLU ----
        t3 = jnp.dot(t2, w3_ref[...], preferred_element_type=f32)         # (M, Cout)
        out_ref[0] = jnp.maximum(t3 + b3_ref[...] + x_ref[0], 0.0)

    full = lambda a: pl.BlockSpec(a.shape, lambda n, nd=a.ndim: (0,) * nd)

    flops = 2 * N * (M * Cin * C2
                     + (M + 2 * (M - W)) * (3 * C2) * C2
                     + M * C2 * Cout)
    bytes_accessed = (N * M * (Cin + Cout) + b1.size + b2.size + b3.size + cidx.size) * 4 \
                     + (w1p.size + w2c.size + w3p.size) * 2

    out = pl.pallas_call(
        kernel,
        out_shape=jax.ShapeDtypeStruct((N, M, Cout), f32),
        grid=(N,),
        in_specs=[
            pl.BlockSpec((1, M, Cin), lambda n: (n, 0, 0)),
            full(cidx),
            full(w1p), full(b1),
            full(w2c), full(b2),
            full(w3p), full(b3),
        ],
        out_specs=pl.BlockSpec((1, M, Cout), lambda n: (n, 0, 0)),
        scratch_shapes=[
            pltpu.VMEM((M, 3 * C2), bf16),   # dx-shifted taps (bf16, lane-block writes)
            pltpu.VMEM((M, C2), f32),        # conv2 f32 accumulator
        ],
        compiler_params=pltpu.CompilerParams(
            dimension_semantics=("parallel",),
            vmem_limit_bytes=16 * 1024 * 1024,
        ),
        cost_estimate=pl.CostEstimate(flops=flops, transcendentals=0,
                                      bytes_accessed=bytes_accessed),
    )(xf, cidx, w1p, b1, w2c, b2, w3p, b3)

    return out.reshape(N, H, W, Cout)


def make_params(key, inplanes, planes):
    """Deterministic synthetic parameters (eval-mode BN folded into scale/bias)."""
    cout = planes * EXPANSION
    ks = jax.random.split(key, 12)
    f32 = jnp.float32
    w1 = jax.random.normal(ks[0], (inplanes, planes), f32) * 0.1
    w2 = jax.random.normal(ks[1], (3, 3, planes, planes), f32) * 0.1
    w3 = jax.random.normal(ks[2], (planes, cout), f32) * 0.1

    def bn(kg, kb, km, kv, c):
        gamma = 1.0 + 0.1 * jax.random.normal(kg, (c,), f32)
        beta = 0.1 * jax.random.normal(kb, (c,), f32)
        mean = 0.1 * jax.random.normal(km, (c,), f32)
        var = jnp.abs(jax.random.normal(kv, (c,), f32)) + 0.5
        scale = gamma / jnp.sqrt(var + BN_EPS)
        bias = beta - mean * scale
        return scale.reshape(1, c), bias.reshape(1, c)

    s1, b1 = bn(ks[3], ks[4], ks[5], ks[6], planes)
    s2, b2 = bn(ks[7], ks[8], ks[9], ks[10], planes)
    s3, b3 = bn(ks[11], ks[3], ks[5], ks[7], cout)   # reuse keys deterministically
    return dict(w1=w1, w2=w2, w3=w3, s1=s1, b1=b1, s2=s2, b2=b2, s3=s3, b3=b3)


def reference_bottleneck(x_nhwc, params):
    """Pure-JAX f32 NHWC reference using lax.conv for verification."""
    dn = ("NHWC", "HWIO", "NHWC")
    w1 = params["w1"][None, None]        # (1,1,Cin,P)
    w3 = params["w3"][None, None]        # (1,1,P,Cout)
    y = lax.conv_general_dilated(x_nhwc, w1, (1, 1), "VALID", dimension_numbers=dn)
    y = jnp.maximum(y * params["s1"][None, None] + params["b1"][None, None], 0.0)
    y = lax.conv_general_dilated(y, params["w2"], (1, 1), ((1, 1), (1, 1)),
                                 dimension_numbers=dn)
    y = jnp.maximum(y * params["s2"][None, None] + params["b2"][None, None], 0.0)
    y = lax.conv_general_dilated(y, w3, (1, 1), "VALID", dimension_numbers=dn)
    y = y * params["s3"][None, None] + params["b3"][None, None]
    return jnp.maximum(y + x_nhwc, 0.0)


if __name__ == "__main__":
    # Module config: planes=4, expansion=4 -> inplanes = 16 (downsample=None, stride=1)
    N, H, W = 2, 16, 16
    planes = 4
    inplanes = planes * EXPANSION        # 16

    key = jax.random.PRNGKey(0)
    kx_, kp = jax.random.split(key)
    x_nchw = jax.random.normal(kx_, (N, inplanes, H, W), jnp.float32)  # PyTorch layout
    params = make_params(kp, inplanes, planes)

    x_nhwc = jnp.transpose(x_nchw, (0, 2, 3, 1))          # NCHW -> NHWC for the kernel
    out_nhwc = bottleneck_pallas(x_nhwc, params)
    out_nchw = jnp.transpose(out_nhwc, (0, 3, 1, 2))      # back to PyTorch NCHW
    jax.block_until_ready(out_nchw)

    ref_nhwc = reference_bottleneck(x_nhwc, params)
    # Tolerance loosened vs f32 reference because matmul operands are bf16
    # (accumulation and epilogue remain f32).
    np.testing.assert_allclose(np.asarray(out_nhwc), np.asarray(ref_nhwc),
                               rtol=2e-2, atol=2e-2)
    print("KERNEL_OK")
</pallas_src>

<mosaic_0001>
module attributes {stable_mosaic.version = 11 : i64} {
  func.func @kernel(%arg0: i32, %arg1: memref<1x256x16xf32, #tpu.memory_space<vmem>>, %arg2: memref<256x1xf32, #tpu.memory_space<vmem>>, %arg3: memref<16x128xbf16, #tpu.memory_space<vmem>>, %arg4: memref<1x128xf32, #tpu.memory_space<vmem>>, %arg5: memref<3x384x128xbf16, #tpu.memory_space<vmem>>, %arg6: memref<1x128xf32, #tpu.memory_space<vmem>>, %arg7: memref<128x16xbf16, #tpu.memory_space<vmem>>, %arg8: memref<1x16xf32, #tpu.memory_space<vmem>>, %arg9: memref<1x256x16xf32, #tpu.memory_space<vmem>>, %arg10: memref<256x384xbf16, #tpu.memory_space<vmem>>, %arg11: memref<256x128xf32, #tpu.memory_space<vmem>>) attributes {dimension_semantics = [#tpu.dimension_semantics<parallel>], iteration_bounds = array<i64: 2>, scalar_prefetch = 0 : i64, scratch_operands = 2 : i64, tpu.core_type = #tpu.core_type<tc>, window_params = [{transform_indices = @transform_0, window_bounds = array<i64: 1, 256, 16>}, {pipeline_mode = #tpu.pipeline_mode<synchronous>, transform_indices = @transform_1, window_bounds = array<i64: 256, 1>}, {pipeline_mode = #tpu.pipeline_mode<synchronous>, transform_indices = @transform_2, window_bounds = array<i64: 16, 128>}, {pipeline_mode = #tpu.pipeline_mode<synchronous>, transform_indices = @transform_3, window_bounds = array<i64: 1, 128>}, {pipeline_mode = #tpu.pipeline_mode<synchronous>, transform_indices = @transform_4, window_bounds = array<i64: 3, 384, 128>}, {pipeline_mode = #tpu.pipeline_mode<synchronous>, transform_indices = @transform_5, window_bounds = array<i64: 1, 128>}, {pipeline_mode = #tpu.pipeline_mode<synchronous>, transform_indices = @transform_6, window_bounds = array<i64: 128, 16>}, {pipeline_mode = #tpu.pipeline_mode<synchronous>, transform_indices = @transform_7, window_bounds = array<i64: 1, 16>}, {transform_indices = @transform_8, window_bounds = array<i64: 1, 256, 16>}]} {
    %c0 = arith.constant 0 : index
    %c0_0 = arith.constant 0 : index
    %c0_1 = arith.constant 0 : index
    %0 = vector.load %arg1[%c0, %c0_0, %c0_1] : memref<1x256x16xf32, #tpu.memory_space<vmem>>, vector<1x256x16xf32>
    %1 = vector.shape_cast %0 : vector<1x256x16xf32> to vector<256x16xf32>
    %2 = arith.truncf %1 : vector<256x16xf32> to vector<256x16xbf16>
    %c0_2 = arith.constant 0 : index
    %c0_3 = arith.constant 0 : index
    %3 = vector.load %arg3[%c0_2, %c0_3] : memref<16x128xbf16, #tpu.memory_space<vmem>>, vector<16x128xbf16>
    %cst = arith.constant dense<0.000000e+00> : vector<256x128xf32>
    %4 = tpu.matmul %2, %3, %cst {dimension_numbers = #tpu.dot_dimension_numbers<[1], [0], [0], [1], [0, 0, 1, 1], [], []>} : vector<256x16xbf16>, vector<16x128xbf16>, vector<256x128xf32> -> vector<256x128xf32>
    %c0_4 = arith.constant 0 : index
    %c0_5 = arith.constant 0 : index
    %5 = vector.load %arg4[%c0_4, %c0_5] : memref<1x128xf32, #tpu.memory_space<vmem>>, vector<1x128xf32>
    %6 = vector.broadcast %5 : vector<1x128xf32> to vector<256x128xf32>
    %7 = arith.addf %4, %6 : vector<256x128xf32>
    %cst_6 = arith.constant 0.000000e+00 : f32
    %8 = vector.broadcast %cst_6 : f32 to vector<256x128xf32>
    %9 = arith.maximumf %7, %8 : vector<256x128xf32>
    %c0_7 = arith.constant 0 : index
    %c0_8 = arith.constant 0 : index
    %10 = vector.load %arg2[%c0_7, %c0_8] : memref<256x1xf32, #tpu.memory_space<vmem>>, vector<256x1xf32>
    %cst_9 = arith.constant 5.000000e-01 : f32
    %11 = vector.broadcast %cst_9 : f32 to vector<256x1xf32>
    %12 = arith.cmpf ogt, %10, %11 : vector<256x1xf32>
    %c1_i32 = arith.constant 1 : i32
    %13 = tpu.dynamic_rotate %9 by %c1_i32 dim 0 : vector<256x128xf32>, i32 -> vector<256x128xf32>
    %cst_10 = arith.constant 0.000000e+00 : f32
    %14 = vector.shape_cast %12 : vector<256x1xi1> to vector<256x1xi1>
    %15 = vector.broadcast %14 : vector<256x1xi1> to vector<256x128xi1>
    %16 = vector.broadcast %cst_10 : f32 to vector<256x128xf32>
    %17 = arith.select %15, %13, %16 : vector<256x128xi1>, vector<256x128xf32>
    %cst_11 = arith.constant 1.450000e+01 : f32
    %18 = vector.broadcast %cst_11 : f32 to vector<256x1xf32>
    %19 = arith.cmpf olt, %10, %18 : vector<256x1xf32>
    %c255_i32 = arith.constant 255 : i32
    %20 = tpu.dynamic_rotate %9 by %c255_i32 dim 0 : vector<256x128xf32>, i32 -> vector<256x128xf32>
    %cst_12 = arith.constant 0.000000e+00 : f32
    %21 = vector.shape_cast %19 : vector<256x1xi1> to vector<256x1xi1>
    %22 = vector.broadcast %21 : vector<256x1xi1> to vector<256x128xi1>
    %23 = vector.broadcast %cst_12 : f32 to vector<256x128xf32>
    %24 = arith.select %22, %20, %23 : vector<256x128xi1>, vector<256x128xf32>
    %25 = arith.truncf %17 : vector<256x128xf32> to vector<256x128xbf16>
    %c0_13 = arith.constant 0 : index
    %c0_14 = arith.constant 0 : index
    %26 = vector.load %arg10[%c0_13, %c0_14] : memref<256x384xbf16, #tpu.memory_space<vmem>>, vector<256x128xbf16>
    tpu.vector_store %arg10[%c0_13, %c0_14], %25 {strides = array<i32>} : memref<256x384xbf16, #tpu.memory_space<vmem>>, vector<256x128xbf16>,
    %27 = arith.truncf %9 : vector<256x128xf32> to vector<256x128xbf16>
    %c0_15 = arith.constant 0 : index
    %c128 = arith.constant 128 : index
    %28 = vector.load %arg10[%c0_15, %c128] : memref<256x384xbf16, #tpu.memory_space<vmem>>, vector<256x128xbf16>
    tpu.vector_store %arg10[%c0_15, %c128], %27 {strides = array<i32>} : memref<256x384xbf16, #tpu.memory_space<vmem>>, vector<256x128xbf16>,
    %29 = arith.truncf %24 : vector<256x128xf32> to vector<256x128xbf16>
    %c0_16 = arith.constant 0 : index
    %c256 = arith.constant 256 : index
    %30 = vector.load %arg10[%c0_16, %c256] : memref<256x384xbf16, #tpu.memory_space<vmem>>, vector<256x128xbf16>
    tpu.vector_store %arg10[%c0_16, %c256], %29 {strides = array<i32>} : memref<256x384xbf16, #tpu.memory_space<vmem>>, vector<256x128xbf16>,
    %c0_17 = arith.constant 0 : index
    %c0_18 = arith.constant 0 : index
    %31 = vector.load %arg10[%c0_17, %c0_18] : memref<256x384xbf16, #tpu.memory_space<vmem>>, vector<256x384xbf16>
    %c1 = arith.constant 1 : index
    %c0_19 = arith.constant 0 : index
    %c0_20 = arith.constant 0 : index
    %32 = vector.load %arg5[%c1, %c0_19, %c0_20] : memref<3x384x128xbf16, #tpu.memory_space<vmem>>, vector<1x384x128xbf16>
    %33 = vector.shape_cast %32 : vector<1x384x128xbf16> to vector<384x128xbf16>
    %cst_21 = arith.constant dense<0.000000e+00> : vector<256x128xf32>
    %34 = tpu.matmul %31, %33, %cst_21 {dimension_numbers = #tpu.dot_dimension_numbers<[1], [0], [0], [1], [0, 0, 1, 1], [], []>} : vector<256x384xbf16>, vector<384x128xbf16>, vector<256x128xf32> -> vector<256x128xf32>
    %c0_22 = arith.constant 0 : index
    %c0_23 = arith.constant 0 : index
    %35 = vector.load %arg11[%c0_22, %c0_23] : memref<256x128xf32, #tpu.memory_space<vmem>>, vector<256x128xf32>
    tpu.vector_store %arg11[%c0_22, %c0_23], %34 {strides = array<i32>} : memref<256x128xf32, #tpu.memory_space<vmem>>, vector<256x128xf32>,
    %c16 = arith.constant 16 : index
    %c0_24 = arith.constant 0 : index
    %36 = vector.load %arg11[%c16, %c0_24] : memref<256x128xf32, #tpu.memory_space<vmem>>, vector<240x128xf32>
    %c0_25 = arith.constant 0 : index
    %c0_26 = arith.constant 0 : index
    %37 = vector.load %arg10[%c0_25, %c0_26] : memref<256x384xbf16, #tpu.memory_space<vmem>>, vector<240x384xbf16>
    %c0_27 = arith.constant 0 : index
    %c0_28 = arith.constant 0 : index
    %c0_29 = arith.constant 0 : index
    %38 = vector.load %arg5[%c0_27, %c0_28, %c0_29] : memref<3x384x128xbf16, #tpu.memory_space<vmem>>, vector<1x384x128xbf16>
    %39 = vector.shape_cast %38 : vector<1x384x128xbf16> to vector<384x128xbf16>
    %cst_30 = arith.constant dense<0.000000e+00> : vector<240x128xf32>
    %40 = tpu.matmul %37, %39, %cst_30 {dimension_numbers = #tpu.dot_dimension_numbers<[1], [0], [0], [1], [0, 0, 1, 1], [], []>} : vector<240x384xbf16>, vector<384x128xbf16>, vector<240x128xf32> -> vector<240x128xf32>
    %41 = arith.addf %36, %40 : vector<240x128xf32>
    %c16_31 = arith.constant 16 : index
    %c0_32 = arith.constant 0 : index
    %42 = vector.load %arg11[%c16_31, %c0_32] : memref<256x128xf32, #tpu.memory_space<vmem>>, vector<240x128xf32>
    tpu.vector_store %arg11[%c16_31, %c0_32], %41 {strides = array<i32>} : memref<256x128xf32, #tpu.memory_space<vmem>>, vector<240x128xf32>,
    %c0_33 = arith.constant 0 : index
    %c0_34 = arith.constant 0 : index
    %43 = vector.load %arg11[%c0_33, %c0_34] : memref<256x128xf32, #tpu.memory_space<vmem>>, vector<240x128xf32>
    %c16_35 = arith.constant 16 : index
    %c0_36 = arith.constant 0 : index
    %44 = vector.load %arg10[%c16_35, %c0_36] : memref<256x384xbf16, #tpu.memory_space<vmem>>, vector<240x384xbf16>
    %c2 = arith.constant 2 : index
    %c0_37 = arith.constant 0 : index
    %c0_38 = arith.constant 0 : index
    %45 = vector.load %arg5[%c2, %c0_37, %c0_38] : memref<3x384x128xbf16, #tpu.memory_space<vmem>>, vector<1x384x128xbf16>
    %46 = vector.shape_cast %45 : vector<1x384x128xbf16> to vector<384x128xbf16>
    %cst_39 = arith.constant dense<0.000000e+00> : vector<240x128xf32>
    %47 = tpu.matmul %44, %46, %cst_39 {dimension_numbers = #tpu.dot_dimension_numbers<[1], [0], [0], [1], [0, 0, 1, 1], [], []>} : vector<240x384xbf16>, vector<384x128xbf16>, vector<240x128xf32> -> vector<240x128xf32>
    %48 = arith.addf %43, %47 : vector<240x128xf32>
    %c0_40 = arith.constant 0 : index
    %c0_41 = arith.constant 0 : index
    %49 = vector.load %arg11[%c0_40, %c0_41] : memref<256x128xf32, #tpu.memory_space<vmem>>, vector<240x128xf32>
    tpu.vector_store %arg11[%c0_40, %c0_41], %48 {strides = array<i32>} : memref<256x128xf32, #tpu.memory_space<vmem>>, vector<240x128xf32>,
    %c0_42 = arith.constant 0 : index
    %c0_43 = arith.constant 0 : index
    %50 = vector.load %arg11[%c0_42, %c0_43] : memref<256x128xf32, #tpu.memory_space<vmem>>, vector<256x128xf32>
    %c0_44 = arith.constant 0 : index
    %c0_45 = arith.constant 0 : index
    %51 = vector.load %arg6[%c0_44, %c0_45] : memref<1x128xf32, #tpu.memory_space<vmem>>, vector<1x128xf32>
    %52 = vector.broadcast %51 : vector<1x128xf32> to vector<256x128xf32>
    %53 = arith.addf %50, %52 : vector<256x128xf32>
    %cst_46 = arith.constant 0.000000e+00 : f32
    %54 = vector.broadcast %cst_46 : f32 to vector<256x128xf32>
    %55 = arith.maximumf %53, %54 : vector<256x128xf32>
    %56 = arith.truncf %55 : vector<256x128xf32> to vector<256x128xbf16>
    %c0_47 = arith.constant 0 : index
    %c0_48 = arith.constant 0 : index
    %57 = vector.load %arg7[%c0_47, %c0_48] : memref<128x16xbf16, #tpu.memory_space<vmem>>, vector<128x16xbf16>
    %cst_49 = arith.constant dense<0.000000e+00> : vector<256x16xf32>
    %58 = tpu.matmul %56, %57, %cst_49 {dimension_numbers = #tpu.dot_dimension_numbers<[1], [0], [0], [1], [0, 0, 1, 1], [], []>} : vector<256x128xbf16>, vector<128x16xbf16>, vector<256x16xf32> -> vector<256x16xf32>
    %c0_50 = arith.constant 0 : index
    %c0_51 = arith.constant 0 : index
    %59 = vector.load %arg8[%c0_50, %c0_51] : memref<1x16xf32, #tpu.memory_space<vmem>>, vector<1x16xf32>
    %60 = vector.broadcast %59 : vector<1x16xf32> to vector<256x16xf32>
    %61 = arith.addf %58, %60 : vector<256x16xf32>
    %c0_52 = arith.constant 0 : index
    %c0_53 = arith.constant 0 : index
    %c0_54 = arith.constant 0 : index
    %62 = vector.load %arg1[%c0_52, %c0_53, %c0_54] : memref<1x256x16xf32, #tpu.memory_space<vmem>>, vector<1x256x16xf32>
    %63 = vector.shape_cast %62 : vector<1x256x16xf32> to vector<256x16xf32>
    %64 = arith.addf %61, %63 : vector<256x16xf32>
    %cst_55 = arith.constant 0.000000e+00 : f32
    %65 = vector.broadcast %cst_55 : f32 to vector<256x16xf32>
    %66 = arith.maximumf %64, %65 : vector<256x16xf32>
    %c0_56 = arith.constant 0 : index
    %c0_57 = arith.constant 0 : index
    %c0_58 = arith.constant 0 : index
    %67 = vector.load %arg9[%c0_56, %c0_57, %c0_58] : memref<1x256x16xf32, #tpu.memory_space<vmem>>, vector<1x256x16xf32>
    %68 = vector.shape_cast %67 : vector<1x256x16xf32> to vector<256x16xf32>
    %69 = vector.shape_cast %66 : vector<256x16xf32> to vector<1x256x16xf32>
    tpu.vector_store %arg9[%c0_56, %c0_57, %c0_58], %69 {strides = array<i32>} : memref<1x256x16xf32, #tpu.memory_space<vmem>>, vector<1x256x16xf32>,
    return
  }
  func.func @transform_0(%arg0: i32) -> (i32, i32, i32) {
    %c0_i32 = arith.constant 0 : i32
    %c0_i32_0 = arith.constant 0 : i32
    %c0_i32_1 = arith.constant 0 : i32
    return %arg0, %c0_i32, %c0_i32_0 : i32, i32, i32
  }
  func.func @transform_1(%arg0: i32) -> (i32, i32) {
    %c0_i32 = arith.constant 0 : i32
    %c0_i32_0 = arith.constant 0 : i32
    %c0_i32_1 = arith.constant 0 : i32
    return %c0_i32, %c0_i32_0 : i32, i32
  }
  func.func @transform_2(%arg0: i32) -> (i32, i32) {
    %c0_i32 = arith.constant 0 : i32
    %c0_i32_0 = arith.constant 0 : i32
    %c0_i32_1 = arith.constant 0 : i32
    return %c0_i32, %c0_i32_0 : i32, i32
  }
  func.func @transform_3(%arg0: i32) -> (i32, i32) {
    %c0_i32 = arith.constant 0 : i32
    %c0_i32_0 = arith.constant 0 : i32
    %c0_i32_1 = arith.constant 0 : i32
    return %c0_i32, %c0_i32_0 : i32, i32
  }
  func.func @transform_4(%arg0: i32) -> (i32, i32, i32) {
    %c0_i32 = arith.constant 0 : i32
    %c0_i32_0 = arith.constant 0 : i32
    %c0_i32_1 = arith.constant 0 : i32
    %c0_i32_2 = arith.constant 0 : i32
    return %c0_i32, %c0_i32_0, %c0_i32_1 : i32, i32, i32
  }
  func.func @transform_5(%arg0: i32) -> (i32, i32) {
    %c0_i32 = arith.constant 0 : i32
    %c0_i32_0 = arith.constant 0 : i32
    %c0_i32_1 = arith.constant 0 : i32
    return %c0_i32, %c0_i32_0 : i32, i32
  }
  func.func @transform_6(%arg0: i32) -> (i32, i32) {
    %c0_i32 = arith.constant 0 : i32
    %c0_i32_0 = arith.constant 0 : i32
    %c0_i32_1 = arith.constant 0 : i32
    return %c0_i32, %c0_i32_0 : i32, i32
  }
  func.func @transform_7(%arg0: i32) -> (i32, i32) {
    %c0_i32 = arith.constant 0 : i32
    %c0_i32_0 = arith.constant 0 : i32
    %c0_i32_1 = arith.constant 0 : i32
    return %c0_i32, %c0_i32_0 : i32, i32
  }
  func.func @transform_8(%arg0: i32) -> (i32, i32, i32) {
    %c0_i32 = arith.constant 0 : i32
    %c0_i32_0 = arith.constant 0 : i32
    %c0_i32_1 = arith.constant 0 : i32
    return %arg0, %c0_i32, %c0_i32_0 : i32, i32, i32
  }
}

</mosaic_0001>

<bundles_post_ra>
// kernel: tpu_custom_call.1
= control target key start
LH: loop header
LB: loop body
LE: loop exit
PB: predicated region body
PF: predicated region fallthrough
CT: control target
= control target key end

     0   :  { %s6385_s27 = smov 0   ;;  %s8725_s0 = inlined_call_operand.vmem [shape: f32[2,256,16], index: 0, kind: input, shape index: {}]   ;;  %s8726_s1 = inlined_call_operand.vmem [shape: f32[256,1], index: 1, kind: input, shape index: {}]   ;;  %s8727_s2 = inlined_call_operand.vmem [shape: bf16[16,128], index: 2, kind: input, shape index: {}]   ;;  %s8728_s3 = inlined_call_operand.vmem [shape: f32[1,128], index: 3, kind: input, shape index: {}]   ;;  %s8729_s4 = inlined_call_operand.vmem [shape: bf16[3,384,128], index: 4, kind: input, shape index: {}]   ;;  %s8730_s5 = inlined_call_operand.vmem [shape: f32[1,128], index: 5, kind: input, shape index: {}]   ;;  %s8731_s6 = inlined_call_operand.vmem [shape: bf16[128,16], index: 6, kind: input, shape index: {}]   ;;  %s8732_s7 = inlined_call_operand.vmem [shape: f32[1,16], index: 7, kind: input, shape index: {}]   ;;  %s8733_s8 = inlined_call_operand.vmem [shape: f32[2,256,16], index: 8, kind: output, shape index: {}]  }
   0x1 LB: > { %s4882_s28 = sadd.s32 4294967295, %s6335_s27   ;;  %p4886_p0 = scmp.ge.s32.totalorder %s6335_s27, 1  ;;  %s6335_s27 = sphi %s6385_s27, %s18_s27  }
   0x2   : > { %p262_p1 = scmp.lt.s32.totalorder %s6335_s27, 3 }
   0x4   : > { %p263_p2 = pnand %p4886_p0, %p262_p1 }
   0x6   : > { %266 = sbr.rel (%p263_p2) target bundleno = 1091 (0x443), region = 52 }
   0xb   : > { %v6396_v0 = vld [vmem:[%s8726_s1 + $0x10] sm:$0xff]  ;;  %v6401_v1 = vld [vmem:[%s8726_s1] sm:$0xff]  ;;  %p296_p3 = scmp.lt.s32.totalorder %s4882_s28, 1  ;;  %v6337_v2 = vmov 0   ;;  %v6413_v4 = vld [vmem:[%s8726_s1 + $0x18] sm:$0xff]  ;;  %vm370_vm5 = vcmask 130048  }
   0xc   : > { %6152 = vset.pattern.permute.xlu1 %v6337_v2  ;;  %6151 = vset.pattern.permute.xlu0 %v6337_v2  ;;  %vm646_vm0 = vcmp.gt.f32.partialorder %v6396_v0, 0.5  ;;  %vm644_vm1 = vcmp.gt.f32.partialorder %v6401_v1, 0.5  ;;  %v6153_v3 = vld [vmem:[%s8727_s2] sm:$0xff]   ;;  %vm647_vm2 = vcmp.gt.f32.partialorder %v6413_v4, 0.5  ;;  %v6421_v7 = vld [vmem:[%s8726_s1 + $0x8] sm:$0xff]  ;;  %v6450_v12 = vld [vmem:[%s8726_s1 + $0x38] sm:$0xff] }
   0xd   : > { %v745_v5 = vsel %vm646_vm0, 1, %v6337_v2  ;;  %v743_v6 = vsel %vm644_vm1, 1, %v6337_v2  ;;  %s8855_s28 = smov (!%p296_p3, %s4882_s28), 1  ;;  %vm645_vm3 = vcmp.gt.f32.partialorder %v6421_v7, 0.5  ;;  %v6429_v8 = vld [vmem:[%s8726_s1 + $0x28] sm:$0xff]  ;;  %v6434_v9 = vld [vmem:[%s8726_s1 + $0x20] sm:$0xff]  ;;  %5856 = vmatprep.subr.bf16.mxu0 %v6153_v3  ;;  %6138 = vmatprep.subr.bf16.mxu1 %v6153_v3 }
   0xe   : > { %782 = vperm.xlu1 %6152, %v745_v5   ;;  %776 = vperm.xlu0 %6151, %v743_v6   ;;  %v746_v10 = vsel %vm647_vm2, 1, %v6337_v2  ;;  %v744_v11 = vsel %vm645_vm3, 1, %v6337_v2  ;;  %s5323_s21 = sshll.u32 %s8855_s28, 8  ;;  %vm649_vm4 = vcmp.gt.f32.partialorder %v6429_v8, 0.5  ;;  %v6455_v13 = vld [vmem:[%s8726_s1 + $0x30] sm:$0xff]  ;;  %vm648_vm6 = vcmp.gt.f32.partialorder %v6434_v9, 0.5 }
   0xf   : > { %5857 = vmatpush3.bf16.msra.mxu0 %v6153_v3  ;;  %6139 = vmatpush3.bf16.msra.mxu1 %v6153_v3  ;;  %s6444_s24 = scalar_lea.vmem %s8725_s0, %s5323_s21  ;;  %v748_v25 = vsel %vm649_vm4, 1, %v6337_v2  ;;  %v747_v28 = vsel %vm648_vm6, 1, %v6337_v2  ;;  %vm651_vm7 = vcmp.gt.f32.partialorder %v6450_v12, 0.5  ;;  %vm650_vm8 = vcmp.gt.f32.partialorder %v6455_v13, 0.5  ;;  %v6482_v34 = vld [vmem:[%s8726_s1 + $0x48] sm:$0xff]  ;;  %v6490_v37 = vld [vmem:[%s8726_s1 + $0x40] sm:$0xff]  ;;  %s8596_s11 = scalar_lea.vmem %s8733_s8, %s5323_s21 }
  0x10   : > { %v307_v14 = vld [vmem:[%s6444_s24] sm:$0xff]  ;;  %v308_v15 = vld [vmem:[%s6444_s24 + $0x8] sm:$0xff]  ;;  %v309_v19 = vld [vmem:[%s6444_s24 + $0x10] sm:$0xff]  ;;  %v750_v38 = vsel %vm651_vm7, 1, %v6337_v2  ;;  %v749_v41 = vsel %vm650_vm8, 1, %v6337_v2  ;;  %vm653_vm9 = vcmp.gt.f32.partialorder %v6482_v34, 0.5 }
  0x11   : > { %v323_v16 = vld [vmem:[%s6444_s24 + $0x80] sm:$0xff]  ;;  %v339_v17 = vpack.c.bf16 %v308_v15, %v307_v14  ;;  %v324_v18 = vld [vmem:[%s6444_s24 + $0x88] sm:$0xff]  ;;  %v310_v20 = vld [vmem:[%s6444_s24 + $0x18] sm:$0xff]  ;;  %vm652_vm10 = vcmp.gt.f32.partialorder %v6490_v37, 0.5  ;;  %v752_v50 = vsel %vm653_vm9, 1, %v6337_v2  ;;  %vm936_vm12 = vcmp.lt.f32.partialorder %v6421_v7, 14.5 }
  0x12   : > { %785 = vperm.xlu1 %6152, %v746_v10   ;;  %779 = vperm.xlu0 %6151, %v744_v11   ;;  %v347_v21 = vpack.c.bf16 %v324_v18, %v323_v16  ;;  %v340_v22 = vpack.c.bf16 %v310_v20, %v309_v19  ;;  %v325_v23 = vld [vmem:[%s6444_s24 + $0x90] sm:$0xff]  ;;  %v326_v24 = vld [vmem:[%s6444_s24 + $0x98] sm:$0xff]  ;;  %v311_v26 = vld [vmem:[%s6444_s24 + $0x20] sm:$0xff]  ;;  %v751_v52 = vsel %vm652_vm10, 1, %v6337_v2  ;;  %vm935_vm14 = vcmp.lt.f32.partialorder %v6401_v1, 14.5 }
  0x13   : > { %5858 = vmatprep.mubr.msk.bf16.mxu0 %vm370_vm5, %v339_v17  ;;  %v348_v27 = vpack.c.bf16 %v326_v24, %v325_v23  ;;  %v312_v29 = vld [vmem:[%s6444_s24 + $0x28] sm:$0xff]  ;;  %v327_v30 = vld [vmem:[%s6444_s24 + $0xa0] sm:$0xff]  ;;  %v313_v35 = vld [vmem:[%s6444_s24 + $0x30] sm:$0xff]  ;;  %v6548_v62 = vsel %vm936_vm12, 1, %v6337_v2  ;;  %vm938_vm15 = vcmp.lt.f32.partialorder %v6413_v4, 14.5  ;;  %v6566_v7 = vsel %vm935_vm14, 1, %v6337_v2 }
  0x14   : > { %v328_v31 = vld [vmem:[%s6444_s24 + $0xa8] sm:$0xff]  ;;  %5874 = vmatprep.mubr.msk.bf16.mxu1 %vm370_vm5, %v347_v21  ;;  %5859 = vmatmul.mubr.msk.bf16.vlgmr.msra.gmra.mxu0 %vm370_vm5, %v340_v22  ;;  %v341_v32 = vpack.c.bf16 %v312_v29, %v311_v26  ;;  %v314_v36 = vld [vmem:[%s6444_s24 + $0x38] sm:$0xff]  ;;  %v329_v39 = vld [vmem:[%s6444_s24 + $0xb0] sm:$0xff]  ;;  %vm937_vm2 = vcmp.lt.f32.partialorder %v6396_v0, 14.5  ;;  %vm940_vm3 = vcmp.lt.f32.partialorder %v6429_v8, 14.5  ;;  %v6576_v16 = vsel %vm938_vm15, 1, %v6337_v2 }
  0x15   : > { %v349_v33 = vpack.c.bf16 %v328_v31, %v327_v30  ;;  %5875 = vmatmul.mubr.msk.bf16.vlgmr.msra.gmra.mxu1 %vm370_vm5, %v348_v27  ;;  %v330_v40 = vld [vmem:[%s6444_s24 + $0xb8] sm:$0xff]  ;;  %v315_v42 = vld [vmem:[%s6444_s24 + $0x40] sm:$0xff]  ;;  %v316_v43 = vld [vmem:[%s6444_s24 + $0x48] sm:$0xff]  ;;  %v342_v44 = vpack.c.bf16 %v314_v36, %v313_v35  ;;  %vm939_vm4 = vcmp.lt.f32.partialorder %v6434_v9, 14.5  ;;  %vm942_vm6 = vcmp.lt.f32.partialorder %v6450_v12, 14.5 }
  0x16   : > { %791 = vperm.xlu1 %6152, %v748_v25   ;;  %788 = vperm.xlu0 %6151, %v747_v28   ;;  %v6507_v45 = vld [vmem:[%s8726_s1 + $0x58] sm:$0xff]  ;;  %v331_v46 = vld [vmem:[%s6444_s24 + $0xc0] sm:$0xff]  ;;  %v332_v47 = vld [vmem:[%s6444_s24 + $0xc8] sm:$0xff]  ;;  %v350_v48 = vpack.c.bf16 %v330_v40, %v329_v39  ;;  %v343_v51 = vpack.c.bf16 %v316_v43, %v315_v42  ;;  %v6587_v17 = vsel %vm937_vm2, 1, %v6337_v2  ;;  %v6590_v9 = vsel %vm940_vm3, 1, %v6337_v2 }
  0x17   : > { %5862 = vmatprep.mubr.msk.bf16.mxu0 %vm370_vm5, %v341_v32  ;;  %5878 = vmatprep.mubr.msk.bf16.mxu1 %vm370_vm5, %v349_v33  ;;  %v6514_v49 = vld [vmem:[%s8726_s1 + $0x50] sm:$0xff]  ;;  %vm655_vm11 = vcmp.gt.f32.partialorder %v6507_v45, 0.5  ;;  %v351_v53 = vpack.c.bf16 %v332_v47, %v331_v46  ;;  %v6525_v54 = vld [vmem:[%s8726_s1 + $0x68] sm:$0xff]  ;;  %v318_v56 = vld [vmem:[%s6444_s24 + $0x58] sm:$0xff]  ;;  %v6600_v19 = vsel %vm939_vm4, 1, %v6337_v2  ;;  %v6603_v20 = vsel %vm942_vm6, 1, %v6337_v2 }
  0x18   : > { %vm654_vm13 = vcmp.gt.f32.partialorder %v6514_v49, 0.5  ;;  %v317_v55 = vld [vmem:[%s6444_s24 + $0x50] sm:$0xff]  ;;  %v6534_v57 = vld [vmem:[%s8726_s1 + $0x60] sm:$0xff]  ;;  %v754_v58 = vsel %vm655_vm11, 1, %v6337_v2  ;;  %v334_v60 = vld [vmem:[%s6444_s24 + $0xd8] sm:$0xff]  ;;  %vm657_vm0 = vcmp.gt.f32.partialorder %v6525_v54, 0.5 }
  0x19   : > { %v333_v59 = vld [vmem:[%s6444_s24 + $0xd0] sm:$0xff]  ;;  %v6543_v61 = vld [vmem:[%s8726_s1 + $0x78] sm:$0xff]  ;;  %v753_v63 = vsel %vm654_vm13, 1, %v6337_v2  ;;  %v319_v5 = vld [vmem:[%s6444_s24 + $0x60] sm:$0xff]  ;;  %v344_v10 = vpack.c.bf16 %v318_v56, %v317_v55  ;;  %vm656_vm1 = vcmp.gt.f32.partialorder %v6534_v57, 0.5  ;;  %v756_v1 = vsel %vm657_vm0, 1, %v6337_v2 }
  0x1a   : > { %797 = vperm.xlu1 %6152, %v750_v38   ;;  %794 = vperm.xlu0 %6151, %v749_v41   ;;  %v6559_v3 = vld [vmem:[%s8726_s1 + $0x70] sm:$0xff]  ;;  %v320_v6 = vld [vmem:[%s6444_s24 + $0x68] sm:$0xff]  ;;  %v335_v11 = vld [vmem:[%s6444_s24 + $0xe0] sm:$0xff]  ;;  %v352_v15 = vpack.c.bf16 %v334_v60, %v333_v59  ;;  %vm659_vm7 = vcmp.gt.f32.partialorder %v6543_v61, 0.5  ;;  %v755_v8 = vsel %vm656_vm1, 1, %v6337_v2  ;;  %vm941_vm9 = vcmp.lt.f32.partialorder %v6455_v13, 14.5 }
  0x1b   : > { %v336_v14 = vld [vmem:[%s6444_s24 + $0xe8] sm:$0xff]  ;;  %vm658_vm8 = vcmp.gt.f32.partialorder %v6559_v3, 0.5  ;;  %v345_v0 = vpack.c.bf16 %v320_v6, %v319_v5  ;;  %v321_v12 = vld [vmem:[%s6444_s24 + $0x70] sm:$0xff]  ;;  %vm944_vm10 = vcmp.lt.f32.partialorder %v6482_v34, 14.5  ;;  %v758_v21 = vsel %vm659_vm7, 1, %v6337_v2  ;;  %v322_v23 = vld [vmem:[%s6444_s24 + $0x78] sm:$0xff] }
  0x1c   : > { %5863 = vmatmul.mubr.msk.bf16.gmra.mxu0 %vm370_vm5, %v342_v44  ;;  %v353_v4 = vpack.c.bf16 %v336_v14, %v335_v11  ;;  %v6597_v18 = vld [vmem:[%s8726_s1 + $0x88] sm:$0xff]  ;;  %v757_v22 = vsel %vm658_vm8, 1, %v6337_v2  ;;  %v337_v24 = vld [vmem:[%s6444_s24 + $0xf0] sm:$0xff]  ;;  %v338_v25 = vld [vmem:[%s6444_s24 + $0xf8] sm:$0xff]  ;;  %vm943_vm11 = vcmp.lt.f32.partialorder %v6490_v37, 14.5  ;;  %vm946_vm12 = vcmp.lt.f32.partialorder %v6507_v45, 14.5 }
  0x1d   : > { %5879 = vmatmul.mubr.msk.bf16.gmra.mxu1 %vm370_vm5, %v350_v48  ;;  %5866 = vmatprep.mubr.msk.bf16.mxu0 %vm370_vm5, %v343_v51  ;;  %v6621_v26 = vld [vmem:[%s8726_s1 + $0x80] sm:$0xff]  ;;  %vm661_vm13 = vcmp.gt.f32.partialorder %v6597_v18, 0.5  ;;  %v6630_v27 = vld [vmem:[%s8726_s1 + $0x98] sm:$0xff]  ;;  %v6635_v28 = vld [vmem:[%s8726_s1 + $0x90] sm:$0xff]  ;;  %vm945_vm14 = vcmp.lt.f32.partialorder %v6514_v49, 14.5  ;;  %v346_v29 = vpack.c.bf16 %v322_v23, %v321_v12  ;;  %v1038_v30 = vsel %vm941_vm9, 1, %v6337_v2 }
  0x1e   : > { %803 = vperm.xlu1 %6152, %v752_v50   ;;  %800 = vperm.xlu0 %6151, %v751_v52   ;;  %v1041_v31 = vsel %vm944_vm10, 1, %v6337_v2  ;;  %v6647_v32 = vld [vmem:[%s8726_s1 + $0xa8] sm:$0xff]  ;;  %v6652_v33 = vld [vmem:[%s8726_s1 + $0xa0] sm:$0xff]  ;;  %v354_v35 = vpack.c.bf16 %v338_v25, %v337_v24  ;;  %vm660_vm15 = vcmp.gt.f32.partialorder %v6621_v26, 0.5  ;;  %v1040_v13 = vsel %vm943_vm11, 1, %v6337_v2  ;;  %v6660_v34 = vld [vmem:[%s8726_s1 + $0xb8] sm:$0xff] }
  0x1f   : > { %5882 = vmatprep.mubr.msk.bf16.mxu1 %vm370_vm5, %v351_v53  ;;  %v1043_v36 = vsel %vm946_vm12, 1, %v6337_v2  ;;  %v760_v37 = vsel %vm661_vm13, 1, %v6337_v2  ;;  %vm663_vm0 = vcmp.gt.f32.partialorder %v6630_v27, 0.5  ;;  %v1042_v38 = vsel %vm945_vm14, 1, %v6337_v2  ;;  %v6670_v39 = vld [vmem:[%s8726_s1 + $0xb0] sm:$0xff]  ;;  %v637_v52 = vld [vmem:[%s8726_s1 + $0xc8] sm:$0xff] }
  0x20   : > { %vm662_vm1 = vcmp.gt.f32.partialorder %v6635_v28, 0.5  ;;  %vm665_vm2 = vcmp.gt.f32.partialorder %v6647_v32, 0.5  ;;  %vm664_vm3 = vcmp.gt.f32.partialorder %v6652_v33, 0.5  ;;  %vm948_vm4 = vcmp.lt.f32.partialorder %v6525_v54, 14.5  ;;  %v6154_v54 = vld [vmem:[%s8729_s4 + $0x178] sm:$0xff]   ;;  %v6155_v56 = vld [vmem:[%s8729_s4 + $0x170] sm:$0xff]  }
  0x21   : > { %vm947_vm6 = vcmp.lt.f32.partialorder %v6534_v57, 14.5  ;;  %vm950_vm7 = vcmp.lt.f32.partialorder %v6543_v61, 14.5  ;;  %vm949_vm8 = vcmp.lt.f32.partialorder %v6559_v3, 14.5  ;;  %vm667_vm9 = vcmp.gt.f32.partialorder %v6660_v34, 0.5  ;;  %5890 = vmatprep.subr.bf16.mxu0 %v6154_v54  ;;  %v636_v57 = vld [vmem:[%s8726_s1 + $0xc0] sm:$0xff]  ;;  %v6156_v61 = vld [vmem:[%s8729_s4 + $0x168] sm:$0xff]  }
  0x22   : > { %809 = vperm.xlu1 %6152, %v754_v58   ;;  %806 = vperm.xlu0 %6151, %v753_v63   ;;  %v759_v40 = vsel %vm660_vm15, 1, %v6337_v2  ;;  %v762_v41 = vsel %vm663_vm0, 1, %v6337_v2  ;;  %vm666_vm10 = vcmp.gt.f32.partialorder %v6670_v39, 0.5  ;;  %vm952_vm11 = vcmp.lt.f32.partialorder %v6597_v18, 14.5  ;;  %v639_v3 = vld [vmem:[%s8726_s1 + $0xd8] sm:$0xff]  ;;  %v638_v5 = vld [vmem:[%s8726_s1 + $0xd0] sm:$0xff] }
  0x23   : > { %v761_v42 = vsel %vm662_vm1, 1, %v6337_v2  ;;  %v764_v43 = vsel %vm665_vm2, 1, %v6337_v2  ;;  %v763_v44 = vsel %vm664_vm3, 1, %v6337_v2  ;;  %v1045_v45 = vsel %vm948_vm4, 1, %v6337_v2  ;;  %5891 = vmatpush3.bf16.msra.mxu0 %v6154_v54  ;;  %v643_v18 = vld [vmem:[%s8726_s1 + $0xf8] sm:$0xff]  ;;  %v6161_v24 = vld [vmem:[%s8729_s4 + $0x150] sm:$0xff]  }
  0x24   : > { %5867 = vmatmul.mubr.msk.bf16.gmra.mxu0 %vm370_vm5, %v344_v10  ;;  %v1044_v46 = vsel %vm947_vm6, 1, %v6337_v2  ;;  %v1047_v47 = vsel %vm950_vm7, 1, %v6337_v2  ;;  %v1046_v48 = vsel %vm949_vm8, 1, %v6337_v2  ;;  %v766_v49 = vsel %vm667_vm9, 1, %v6337_v2  ;;  %5892 = vmatprep.subr.bf16.mxu0 %v6155_v56  ;;  %v6160_v23 = vld [vmem:[%s8729_s4 + $0xf8] sm:$0xff]  }
  0x25   : > { %5883 = vmatmul.mubr.msk.bf16.gmra.mxu1 %vm370_vm5, %v352_v15  ;;  %5870 = vmatprep.mubr.msk.bf16.mxu0 %vm370_vm5, %v345_v0  ;;  %v765_v50 = vsel %vm666_vm10, 1, %v6337_v2  ;;  %v1049_v51 = vsel %vm952_vm11, 1, %v6337_v2  ;;  %vm951_vm12 = vcmp.lt.f32.partialorder %v6621_v26, 14.5  ;;  %vm954_vm13 = vcmp.lt.f32.partialorder %v6630_v27, 14.5  ;;  %v640_v0 = vld [vmem:[%s8726_s1 + $0xe0] sm:$0xff]  ;;  %v6172_v54 = vld [vmem:[%s8729_s4 + $0x118] sm:$0xff]  }
  0x26   : > { %815 = vperm.xlu1 %6152, %v756_v1   ;;  %812 = vperm.xlu0 %6151, %v755_v8   ;;  %v1048_v53 = vsel %vm951_vm12, 1, %v6337_v2  ;;  %v1051_v55 = vsel %vm954_vm13, 1, %v6337_v2  ;;  %vm953_vm14 = vcmp.lt.f32.partialorder %v6635_v28, 14.5  ;;  %vm669_vm15 = vcmp.gt.f32.partialorder %v637_v52, 0.5  ;;  %v641_v1 = vld [vmem:[%s8726_s1 + $0xe8] sm:$0xff] }
  0x27   : > { %5886 = vmatprep.mubr.msk.bf16.mxu1 %vm370_vm5, %v353_v4  ;;  %5893 = vmatpush3.bf16.msra.mxu0 %v6155_v56  ;;  %v1050_v58 = vsel %vm953_vm14, 1, %v6337_v2  ;;  %vm668_vm0 = vcmp.gt.f32.partialorder %v636_v57, 0.5  ;;  %v768_v59 = vsel %vm669_vm15, 1, %v6337_v2  ;;  %vm956_vm1 = vcmp.lt.f32.partialorder %v6647_v32, 14.5  ;;  %v6173_v56 = vld [vmem:[%s8729_s4 + $0xd8] sm:$0xff]  }
  0x28   : > { %v767_v60 = vsel %vm668_vm0, 1, %v6337_v2  ;;  %vm955_vm2 = vcmp.lt.f32.partialorder %v6652_v33, 14.5  ;;  %5894 = vmatprep.subr.bf16.mxu0 %v6156_v61  ;;  %vm958_vm3 = vcmp.lt.f32.partialorder %v6660_v34, 14.5  ;;  %vm957_vm4 = vcmp.lt.f32.partialorder %v6670_v39, 14.5  ;;  %v6166_v39 = vld [vmem:[%s8729_s4 + $0xe8] sm:$0xff]  }
  0x29   : > { %v1052_v63 = vsel %vm955_vm2, 1, %v6337_v2  ;;  %v1055_v6 = vsel %vm958_vm3, 1, %v6337_v2  ;;  %v1054_v10 = vsel %vm957_vm4, 1, %v6337_v2  ;;  %vm671_vm6 = vcmp.gt.f32.partialorder %v639_v3, 0.5 }
  0x2a   : > { %821 = vperm.xlu1 %6152, %v758_v21   ;;  %818 = vperm.xlu0 %6151, %v757_v22   ;;  %vm670_vm7 = vcmp.gt.f32.partialorder %v638_v5, 0.5  ;;  %v770_v11 = vsel %vm671_vm6, 1, %v6337_v2  ;;  %vm960_vm8 = vcmp.lt.f32.partialorder %v637_v52, 14.5  ;;  %vm959_vm9 = vcmp.lt.f32.partialorder %v636_v57, 14.5  ;;  %v6159_v22 = vld [vmem:[%s8729_s4 + $0x138] sm:$0xff]  }
  0x2b   : > { %5895 = vmatpush3.bf16.msra.mxu0 %v6156_v61  ;;  %v769_v14 = vsel %vm670_vm7, 1, %v6337_v2  ;;  %v1057_v15 = vsel %vm960_vm8, 1, %v6337_v2  ;;  %vm962_vm10 = vcmp.lt.f32.partialorder %v639_v3, 14.5  ;;  %vm961_vm11 = vcmp.lt.f32.partialorder %v638_v5, 14.5  ;;  %5438 = vmatprep.subr.bf16.mxu1 %v6159_v22  ;;  %v6180_v5 = vld [vmem:[%s8729_s4 + $0x100] sm:$0xff]  }
  0x2c   : > { %5871 = vmatmul.mubr.msk.bf16.gmra.mxu0 %vm370_vm5, %v346_v29  ;;  %v1059_v8 = vsel %vm962_vm10, 1, %v6337_v2  ;;  %v1058_v4 = vsel %vm961_vm11, 1, %v6337_v2  ;;  %vm673_vm12 = vcmp.gt.f32.partialorder %v641_v1, 0.5  ;;  %vm672_vm13 = vcmp.gt.f32.partialorder %v640_v0, 0.5  ;;  %5439 = vmatpush3.bf16.msra.mxu1 %v6160_v23  ;;  %v6922_v22 = vld [vmem:[%s8728_s3] ss:$0 sm:$0xff] }
  0x2d   : > { %5887 = vmatmul.mubr.msk.bf16.gmra.mxu1 %vm370_vm5, %v354_v35  ;;  %v771_v12 = vsel %vm672_vm13, 1, %v6337_v2  ;;  %vm964_vm14 = vcmp.lt.f32.partialorder %v641_v1, 14.5  ;;  %vm963_vm15 = vcmp.lt.f32.partialorder %v640_v0, 14.5  ;;  %vm966_vm0 = vcmp.lt.f32.partialorder %v643_v18, 14.5  ;;  %v6163_v35 = vld [vmem:[%s8729_s4 + $0xf0] sm:$0xff]   ;;  %v6197_v1 = vld [vmem:[%s8729_s4 + $0x78] sm:$0xff]  }
  0x2e   : > { %1068 = vperm.xlu1 %6152, %v6548_v62   ;;  %1065 = vperm.xlu0 %6151, %v6566_v7   ;;  %v1053_v62 = vsel %vm956_vm1, 1, %v6337_v2  ;;  %v6157_v7 = vld [vmem:[%s8729_s4 + $0x160] sm:$0xff]   ;;  %v1060_v21 = vsel %vm963_vm15, 1, %v6337_v2  ;;  %v1063_v25 = vsel %vm966_vm0, 1, %v6337_v2  ;;  %vm675_vm2 = vcmp.gt.f32.partialorder %v643_v18, 0.5 }
  0x2f   : > { %5896 = vmatprep.subr.bf16.mxu0 %v6157_v7  ;;  %v774_v27 = vsel %vm675_vm2, 1, %v6337_v2 }
  0x30   : > { %5897 = vmatpush3.bf16.msra.mxu0 %v6157_v7 }
  0x32   : > { %1074 = vperm.xlu1 %6152, %v6576_v16   ;;  %1071 = vperm.xlu0 %6151, %v6587_v17   ;;  %v1056_v16 = vsel %vm959_vm9, 1, %v6337_v2  ;;  %v6158_v17 = vld [vmem:[%s8729_s4 + $0x158] sm:$0xff]  }
  0x33   : > { %5898 = vmatprep.subr.bf16.mxu0 %v6158_v17 }
  0x34   : > { %5899 = vmatpush3.bf16.msra.mxu0 %v6158_v17 }
  0x35   : > { %5900 = vmatprep.subr.bf16.mxu0 %v6161_v24 }
  0x36   : > { %827 = vperm.xlu1 %6152, %v760_v37   ;;  %824 = vperm.xlu0 %6151, %v759_v40   ;;  %v6165_v37 = vld [vmem:[%s8729_s4 + $0x128] sm:$0xff]   ;;  %v6167_v40 = vld [vmem:[%s8729_s4 + $0x140] sm:$0xff]  }
  0x38   : > { %5901 = vmatpush3.bf16.msra.mxu0 %v6161_v24 }
  0x3a   : > { %1080 = vperm.xlu1 %6152, %v6590_v9   ;;  %1077 = vperm.xlu0 %6151, %v6600_v19   ;;  %v772_v9 = vsel %vm673_vm12, 1, %v6337_v2  ;;  %v642_v19 = vld [vmem:[%s8726_s1 + $0xf0] sm:$0xff] }
  0x3b   : > { %vm965_vm1 = vcmp.lt.f32.partialorder %v642_v19, 14.5  ;;  %vm674_vm3 = vcmp.gt.f32.partialorder %v642_v19, 0.5 }
  0x3c   : > { %v1062_v26 = vsel %vm965_vm1, 1, %v6337_v2  ;;  %v773_v28 = vsel %vm674_vm3, 1, %v6337_v2 }
  0x3e   : > { %1086 = vperm.xlu1 %6152, %v6603_v20   ;;  %1083 = vperm.xlu0 %6151, %v1038_v30   ;;  %v1061_v20 = vsel %vm964_vm14, 1, %v6337_v2  ;;  %v6164_v2 = vld [vmem:[%s8729_s4 + $0x148] sm:$0xff]  }
  0x3f   : > { %5902 = vmatprep.subr.bf16.mxu0 %v6164_v2 }
  0x40   : > { %5903 = vmatpush3.bf16.msra.mxu0 %v6164_v2 }
  0x41   : > { %5904 = vmatprep.subr.bf16.mxu0 %v6167_v40 }
  0x42   : > { %833 = vperm.xlu1 %6152, %v762_v41   ;;  %830 = vperm.xlu0 %6151, %v761_v42  }
  0x44   : > { %5905 = vmatpush3.bf16.msra.mxu0 %v6167_v40 }
  0x45   : > { %5574 = vmatprep.subr.bf16.mxu0 %v6197_v1 }
  0x46   : > { %1092 = vperm.xlu1 %6152, %v1041_v31   ;;  %1089 = vperm.xlu0 %6151, %v1040_v13   ;;  %v6162_v31 = vld [vmem:[%s8729_s4 + $0x130] sm:$0xff]  }
  0x47   : > { %5440 = vmatprep.subr.bf16.mxu1 %v6162_v31 }
  0x48   : > { %5441 = vmatpush3.bf16.msra.mxu1 %v6163_v35 }
  0x49   : > { %5442 = vmatprep.subr.bf16.mxu1 %v6165_v37 }
  0x4a   : > { %1098 = vperm.xlu1 %6152, %v1043_v36   ;;  %1095 = vperm.xlu0 %6151, %v1042_v38  }
  0x4c   : > { %5443 = vmatpush3.bf16.msra.mxu1 %v6166_v39 }
  0x4e   : > { %839 = vperm.xlu1 %6152, %v764_v43   ;;  %836 = vperm.xlu0 %6151, %v763_v44  }
  0x52   : > { %1104 = vperm.xlu1 %6152, %v1045_v45   ;;  %1101 = vperm.xlu0 %6151, %v1044_v46   ;;  %v6168_v45 = vld [vmem:[%s8729_s4 + $0x120] sm:$0xff]  }
  0x53   : > { %5444 = vmatprep.subr.bf16.mxu1 %v6168_v45 }
  0x56   : > { %1110 = vperm.xlu1 %6152, %v1047_v47   ;;  %1107 = vperm.xlu0 %6151, %v1046_v48  }
  0x5a   : > { %845 = vperm.xlu1 %6152, %v766_v49   ;;  %842 = vperm.xlu0 %6151, %v765_v50   ;;  %v6169_v50 = vld [vmem:[%s8729_s4 + $0xe0] sm:$0xff]  }
  0x5b   : > { %5445 = vmatpush3.bf16.msra.mxu1 %v6169_v50 }
  0x5c   : > { %5446 = vmatprep.subr.bf16.mxu1 %v6172_v54 }
  0x5e   : > { %1116 = vperm.xlu1 %6152, %v1049_v51   ;;  %1113 = vperm.xlu0 %6151, %v1048_v53  }
  0x5f   : > { %5447 = vmatpush3.bf16.msra.mxu1 %v6173_v56 }
  0x62   : > { %1122 = vperm.xlu1 %6152, %v1051_v55   ;;  %1119 = vperm.xlu0 %6151, %v1050_v58   ;;  %v6174_v58 = vld [vmem:[%s8729_s4 + $0x110] sm:$0xff]  }
  0x63   : > { %5448 = vmatprep.subr.bf16.mxu1 %v6174_v58 }
  0x66   : > { %851 = vperm.xlu1 %6152, %v768_v59   ;;  %848 = vperm.xlu0 %6151, %v767_v60   ;;  %v6175_v60 = vld [vmem:[%s8729_s4 + $0xd0] sm:$0xff]  }
  0x67   : > { %5449 = vmatpush3.bf16.msra.mxu1 %v6175_v60 }
  0x6a   : > { %1128 = vperm.xlu1 %6152, %v1053_v62   ;;  %1125 = vperm.xlu0 %6151, %v1052_v63   ;;  %v6178_v62 = vld [vmem:[%s8729_s4 + $0x108] sm:$0xff]  }
  0x6b   : > { %v6179_v63 = vld [vmem:[%s8729_s4 + $0xc8] sm:$0xff]   ;;  %5450 = vmatprep.subr.bf16.mxu1 %v6178_v62 }
  0x6c   : > { %5451 = vmatpush3.bf16.msra.mxu1 %v6179_v63 }
  0x6d   : > { %5452 = vmatprep.subr.bf16.mxu1 %v6180_v5 }
  0x6e   : > { %1134 = vperm.xlu1 %6152, %v1055_v6   ;;  %1131 = vperm.xlu0 %6151, %v1054_v10   ;;  %v6182_v6 = vld [vmem:[%s8729_s4 + $0xc0] sm:$0xff]  }
  0x70   : > { %5453 = vmatpush3.bf16.msra.mxu1 %v6182_v6 }
  0x72   : > { %857 = vperm.xlu1 %6152, %v770_v11   ;;  %854 = vperm.xlu0 %6151, %v769_v14   ;;  %v8734_v14 = vmov 0.0  }
  0x73   : > { %5938 = vmatprep.subr.bf16.mxu1 %v8734_v14 }
  0x76   : > { %1140 = vperm.xlu1 %6152, %v1057_v15   ;;  %1137 = vperm.xlu0 %6151, %v1056_v16  }
  0x7a   : > { %1146 = vperm.xlu1 %6152, %v1059_v8   ;;  %1143 = vperm.xlu0 %6151, %v1058_v4  }
  0x7e   : > { %863 = vperm.xlu1 %6152, %v772_v9   ;;  %860 = vperm.xlu0 %6151, %v771_v12  }
  0x82   : > { %1152 = vperm.xlu1 %6152, %v1061_v20   ;;  %1149 = vperm.xlu0 %6151, %v1060_v21   ;;  %v708_v20 = vlaneseq }
  0x86   : > { %1158 = vperm.xlu1 %6152, %v1063_v25   ;;  %1155 = vperm.xlu0 %6151, %v1062_v26  }
  0x89   : > { %v6791_v29 = vpop.permute.xlu1 %782  ;;  %v6793_v30 = vpop.permute.xlu0 %776 }
  0x8a   : > { %8747 = vst [vmem:[#allocation4_spill] sm:$0xff] %v6793_v30  ;;  %869 = vperm.xlu1 %6152, %v774_v27   ;;  %866 = vperm.xlu0 %6151, %v773_v28   ;;  %v6927_v27 = vshrl.u32 %v708_v20, 7  ;;  %vm873_vm9 = vcmp.eq.s32.totalorder %v6791_v29, 1 }
  0x8c   : > { %vm710_vm4 = vcmp.lt.s32.totalorder %v6927_v27, 1  ;;  %vm999_vm8 = vcmp.lt.s32.totalorder %v6927_v27, 7 }
  0x8d   : > { %v6798_v32 = vpop.permute.xlu1 %785  ;;  %v6800_v33 = vpop.permute.xlu0 %779 }
  0x8e   : > { %vm874_vm6 = vcmp.eq.s32.totalorder %v6798_v32, 1  ;;  %vm872_vm10 = vcmp.eq.s32.totalorder %v6800_v33, 1 }
  0x91   : > { %v6808_v13 = vpop.permute.xlu1 %791  ;;  %v6810_v36 = vpop.permute.xlu0 %788 }
  0x92   : > { %vm875_vm3 = vcmp.eq.s32.totalorder %v6810_v36, 1 }
  0x95   : > { %v6812_v34 = vpop.permute.xlu1 %797  ;;  %v6817_v38 = vpop.permute.xlu0 %794 }
  0x99   : > { %v6825_v41 = vpop.permute.xlu1 %803  ;;  %v6827_v42 = vpop.permute.xlu0 %800 }
  0x9d   : > { %v6829_v43 = vpop.permute.xlu1 %809  ;;  %v6831_v44 = vpop.permute.xlu0 %806 }
  0xa1   : > { %v6836_v46 = vpop.permute.xlu1 %815  ;;  %v6838_v47 = vpop.permute.xlu0 %812 }
  0xa2   : > { %8748 = vst [vmem:[#allocation5_spill] sm:$0xff] %v6836_v46 }
  0xa5   : > { %v6840_v48 = vpop.permute.xlu1 %821  ;;  %v6842_v49 = vpop.permute.xlu0 %818 }
  0xa6   : > { %8749 = vst [vmem:[#allocation6_spill] sm:$0xff] %v6840_v48  ;;  %8750 = vst [vmem:[#allocation7_spill] sm:$0xff] %v6842_v49 }
  0xa9   : > { %v6847_v51 = vpop.permute.xlu1 %1068  ;;  %v6849_v52 = vpop.permute.xlu0 %1065 }
  0xaa   : > { %vm1161_vm12 = vcmp.eq.s32.totalorder %v6847_v51, 1  ;;  %vm1160_vm13 = vcmp.eq.s32.totalorder %v6849_v52, 1 }
  0xad   : > { %v6851_v53 = vpop.permute.xlu1 %1074  ;;  %v6856_v55 = vpop.permute.xlu0 %1071 }
  0xae   : > { %vm1162_vm7 = vcmp.eq.s32.totalorder %v6856_v55, 1 }
  0xb1   : > { %v6861_v57 = vpop.permute.xlu1 %827  ;;  %v6866_v59 = vpop.permute.xlu0 %824 }
  0xb2   : > { %8751 = vst [vmem:[#allocation8_spill] sm:$0xff] %v6866_v59  ;;  %vm888_vm14 = vcmp.eq.s32.totalorder %v6861_v57, 1 }
  0xb5   : > { %v6871_v61 = vpop.permute.xlu1 %1080  ;;  %v6879_v3 = vpop.permute.xlu0 %1077 }
  0xb9   : > { %v6887_v7 = vpop.permute.xlu1 %1086  ;;  %v6889_v10 = vpop.permute.xlu0 %1083 }
  0xbd   : > { %v6891_v11 = vpop.permute.xlu1 %833  ;;  %v6894_v15 = vpop.permute.xlu0 %830 }
  0xbe   : > { %vm890_vm11 = vcmp.eq.s32.totalorder %v6891_v11, 1  ;;  %vm889_vm15 = vcmp.eq.s32.totalorder %v6894_v15, 1 }
  0xc1   : > { %v6896_v16 = vpop.permute.xlu1 %1092  ;;  %v6901_v0 = vpop.permute.xlu0 %1089 }
  0xc5   : > { %v6903_v8 = vpop.permute.xlu1 %1098  ;;  %v6905_v4 = vpop.permute.xlu0 %1095 }
  0xc9   : > { %v6907_v17 = vpop.permute.xlu1 %839  ;;  %v6909_v9 = vpop.permute.xlu0 %836 }
  0xcd   : > { %v6911_v12 = vpop.permute.xlu1 %1104  ;;  %v6913_v18 = vpop.permute.xlu0 %1101 }
  0xce   : > { %8752 = vst [vmem:[#allocation9_spill] sm:$0xff] %v6911_v12  ;;  %8753 = vst [vmem:[#allocation10_spill] sm:$0xff] %v6913_v18 }
  0xd1   : > { %v6915_v19 = vpop.permute.xlu0 %1107  ;;  %v6917_v21 = vpop.permute.xlu1 %1110 }
  0xd2   : > { %8754 = vst [vmem:[#allocation11_spill] sm:$0xff] %v6915_v19  ;;  %8755 = vst [vmem:[#allocation12_spill] sm:$0xff] %v6917_v21 }
  0xd4   : > { %v5860_v23 = vpop.f32.mrf.mxu0 }
  0xd5   : > { %v6924_v24 = vpop.permute.xlu0 %842  ;;  %v462_v25 = vadd.f32 %v5860_v23, %v6922_v22  ;;  %v5876_v26 = vpop.f32.mrf.mxu1 }
  0xd6   : > { %v526_v28 = vadd.f32 %v5876_v26, %v6922_v22  ;;  %v453_v31 = vpop.f32.mrf.mxu0  ;;  %v6936_v50 = vpop.permute.xlu1 %845 }
  0xd7   : > { %v6930_v35 = vmax.f32 %v462_v25, 0.0  ;;  %v454_v2 = vadd.f32 %v6922_v22, %v453_v31  ;;  %v517_v37 = vpop.f32.mrf.mxu1 }
  0xd8   : > { %v6933_v39 = vmax.f32 %v526_v28, 0.0  ;;  %v518_v40 = vadd.f32 %v6922_v22, %v517_v37  ;;  %v5861_v45 = vpop.f32.mrf.mxu0 }
  0xd9   : > { %v5359_v54 = vpack.c.bf16 %v6930_v35, %v6930_v35  ;;  %v6940_v56 = vmax.f32 %v454_v2, 0.0  ;;  %v5877_v58 = vpop.f32.mrf.mxu1  ;;  %v678_v5 = vrot.slane %v6930_v35, 7  ;;  %v6957_v20 = vpop.permute.xlu0 %1113  ;;  %v465_v2 = vadd.f32 %v5861_v45, %v6922_v22 }
  0xda   : > { %v5375_v60 = vpack.c.bf16 %v6933_v39, %v6933_v39  ;;  %v6947_v62 = vmax.f32 %v518_v40, 0.0  ;;  %v456_v63 = vpop.f32.mrf.mxu0  ;;  %v529_v37 = vadd.f32 %v5877_v58, %v6922_v22  ;;  %v6975_v45 = vpop.permute.xlu1 %1116  ;;  %vm1176_vm1 = vcmp.eq.s32.totalorder %v6957_v20, 1 }
  0xdb   : > { %1514 = vst [vmem:[#allocation2 + $0x1c] sm:$0xf] %v5359_v54  ;;  %v5357_v1 = vpack.c.bf16 %v6940_v56, %v6940_v56  ;;  %v520_v23 = vpop.f32.mrf.mxu1  ;;  %v457_v40 = vadd.f32 %v6922_v22, %v456_v63  ;;  %v6977_v58 = vmax.f32 %v465_v2, 0.0  ;;  %vm1177_vm0 = vcmp.eq.s32.totalorder %v6975_v45, 1 }
  0xdc   : > { %1530 = vst [vmem:[#allocation2 + $0xdc] sm:$0xf] %v5375_v60  ;;  %v5373_v31 = vpack.c.bf16 %v6947_v62, %v6947_v62  ;;  %v521_v54 = vadd.f32 %v6922_v22, %v520_v23  ;;  %v5864_v14 = vpop.f32.mrf.mxu0  ;;  %v6979_v63 = vmax.f32 %v529_v37, 0.0  ;;  %v8758_v49 = vrot.slane %v6933_v39, 7 }
  0xdd   : > { %1512 = vst [vmem:[#allocation2 + $0x4] sm:$0xf] %v5357_v1  ;;  %v5880_v6 = vpop.f32.mrf.mxu1  ;;  %v478_v26 = vadd.f32 %v5864_v14, %v6922_v22  ;;  %v581_v23 = vmax.f32 %v457_v40, 0.0  ;;  %v8742_v2 = vrot.slane %v6977_v58, 7  ;;  %v8744_v37 = vrot.slane %v6977_v58, 1  ;;  %v6996_v60 = vpop.permute.xlu0 %1119 }
  0xde   : > { %1528 = vst [vmem:[#allocation2 + $0xc4] sm:$0xf] %v5373_v31  ;;  %v542_v28 = vadd.f32 %v5880_v6, %v6922_v22  ;;  %v6985_v14 = vmax.f32 %v521_v54, 0.0  ;;  %v5360_v40 = vpack.c.bf16 %v6977_v58, %v6977_v58  ;;  %v5376_v54 = vpack.c.bf16 %v6979_v63, %v6979_v63 }
  0xdf   : > { %v6987_v6 = vmax.f32 %v478_v26, 0.0  ;;  %v677_v26 = vrot.slane %v581_v23, 7  ;;  %v968_v18 = vrot.slane %v581_v23, 1  ;;  %vm1178_vm2 = vcmp.eq.s32.totalorder %v6996_v60, 1 }
  0xe0   : > { %v6989_v31 = vmax.f32 %v542_v28, 0.0  ;;  %v739_v28 = vsel %vm710_vm4, %v678_v5, %v8742_v2  ;;  %v8756_v1 = vrot.slane %v6930_v35, 1  ;;  %1515 = vst [vmem:[#allocation2 + $0x28] sm:$0xf] %v5360_v40  ;;  %v8757_v25 = vrot.slane %v6979_v63, 7 }
  0xe1   : > { %v5358_v30 = vpack.c.bf16 %v581_v23, %v581_v23  ;;  %v906_v19 = vsel %vm874_vm6, %v739_v28, 0.0  ;;  %1531 = vst [vmem:[#allocation2 + $0xe8] sm:$0xf] %v5376_v54  ;;  %v8759_v48 = vrot.slane %v6940_v56, 7  ;;  %vm1163_vm6 = vcmp.eq.s32.totalorder %v6851_v53, 1  ;;  %v7051_v23 = vpop.permute.xlu1 %1122 }
  0xe2   : > { %v1028_v12 = vsel %vm999_vm8, %v8756_v1, %v8744_v37  ;;  %v723_v46 = vsel %vm710_vm4, %v8758_v49, %v8757_v25  ;;  %v740_v1 = vsel %vm710_vm4, %v677_v26, %v678_v5  ;;  %v5328_v40 = vpack.c.bf16 %v906_v19, %v906_v19  ;;  %v533_v5 = vpop.f32.mrf.mxu1 }
  0xe3   : > { %v1194_v2 = vsel %vm1162_vm7, %v1028_v12, 0.0  ;;  %v922_v21 = vsel %vm890_vm11, %v723_v46, 0.0  ;;  %v741_v49 = vsel %vm710_vm4, %v8759_v48, %v677_v26  ;;  %1513 = vst [vmem:[#allocation2 + $0x10] sm:$0xf] %v5358_v30  ;;  %v905_v55 = vsel %vm873_vm9, %v740_v1, 0.0 }
  0xe4   : > { %v5391_v37 = vpack.c.bf16 %v1194_v2, %v1194_v2  ;;  %v5344_v59 = vpack.c.bf16 %v922_v21, %v922_v21  ;;  %v904_v32 = vsel %vm872_vm10, %v741_v49, 0.0  ;;  %v8760_v46 = vrot.slane %v6930_v35, 1  ;;  %v469_v21 = vpop.f32.mrf.mxu0  ;;  %1355 = vst [vmem:[#allocation2 + $0x24] sm:$0xf] %v5328_v40 }
  0xe5   : > { %v8761_v12 = vrot.slane %v6940_v56, 1  ;;  %v5326_v33 = vpack.c.bf16 %v904_v32, %v904_v32  ;;  %v5327_v48 = vpack.c.bf16 %v905_v55, %v905_v55  ;;  %vm891_vm7 = vcmp.eq.s32.totalorder %v6909_v9, 1 }
  0xe6   : > { %v1029_v11 = vsel %vm999_vm8, %v968_v18, %v8760_v46  ;;  %1674 = vst [vmem:[#allocation2 + $0x20] sm:$0xf] %v5391_v37  ;;  %1371 = vst [vmem:[#allocation2 + $0xe4] sm:$0xf] %v5344_v59  ;;  %v693_v25 = vrot.slane %v6985_v14, 7  ;;  %v984_v59 = vrot.slane %v6985_v14, 1  ;;  %v5374_v51 = vpack.c.bf16 %v6985_v14, %v6985_v14 }
  0xe7   : > { %v1030_v19 = vsel %vm999_vm8, %v8761_v12, %v968_v18  ;;  %v1193_v29 = vsel %vm1161_vm12, %v1029_v11, 0.0  ;;  %1353 = vst [vmem:[#allocation2 + $0xc] sm:$0xf] %v5326_v33  ;;  %1354 = vst [vmem:[#allocation2 + $0x18] sm:$0xf] %v5327_v48  ;;  %vm1179_vm9 = vcmp.eq.s32.totalorder %v7051_v23, 1  ;;  %v470_v54 = vadd.f32 %v6922_v22, %v469_v21  ;;  %v5881_v33 = vpop.f32.mrf.mxu1  ;;  %v5865_v48 = vpop.f32.mrf.mxu0 }
  0xe8   : > { %v1192_v30 = vsel %vm1160_vm13, %v1030_v19, 0.0  ;;  %v5390_v35 = vpack.c.bf16 %v1193_v29, %v1193_v29  ;;  %v8762_v52 = vrot.slane %v6979_v63, 1  ;;  %v8763_v2 = vrot.slane %v6933_v39, 1  ;;  %1529 = vst [vmem:[#allocation2 + $0xd0] sm:$0xf] %v5374_v51 }
  0xe9   : > { %v5389_v18 = vpack.c.bf16 %v1192_v30, %v1192_v30  ;;  %v534_v26 = vadd.f32 %v6922_v22, %v533_v5  ;;  %v8764_v28 = vrot.slane %v6933_v39, 7  ;;  %v8765_v1 = vrot.slane %v6947_v62, 7 }
  0xea   : > { %v1012_v37 = vsel %vm999_vm8, %v8763_v2, %v8762_v52  ;;  %1673 = vst [vmem:[#allocation2 + $0x14] sm:$0xf] %v5390_v35  ;;  %v8766_v49 = vmov %v8763_v2  ;;  %v8767_v55 = vrot.slane %v6947_v62, 1  ;;  %vm878_vm10 = vcmp.eq.s32.totalorder %v6812_v34, 1 }
  0xeb   : > { %1672 = vst [vmem:[#allocation2 + $0x8] sm:$0xf] %v5389_v18  ;;  %v724_v14 = vsel %vm710_vm4, %v693_v25, %v8764_v28  ;;  %v725_v40 = vsel %vm710_vm4, %v8765_v1, %v693_v25  ;;  %v1013_v32 = vsel %vm999_vm8, %v984_v59, %v8766_v49  ;;  %vm1166_vm11 = vcmp.eq.s32.totalorder %v6889_v10, 1 }
  0xec   : > { %v1014_v46 = vsel %vm999_vm8, %v8767_v55, %v984_v59  ;;  %v920_v11 = vsel %vm888_vm14, %v725_v40, 0.0  ;;  %v921_v12 = vsel %vm889_vm15, %v724_v14, 0.0  ;;  %v1209_v39 = vsel %vm1177_vm0, %v1013_v32, 0.0  ;;  %v7114_v14 = vpop.permute.xlu1 %851  ;;  %v472_v55 = vpop.f32.mrf.mxu0 }
  0xed   : > { %v1208_v19 = vsel %vm1176_vm1, %v1014_v46, 0.0  ;;  %v5342_v21 = vpack.c.bf16 %v920_v11, %v920_v11  ;;  %v5343_v5 = vpack.c.bf16 %v921_v12, %v921_v12  ;;  %v5406_v29 = vpack.c.bf16 %v1209_v39, %v1209_v39 }
  0xee   : > { %v5405_v30 = vpack.c.bf16 %v1208_v19, %v1208_v19  ;;  %v1210_v57 = vsel %vm1178_vm2, %v1012_v37, 0.0  ;;  %v682_v15 = vrot.slane %v6987_v6, 7  ;;  %v973_v20 = vrot.slane %v6987_v6, 1  ;;  %v7694_v27 = vld [vmem:[#allocation2 + $0x18] ss:$12 sps:$4 sm:$0xff]  }
  0xef   : > { %v5363_v45 = vpack.c.bf16 %v6987_v6, %v6987_v6  ;;  %vm894_vm12 = vcmp.eq.s32.totalorder %v6936_v50, 1  ;;  %1369 = vst [vmem:[#allocation2 + $0xcc] sm:$0xf] %v5342_v21  ;;  %1370 = vst [vmem:[#allocation2 + $0xd8] sm:$0xf] %v5343_v5  ;;  %v5407_v18 = vpack.c.bf16 %v1210_v57, %v1210_v57  ;;  %v5379_v35 = vpack.c.bf16 %v6989_v31, %v6989_v31 }
  0xf0   : > { %1688 = vst [vmem:[#allocation2 + $0xc8] sm:$0xf] %v5405_v30  ;;  %1689 = vst [vmem:[#allocation2 + $0xd4] sm:$0xf] %v5406_v29  ;;  %v7099_v60 = vmax.f32 %v470_v54, 0.0  ;;  %v7101_v25 = vmax.f32 %v534_v26, 0.0  ;;  %v481_v52 = vadd.f32 %v5865_v48, %v6922_v22  ;;  %v545_v2 = vadd.f32 %v5881_v33, %v6922_v22  ;;  %v536_v48 = vpop.f32.mrf.mxu1 }
  0xf1   : > { %1518 = vst [vmem:[#allocation2 + $0x4c] sm:$0xf] %v5363_v45  ;;  %v698_v59 = vrot.slane %v6989_v31, 7  ;;  %v989_v51 = vrot.slane %v6989_v31, 1  ;;  %vm876_vm13 = vcmp.eq.s32.totalorder %v6808_v13, 1  ;;  %vm877_vm14 = vcmp.eq.s32.totalorder %v6817_v38, 1 }
  0xf2   : > { %1690 = vst [vmem:[#allocation2 + $0xe0] sm:$0xf] %v5407_v18  ;;  %1534 = vst [vmem:[#allocation2 + $0x10c] sm:$0xf] %v5379_v35  ;;  %v680_v37 = vrot.slane %v7099_v60, 7  ;;  %v971_v54 = vrot.slane %v7099_v60, 1  ;;  %v5361_v26 = vpack.c.bf16 %v7099_v60, %v7099_v60  ;;  %v5377_v40 = vpack.c.bf16 %v7101_v25, %v7101_v25 }
  0xf3   : > { %v696_v28 = vrot.slane %v7101_v25, 7  ;;  %vm1165_vm15 = vcmp.eq.s32.totalorder %v6871_v61, 1  ;;  %vm1164_vm0 = vcmp.eq.s32.totalorder %v6879_v3, 1  ;;  %v987_v1 = vrot.slane %v7101_v25, 1  ;;  %v6170_v30 = vld [vmem:[#allocation2 + $0x8] ss:$12 sps:$4 sm:$0xff]  }
  0xf4   : > { %v7121_v49 = vmax.f32 %v481_v52, 0.0  ;;  %v7123_v32 = vmax.f32 %v545_v2, 0.0  ;;  %v8768_v46 = vrot.slane %v6977_v58, 7  ;;  %v8769_v12 = vrot.slane %v6977_v58, 1  ;;  %1516 = vst [vmem:[#allocation2 + $0x34] sm:$0xf] %v5361_v26  ;;  %5906 = vmatprep.mubr.bf16.mxu0 %v6170_v30  ;;  %v7162_v26 = vpop.permute.xlu0 %848 }
  0xf5   : > { %v8770_v39 = vrot.slane %v6979_v63, 7  ;;  %v473_v5 = vadd.f32 %v6922_v22, %v472_v55  ;;  %v8771_v57 = vrot.slane %v6979_v63, 1  ;;  %1532 = vst [vmem:[#allocation2 + $0xf4] sm:$0xf] %v5377_v40  ;;  %vm892_vm1 = vcmp.eq.s32.totalorder %v6907_v17, 1  ;;  %v6204_v60 = vld [vmem:[%s8729_s4 + $0x70] sm:$0xff]  }
  0xf6   : > { %v738_v11 = vsel %vm710_vm4, %v8768_v46, %v680_v37  ;;  %v1027_v19 = vsel %vm999_vm8, %v8769_v12, %v971_v54  ;;  %v683_v9 = vrot.slane %v7121_v49, 7  ;;  %v974_v2 = vrot.slane %v7121_v49, 1 }
  0xf7   : > { %v722_v21 = vsel %vm710_vm4, %v8770_v39, %v696_v28  ;;  %v907_v29 = vsel %vm875_vm3, %v738_v11, 0.0  ;;  %v1195_v58 = vsel %vm1163_vm6, %v1027_v19, 0.0  ;;  %v1011_v45 = vsel %vm999_vm8, %v8771_v57, %v987_v1  ;;  %v7168_v11 = vpop.permute.xlu1 %1128 }
  0xf8   : > { %v923_v33 = vsel %vm891_vm7, %v722_v21, 0.0  ;;  %v5329_v18 = vpack.c.bf16 %v907_v29, %v907_v29  ;;  %v5392_v35 = vpack.c.bf16 %v1195_v58, %v1195_v58  ;;  %v1211_v36 = vsel %vm1179_vm9, %v1011_v45, 0.0  ;;  %v5868_v21 = vpop.f32.mrf.mxu0  ;;  %v1126_v6 = vpop.permute.xlu0 %1125 }
  0xf9   : > { %v5345_v52 = vpack.c.bf16 %v923_v33, %v923_v33  ;;  %v5408_v53 = vpack.c.bf16 %v1211_v36, %v1211_v36  ;;  %v5364_v63 = vpack.c.bf16 %v7121_v49, %v7121_v49  ;;  %v699_v40 = vrot.slane %v7123_v32, 7 }
  0xfa   : > { %1356 = vst [vmem:[#allocation2 + $0x30] sm:$0xf] %v5329_v18  ;;  %1675 = vst [vmem:[#allocation2 + $0x2c] sm:$0xf] %v5392_v35  ;;  %v990_v23 = vrot.slane %v7123_v32, 1  ;;  %v5380_v55 = vpack.c.bf16 %v7123_v32, %v7123_v32  ;;  %v585_v46 = vmax.f32 %v473_v5, 0.0  ;;  %v735_v12 = vsel %vm710_vm4, %v682_v15, %v683_v9  ;;  %v5884_v5 = vpop.f32.mrf.mxu1 }
  0xfb   : > { %1372 = vst [vmem:[#allocation2 + $0xf0] sm:$0xf] %v5345_v52  ;;  %vm893_vm2 = vcmp.eq.s32.totalorder %v6924_v24, 1  ;;  %1691 = vst [vmem:[#allocation2 + $0xec] sm:$0xf] %v5408_v53  ;;  %v1024_v19 = vsel %vm999_vm8, %v973_v20, %v974_v2  ;;  %v537_v39 = vadd.f32 %v6922_v22, %v536_v48  ;;  %vm1181_vm3 = vcmp.eq.s32.totalorder %v7168_v11, 1 }
  0xfc   : > { %1519 = vst [vmem:[#allocation2 + $0x58] sm:$0xf] %v5364_v63  ;;  %v910_v30 = vsel %vm878_vm10, %v735_v12, 0.0  ;;  %v1198_v29 = vsel %vm1166_vm11, %v1024_v19, 0.0  ;;  %v719_v58 = vsel %vm710_vm4, %v698_v59, %v699_v40  ;;  %1535 = vst [vmem:[#allocation2 + $0x118] sm:$0xf] %v5380_v55  ;;  %v5362_v36 = vpack.c.bf16 %v585_v46, %v585_v46  ;;  %v549_v63 = vpop.f32.mrf.mxu1 }
  0xfd   : > { %v681_v33 = vrot.slane %v585_v46, 7  ;;  %v5332_v57 = vpack.c.bf16 %v910_v30, %v910_v30  ;;  %v5395_v45 = vpack.c.bf16 %v1198_v29, %v1198_v29  ;;  %v926_v48 = vsel %vm894_vm12, %v719_v58, 0.0  ;;  %v6209_v11 = vld [vmem:[%s8729_s4 + $0x28] sm:$0xff]  }
  0xfe   : > { %v972_v18 = vrot.slane %v585_v46, 1  ;;  %v5348_v34 = vpack.c.bf16 %v926_v48, %v926_v48  ;;  %1517 = vst [vmem:[#allocation2 + $0x40] sm:$0xf] %v5362_v36  ;;  %vm879_vm6 = vcmp.eq.s32.totalorder %v6827_v42, 1  ;;  %vm1167_vm7 = vcmp.eq.s32.totalorder %v6887_v7, 1  ;;  %v6214_v7 = vld [vmem:[%s8729_s4 + $0x20] sm:$0xff]  }
  0xff   : > { %v736_v10 = vsel %vm710_vm4, %v681_v33, %v682_v15  ;;  %v737_v35 = vsel %vm710_vm4, %v680_v37, %v681_v33  ;;  %1359 = vst [vmem:[#allocation2 + $0x54] sm:$0xf] %v5332_v57  ;;  %1678 = vst [vmem:[#allocation2 + $0x50] sm:$0xf] %v5395_v45  ;;  %v485_v37 = vpop.f32.mrf.mxu0  ;;  %v601_v61 = vmax.f32 %v537_v39, 0.0  ;;  %vm1180_vm9 = vcmp.eq.s32.totalorder %v1126_v6, 1  ;;  %v7235_v33 = vpop.permute.xlu1 %1134 }
 0x100   : > { %v908_v52 = vsel %vm876_vm13, %v737_v35, 0.0  ;;  %v909_v50 = vsel %vm877_vm14, %v736_v10, 0.0  ;;  %v1025_v53 = vsel %vm999_vm8, %v972_v18, %v973_v20  ;;  %v1026_v15 = vsel %vm999_vm8, %v971_v54, %v972_v18  ;;  %1375 = vst [vmem:[#allocation2 + $0x114] sm:$0xf] %v5348_v34  ;;  %v6199_v20 = vld [vmem:[%s8729_s4 + $0x38] sm:$0xff]   ;;  %v6205_v34 = vld [vmem:[%s8729_s4 + $0x30] sm:$0xff]  }
 0x101   : > { %v1196_v13 = vsel %vm1164_vm0, %v1026_v15, 0.0  ;;  %v1197_v38 = vsel %vm1165_vm15, %v1025_v53, 0.0  ;;  %v5330_v55 = vpack.c.bf16 %v908_v52, %v908_v52  ;;  %v5331_v46 = vpack.c.bf16 %v909_v50, %v909_v50  ;;  %v6171_v12 = vld [vmem:[#allocation2 + $0x20] ss:$12 sps:$4 sm:$0xff]   ;;  %v5869_v25 = vpop.f32.mrf.mxu0 }
 0x102   : > { %v5393_v3 = vpack.c.bf16 %v1196_v13, %v1196_v13  ;;  %v5394_v54 = vpack.c.bf16 %v1197_v38, %v1197_v38  ;;  %vm895_vm10 = vcmp.eq.s32.totalorder %v7162_v26, 1  ;;  %v494_v19 = vadd.f32 %v5868_v21, %v6922_v22  ;;  %5907 = vmatmul.mubr.bf16.vlgmr.msra.gmra.mxu0 %v6171_v12  ;;  %v5885_v38 = vpop.f32.mrf.mxu1 }
 0x103   : > { %1357 = vst [vmem:[#allocation2 + $0x3c] sm:$0xf] %v5330_v55  ;;  %1358 = vst [vmem:[#allocation2 + $0x48] sm:$0xf] %v5331_v46  ;;  %v558_v30 = vadd.f32 %v5884_v5, %v6922_v22  ;;  %v486_v29 = vadd.f32 %v6922_v22, %v485_v37  ;;  %v550_v58 = vadd.f32 %v6922_v22, %v549_v63  ;;  %v697_v57 = vrot.slane %v601_v61, 7 }
 0x104   : > { %1676 = vst [vmem:[#allocation2 + $0x38] sm:$0xf] %v5393_v3  ;;  %1677 = vst [vmem:[#allocation2 + $0x44] sm:$0xf] %v5394_v54  ;;  %v988_v39 = vrot.slane %v601_v61, 1  ;;  %v5378_v45 = vpack.c.bf16 %v601_v61, %v601_v61  ;;  %vm1183_vm11 = vcmp.eq.s32.totalorder %v7235_v33, 1  ;;  %5575 = vmatpush3.bf16.msra.mxu0 %v6199_v20  ;;  %v1132_v20 = vpop.permute.xlu0 %1131  ;;  %v561_v33 = vadd.f32 %v5885_v38, %v6922_v22 }
 0x105   : > { %v7238_v48 = vmax.f32 %v494_v19, 0.0  ;;  %v7240_v18 = vmax.f32 %v558_v30, 0.0  ;;  %v7242_v21 = vmax.f32 %v486_v29, 0.0  ;;  %v7244_v5 = vmax.f32 %v550_v58, 0.0  ;;  %5576 = vmatprep.subr.bf16.mxu0 %v6204_v60  ;;  %v6213_v61 = vld [vmem:[%s8729_s4 + $0x60] sm:$0xff]   ;;  %v488_v58 = vpop.f32.mrf.mxu0 }
 0x106   : > { %v720_v10 = vsel %vm710_vm4, %v697_v57, %v698_v59  ;;  %v721_v35 = vsel %vm710_vm4, %v696_v28, %v697_v57  ;;  %1533 = vst [vmem:[#allocation2 + $0x100] sm:$0xf] %v5378_v45  ;;  %v1009_v36 = vsel %vm999_vm8, %v988_v39, %v989_v51  ;;  %v1010_v52 = vsel %vm999_vm8, %v987_v1, %v988_v39  ;;  %v6207_v59 = vld [vmem:[%s8729_s4 + $0x68] sm:$0xff]  }
 0x107   : > { %v924_v50 = vsel %vm892_vm1, %v721_v35, 0.0  ;;  %v925_v28 = vsel %vm893_vm2, %v720_v10, 0.0  ;;  %v1213_v53 = vsel %vm1181_vm3, %v1009_v36, 0.0  ;;  %v1212_v15 = vsel %vm1180_vm9, %v1010_v52, 0.0 }
 0x108   : > { %v5346_v37 = vpack.c.bf16 %v924_v50, %v924_v50  ;;  %v5347_v63 = vpack.c.bf16 %v925_v28, %v925_v28  ;;  %v5410_v1 = vpack.c.bf16 %v1213_v53, %v1213_v53  ;;  %v5409_v13 = vpack.c.bf16 %v1212_v15, %v1212_v15  ;;  %5577 = vmatpush3.bf16.msra.mxu0 %v6205_v34  ;;  %v552_v34 = vpop.f32.mrf.mxu1  ;;  %v7349_v50 = vpop.permute.xlu1 %857  ;;  %v6218_v53 = vld [vmem:[%s8729_s4 + $0x18] sm:$0xff]  }
 0x109   : > { %v686_v55 = vrot.slane %v7238_v48, 7  ;;  %v977_v46 = vrot.slane %v7238_v48, 1  ;;  %v5367_v17 = vpack.c.bf16 %v7238_v48, %v7238_v48  ;;  %v702_v24 = vrot.slane %v7240_v18, 7  ;;  %5578 = vmatprep.subr.bf16.mxu0 %v6207_v59  ;;  %v5872_v28 = vpop.f32.mrf.mxu0 }
 0x10a   : > { %1373 = vst [vmem:[#allocation2 + $0xfc] sm:$0xf] %v5346_v37  ;;  %1374 = vst [vmem:[#allocation2 + $0x108] sm:$0xf] %v5347_v63  ;;  %v993_v6 = vrot.slane %v7240_v18, 1  ;;  %v5383_v60 = vpack.c.bf16 %v7240_v18, %v7240_v18  ;;  %v684_v3 = vrot.slane %v7242_v21, 7  ;;  %v5365_v12 = vpack.c.bf16 %v7242_v21, %v7242_v21  ;;  %v7357_v63 = vpop.permute.xlu0 %854 }
 0x10b   : > { %1693 = vst [vmem:[#allocation2 + $0x104] sm:$0xf] %v5410_v1  ;;  %1692 = vst [vmem:[#allocation2 + $0xf8] sm:$0xf] %v5409_v13  ;;  %v975_v54 = vrot.slane %v7242_v21, 1  ;;  %vm882_vm12 = vcmp.eq.s32.totalorder %v6829_v43, 1  ;;  %v5381_v29 = vpack.c.bf16 %v7244_v5, %v7244_v5  ;;  %v1008_v45 = vsel %vm999_vm8, %v989_v51, %v990_v23  ;;  %v5888_v1 = vpop.f32.mrf.mxu1 }
 0x10c   : > { %vm1170_vm13 = vcmp.eq.s32.totalorder %v6905_v4, 1  ;;  %1522 = vst [vmem:[#allocation2 + $0x7c] sm:$0xf] %v5367_v17  ;;  %v700_v19 = vrot.slane %v7244_v5, 7  ;;  %v991_v30 = vrot.slane %v7244_v5, 1  ;;  %vm880_vm14 = vcmp.eq.s32.totalorder %v6825_v41, 1  ;;  %5579 = vmatpush3.bf16.msra.mxu0 %v6209_v11 }
 0x10d   : > { %vm881_vm15 = vcmp.eq.s32.totalorder %v6831_v44, 1  ;;  %1538 = vst [vmem:[#allocation2 + $0x13c] sm:$0xf] %v5383_v60  ;;  %v734_v57 = vsel %vm710_vm4, %v683_v9, %v684_v3  ;;  %v1023_v39 = vsel %vm999_vm8, %v974_v2, %v975_v54  ;;  %vm1182_vm0 = vcmp.eq.s32.totalorder %v1132_v20, 1  ;;  %v6176_v10 = vld [vmem:[#allocation2 + $0x38] ss:$12 sps:$4 sm:$0xff]   ;;  %5580 = vmatprep.subr.bf16.mxu0 %v6213_v61  ;;  %v565_v21 = vpop.f32.mrf.mxu1 }
 0x10e   : > { %v911_v9 = vsel %vm879_vm6, %v734_v57, 0.0  ;;  %v1199_v35 = vsel %vm1167_vm7, %v1023_v39, 0.0  ;;  %1520 = vst [vmem:[#allocation2 + $0x64] sm:$0xf] %v5365_v12  ;;  %v718_v31 = vsel %vm710_vm4, %v699_v40, %v700_v19  ;;  %1536 = vst [vmem:[#allocation2 + $0x124] sm:$0xf] %v5381_v29  ;;  %v1007_v42 = vsel %vm999_vm8, %v990_v23, %v991_v30  ;;  %5910 = vmatprep.mubr.bf16.mxu0 %v6176_v10 }
 0x10f   : > { %v6216_v51 = vld [vmem:[%s8729_s4 + $0x58] sm:$0xff]   ;;  %vm1169_vm1 = vcmp.eq.s32.totalorder %v6896_v16, 1  ;;  %vm1168_vm2 = vcmp.eq.s32.totalorder %v6901_v0, 1  ;;  %v5333_v49 = vpack.c.bf16 %v911_v9, %v911_v9  ;;  %v5396_v2 = vpack.c.bf16 %v1199_v35, %v1199_v35  ;;  %v6224_v43 = vld [vmem:[%s8729_s4 + $0x10] sm:$0xff]   ;;  %v6226_v4 = vld [vmem:[%s8729_s4 + $0x48] sm:$0xff]  }
 0x110   : > { %v927_v32 = vsel %vm895_vm10, %v718_v31, 0.0  ;;  %v1215_v40 = vsel %vm1183_vm11, %v1007_v42, 0.0  ;;  %v1214_v52 = vsel %vm1182_vm0, %v1008_v45, 0.0  ;;  %v497_v59 = vadd.f32 %v5869_v25, %v6922_v22  ;;  %v6223_v25 = vld [vmem:[%s8729_s4 + $0x50] sm:$0xff]   ;;  %5581 = vmatpush3.bf16.msra.mxu0 %v6214_v7 }
 0x111   : > { %v5349_v23 = vpack.c.bf16 %v927_v32, %v927_v32  ;;  %v5412_v36 = vpack.c.bf16 %v1215_v40, %v1215_v40  ;;  %1360 = vst [vmem:[#allocation2 + $0x60] sm:$0xf] %v5333_v49  ;;  %1679 = vst [vmem:[#allocation2 + $0x5c] sm:$0xf] %v5396_v2  ;;  %v5411_v26 = vpack.c.bf16 %v1214_v52, %v1214_v52  ;;  %vm896_vm3 = vcmp.eq.s32.totalorder %v7114_v14, 1  ;;  %v501_v49 = vpop.f32.mrf.mxu0 }
 0x112   : > { %v489_v15 = vadd.f32 %v6922_v22, %v488_v58  ;;  %v553_v37 = vadd.f32 %v6922_v22, %v552_v34  ;;  %v7363_v13 = vmax.f32 %v497_v59, 0.0  ;;  %vm898_vm6 = vcmp.eq.s32.totalorder %v7349_v50, 1  ;;  %5582 = vmatprep.subr.bf16.mxu0 %v6216_v51 }
 0x113   : > { %1376 = vst [vmem:[#allocation2 + $0x120] sm:$0xf] %v5349_v23  ;;  %1695 = vst [vmem:[#allocation2 + $0x11c] sm:$0xf] %v5412_v36  ;;  %vm897_vm7 = vcmp.eq.s32.totalorder %v7357_v63, 1  ;;  %v510_v38 = vadd.f32 %v5872_v28, %v6922_v22  ;;  %v7368_v17 = vmax.f32 %v561_v33, 0.0  ;;  %v7377_v29 = vadd.f32 %v5888_v1, %v6922_v22  ;;  %v7428_v28 = vpop.permute.xlu0 %1137  ;;  %v5873_v0 = vpop.f32.mrf.mxu0 }
 0x114   : > { %1694 = vst [vmem:[#allocation2 + $0x110] sm:$0xf] %v5411_v26  ;;  %v589_v20 = vmax.f32 %v489_v15, 0.0  ;;  %v7370_v11 = vmax.f32 %v553_v37, 0.0  ;;  %v687_v60 = vrot.slane %v7363_v13, 7  ;;  %v978_v61 = vrot.slane %v7363_v13, 1  ;;  %5583 = vmatpush3.bf16.msra.mxu0 %v6218_v53 }
 0x115   : > { %v5368_v12 = vpack.c.bf16 %v7363_v13, %v7363_v13  ;;  %v703_v58 = vrot.slane %v7368_v17, 7  ;;  %v5384_v57 = vpack.c.bf16 %v7368_v17, %v7368_v17  ;;  %v7382_v45 = vmax.f32 %v510_v38, 0.0  ;;  %5584 = vmatprep.subr.bf16.mxu0 %v6223_v25  ;;  %v6227_v15 = vld [vmem:[%s8729_s4 + $0x8] sm:$0xff]  }
 0x116   : > { %v685_v39 = vrot.slane %v589_v20, 7  ;;  %v731_v34 = vsel %vm710_vm4, %v686_v55, %v687_v60  ;;  %v1020_v10 = vsel %vm999_vm8, %v977_v46, %v978_v61  ;;  %v976_v9 = vrot.slane %v589_v20, 1  ;;  %v8777_v13 = vld [vmem:[#allocation5_spill] sm:$0xff] }
 0x117   : > { %1523 = vst [vmem:[#allocation2 + $0x88] sm:$0xf] %v5368_v12  ;;  %v5366_v35 = vpack.c.bf16 %v589_v20, %v589_v20  ;;  %v914_v31 = vsel %vm882_vm12, %v731_v34, 0.0  ;;  %v1202_v42 = vsel %vm1170_vm13, %v1020_v10, 0.0  ;;  %1539 = vst [vmem:[#allocation2 + $0x148] sm:$0xf] %v5384_v57  ;;  %v5382_v33 = vpack.c.bf16 %v7370_v11, %v7370_v11  ;;  %v5889_v10 = vpop.f32.mrf.mxu1 }
 0x118   : > { %v732_v7 = vsel %vm710_vm4, %v685_v39, %v686_v55  ;;  %v733_v51 = vsel %vm710_vm4, %v684_v3, %v685_v39  ;;  %v5336_v2 = vpack.c.bf16 %v914_v31, %v914_v31  ;;  %v5399_v32 = vpack.c.bf16 %v1202_v42, %v1202_v42  ;;  %v7418_v3 = vpop.permute.xlu1 %1140  ;;  %v6177_v23 = vld [vmem:[#allocation2 + $0x50] ss:$12 sps:$4 sm:$0xff]   ;;  %5585 = vmatpush3.bf16.msra.mxu0 %v6224_v43  ;;  %v6231_v20 = vld [vmem:[%s8729_s4 + $0x40] sm:$0xff]   ;;  %v504_v31 = vpop.f32.mrf.mxu0 }
 0x119   : > { %v912_v55 = vsel %vm880_vm14, %v733_v51, 0.0  ;;  %v913_v40 = vsel %vm881_vm15, %v732_v7, 0.0  ;;  %1521 = vst [vmem:[#allocation2 + $0x70] sm:$0xf] %v5366_v35  ;;  %v1021_v36 = vsel %vm999_vm8, %v976_v9, %v977_v46  ;;  %v1022_v52 = vsel %vm999_vm8, %v975_v54, %v976_v9  ;;  %5911 = vmatmul.mubr.bf16.gmra.mxu0 %v6177_v23  ;;  %5586 = vmatprep.subr.bf16.mxu0 %v6226_v4  ;;  %v7482_v42 = vpop.permute.xlu0 %1143  ;;  %v8772_v7 = vld [vmem:[#allocation6_spill] sm:$0xff]  ;;  %v8773_v51 = vld [vmem:[#allocation8_spill] sm:$0xff] }
 0x11a   : > { %v5334_v59 = vpack.c.bf16 %v912_v55, %v912_v55  ;;  %v5335_v41 = vpack.c.bf16 %v913_v40, %v913_v40  ;;  %1363 = vst [vmem:[#allocation2 + $0x84] sm:$0xf] %v5336_v2  ;;  %1682 = vst [vmem:[#allocation2 + $0x80] sm:$0xf] %v5399_v32  ;;  %v1200_v44 = vsel %vm1168_vm2, %v1022_v52, 0.0  ;;  %v1201_v48 = vsel %vm1169_vm1, %v1021_v36, 0.0 }
 0x11b   : > { %v701_v53 = vrot.slane %v7370_v11, 7  ;;  %v992_v46 = vrot.slane %v7370_v11, 1  ;;  %v5397_v54 = vpack.c.bf16 %v1200_v44, %v1200_v44  ;;  %v5398_v26 = vpack.c.bf16 %v1201_v48, %v1201_v48  ;;  %1537 = vst [vmem:[#allocation2 + $0x130] sm:$0xf] %v5382_v33  ;;  %v7507_v36 = vld [vmem:[%s8728_s3] ss:$0 sm:$0xff] }
 0x11c   : > { %1361 = vst [vmem:[#allocation2 + $0x6c] sm:$0xf] %v5334_v59  ;;  %1362 = vst [vmem:[#allocation2 + $0x78] sm:$0xf] %v5335_v41  ;;  %v715_v16 = vsel %vm710_vm4, %v702_v24, %v703_v58  ;;  %v994_v37 = vrot.slane %v7368_v17, 1  ;;  %vm883_vm9 = vcmp.eq.s32.totalorder %v6838_v47, 1  ;;  %v5371_v39 = vpack.c.bf16 %v7382_v45, %v7382_v45  ;;  %v7473_v9 = vpop.permute.xlu1 %1146  ;;  %5587 = vmatpush3.bf16.msra.mxu0 %v6227_v15 }
 0x11d   : > { %v717_v1 = vsel %vm710_vm4, %v700_v19, %v701_v53  ;;  %v930_v25 = vsel %vm898_vm6, %v715_v16, 0.0  ;;  %v716_v38 = vsel %vm710_vm4, %v701_v53, %v702_v24  ;;  %vm1171_vm10 = vcmp.eq.s32.totalorder %v6903_v8, 1  ;;  %1680 = vst [vmem:[#allocation2 + $0x68] sm:$0xf] %v5397_v54  ;;  %1681 = vst [vmem:[#allocation2 + $0x74] sm:$0xf] %v5398_v26  ;;  %5588 = vmatprep.subr.bf16.mxu0 %v6231_v20 }
 0x11e   : > { %v928_v19 = vsel %vm896_vm3, %v717_v1, 0.0  ;;  %v5352_v50 = vpack.c.bf16 %v930_v25, %v930_v25  ;;  %v929_v11 = vsel %vm897_vm7, %v716_v38, 0.0  ;;  %v690_v24 = vrot.slane %v7382_v45, 7  ;;  %1526 = vst [vmem:[#allocation2 + $0xac] sm:$0xf] %v5371_v39  ;;  %v8776_v44 = vld [vmem:[#allocation4_spill] sm:$0xff]  ;;  %v7537_v1 = vpop.permute.xlu0 %860 }
 0x11f   : > { %v5350_v12 = vpack.c.bf16 %v928_v19, %v928_v19  ;;  %v5351_v57 = vpack.c.bf16 %v929_v11, %v929_v11  ;;  %v7471_v34 = vmax.f32 %v7377_v29, 0.0  ;;  %v502_v14 = vadd.f32 %v6922_v22, %v501_v49  ;;  %v6232_v29 = vld [vmem:[%s8729_s4] sm:$0xff]   ;;  %v8775_v49 = vld [vmem:[#allocation11_spill] sm:$0xff]  ;;  %v8780_v11 = vld [vmem:[#allocation10_spill] sm:$0xff] }
 0x120   : > { %1379 = vst [vmem:[#allocation2 + $0x144] sm:$0xf] %v5352_v50  ;;  %v566_v35 = vadd.f32 %v6922_v22, %v565_v21  ;;  %v1005_v63 = vsel %vm999_vm8, %v992_v46, %v993_v6  ;;  %vm1185_vm11 = vcmp.eq.s32.totalorder %v7418_v3, 1  ;;  %vm886_vm12 = vcmp.eq.s32.totalorder %v8772_v7, 1  ;;  %v8774_v22 = vld [vmem:[#allocation12_spill] sm:$0xff]  ;;  %5589 = vmatpush3.bf16.msra.mxu0 %v6232_v29  ;;  %v7521_v26 = vpop.permute.xlu1 %863  ;;  %v8778_v50 = vld [vmem:[#allocation7_spill] sm:$0xff] }
 0x121   : > { %vm887_vm13 = vcmp.eq.s32.totalorder %v8773_v51, 1  ;;  %vm1175_vm14 = vcmp.eq.s32.totalorder %v8774_v22, 1  ;;  %vm1174_vm15 = vcmp.eq.s32.totalorder %v8775_v49, 1  ;;  %1377 = vst [vmem:[#allocation2 + $0x12c] sm:$0xf] %v5350_v12  ;;  %v981_v43 = vrot.slane %v7382_v45, 1 }
 0x122   : > { %1378 = vst [vmem:[#allocation2 + $0x138] sm:$0xf] %v5351_v57  ;;  %v997_v4 = vrot.slane %v7471_v34, 1  ;;  %v5387_v2 = vpack.c.bf16 %v7471_v34, %v7471_v34  ;;  %v1217_v32 = vsel %vm1185_vm11, %v1005_v63, 0.0  ;;  %v7495_v55 = vmax.f32 %v502_v14, 0.0 }
 0x123   : > { %v7497_v40 = vmax.f32 %v566_v35, 0.0  ;;  %v5414_v3 = vpack.c.bf16 %v1217_v32, %v1217_v32  ;;  %v1006_v23 = vsel %vm999_vm8, %v991_v30, %v992_v46  ;;  %vm1184_vm0 = vcmp.eq.s32.totalorder %v7428_v28, 1 }
 0x124   : > { %1542 = vst [vmem:[#allocation2 + $0x16c] sm:$0xf] %v5387_v2  ;;  %v513_v52 = vadd.f32 %v7507_v36, %v5873_v0  ;;  %v577_v59 = vadd.f32 %v7507_v36, %v5889_v10  ;;  %v505_v41 = vadd.f32 %v7507_v36, %v504_v31  ;;  %vm871_vm1 = vcmp.eq.s32.totalorder %v8776_v44, 1  ;;  %v6181_v25 = vld [vmem:[#allocation2 + $0x68] ss:$12 sps:$4 sm:$0xff]  }
 0x125   : > { %v688_v5 = vrot.slane %v7495_v55, 7  ;;  %v979_v30 = vrot.slane %v7495_v55, 1  ;;  %v5369_v28 = vpack.c.bf16 %v7495_v55, %v7495_v55  ;;  %v704_v48 = vrot.slane %v7497_v40, 7  ;;  %1697 = vst [vmem:[#allocation2 + $0x134] sm:$0xf] %v5414_v3  ;;  %5914 = vmatprep.mubr.bf16.mxu0 %v6181_v25  ;;  %v568_v3 = vpop.f32.mrf.mxu1 }
 0x126   : > { %v995_v53 = vrot.slane %v7497_v40, 1  ;;  %v5385_v46 = vpack.c.bf16 %v7497_v40, %v7497_v40  ;;  %v1216_v21 = vsel %vm1184_vm0, %v1006_v23, 0.0  ;;  %v595_v54 = vmax.f32 %v513_v52, 0.0 }
 0x127   : > { %v730_v33 = vsel %vm710_vm4, %v687_v60, %v688_v5  ;;  %v1019_v16 = vsel %vm999_vm8, %v978_v61, %v979_v30  ;;  %1524 = vst [vmem:[#allocation2 + $0x94] sm:$0xf] %v5369_v28  ;;  %v5413_v0 = vpack.c.bf16 %v1216_v21, %v1216_v21  ;;  %v7535_v15 = vmax.f32 %v577_v59, 0.0  ;;  %v8779_v61 = vld [vmem:[#allocation9_spill] sm:$0xff] }
 0x128   : > { %v915_v38 = vsel %vm883_vm9, %v730_v33, 0.0  ;;  %v1203_v60 = vsel %vm1171_vm10, %v1019_v16, 0.0  ;;  %1540 = vst [vmem:[#allocation2 + $0x154] sm:$0xf] %v5385_v46  ;;  %v691_v20 = vrot.slane %v595_v54, 7  ;;  %v982_v19 = vrot.slane %v595_v54, 1  ;;  %v7572_v46 = vpop.permute.xlu1 %1152 }
 0x129   : > { %vm884_vm2 = vcmp.eq.s32.totalorder %v8777_v13, 1  ;;  %vm885_vm3 = vcmp.eq.s32.totalorder %v8778_v50, 1  ;;  %vm1173_vm6 = vcmp.eq.s32.totalorder %v8779_v61, 1  ;;  %vm1172_vm7 = vcmp.eq.s32.totalorder %v8780_v11, 1  ;;  %1696 = vst [vmem:[#allocation2 + $0x128] sm:$0xf] %v5413_v0 }
 0x12a   : > { %v5337_v12 = vpack.c.bf16 %v915_v38, %v915_v38  ;;  %v5400_v57 = vpack.c.bf16 %v1203_v60, %v1203_v60  ;;  %v5372_v39 = vpack.c.bf16 %v595_v54, %v595_v54  ;;  %v707_v47 = vrot.slane %v7535_v15, 7  ;;  %v7583_v54 = vpop.permute.xlu0 %1149  ;;  %v6266_v61 = vld [vmem:[%s8729_s4 + $0x1f8] sm:$0xff]  }
 0x12b   : > { %v8781_v8 = vrot.slane %v6947_v62, 7  ;;  %v727_v14 = vsel %vm710_vm4, %v690_v24, %v691_v20  ;;  %v8782_v35 = vrot.slane %v6947_v62, 1  ;;  %v1016_v31 = vsel %vm999_vm8, %v981_v43, %v982_v19  ;;  %5703 = vmatprep.subr.bf16.mxu0 %v6266_v61  ;;  %v6271_v61 = vld [vmem:[%s8729_s4 + $0x1f0] sm:$0xff]  }
 0x12c   : > { %1364 = vst [vmem:[#allocation2 + $0x90] sm:$0xf] %v5337_v12  ;;  %1683 = vst [vmem:[#allocation2 + $0x8c] sm:$0xf] %v5400_v57  ;;  %v918_v29 = vsel %vm886_vm12, %v727_v14, 0.0  ;;  %v1206_v32 = vsel %vm1174_vm15, %v1016_v31, 0.0  ;;  %v5388_v22 = vpack.c.bf16 %v7535_v15, %v7535_v15  ;;  %v569_v16 = vadd.f32 %v7507_v36, %v568_v3  ;;  %v1159_v12 = vpop.permute.xlu1 %1158 }
 0x12d   : > { %v726_v10 = vsel %vm710_vm4, %v691_v20, %v8781_v8  ;;  %v1015_v63 = vsel %vm999_vm8, %v982_v19, %v8782_v35  ;;  %1527 = vst [vmem:[#allocation2 + $0xb8] sm:$0xf] %v5372_v39  ;;  %v5340_v23 = vpack.c.bf16 %v918_v29, %v918_v29  ;;  %v5403_v59 = vpack.c.bf16 %v1206_v32, %v1206_v32  ;;  %v6187_v3 = vld [vmem:[%s8729_s4 + $0xb8] sm:$0xff]  }
 0x12e   : > { %v919_v2 = vsel %vm887_vm13, %v726_v10, 0.0  ;;  %v1207_v62 = vsel %vm1175_vm14, %v1015_v63, 0.0  ;;  %v8783_v7 = vrot.slane %v6940_v56, 7  ;;  %v998_v49 = vrot.slane %v7535_v15, 1  ;;  %1543 = vst [vmem:[#allocation2 + $0x178] sm:$0xf] %v5388_v22  ;;  %v1156_v8 = vpop.permute.xlu0 %1155 }
 0x12f   : > { %v5341_v52 = vpack.c.bf16 %v919_v2, %v919_v2  ;;  %v5404_v28 = vpack.c.bf16 %v1207_v62, %v1207_v62  ;;  %v593_v21 = vmax.f32 %v505_v41, 0.0  ;;  %1367 = vst [vmem:[#allocation2 + $0xb4] sm:$0xf] %v5340_v23  ;;  %1686 = vst [vmem:[#allocation2 + $0xb0] sm:$0xf] %v5403_v59  ;;  %v1003_v0 = vsel %vm999_vm8, %v994_v37, %v995_v53 }
 0x130   : > { %v742_v51 = vsel %vm710_vm4, %v707_v47, %v8783_v7  ;;  %vm1187_vm9 = vcmp.eq.s32.totalorder %v7473_v9, 1  ;;  %v7595_v20 = vmax.f32 %v569_v16, 0.0  ;;  %v1004_v36 = vsel %vm999_vm8, %v993_v6, %v994_v37 }
 0x131   : > { %1368 = vst [vmem:[#allocation2 + $0xc0] sm:$0xf] %v5341_v52  ;;  %1687 = vst [vmem:[#allocation2 + $0xbc] sm:$0xf] %v5404_v28  ;;  %v903_v33 = vsel %vm871_vm1, %v742_v51, 0.0  ;;  %v689_v25 = vrot.slane %v593_v21, 7  ;;  %v5370_v60 = vpack.c.bf16 %v593_v21, %v593_v21  ;;  %v714_v35 = vsel %vm710_vm4, %v703_v58, %v704_v48 }
 0x132   : > { %v5325_v41 = vpack.c.bf16 %v903_v33, %v903_v33  ;;  %v980_v38 = vrot.slane %v593_v21, 1  ;;  %v1219_v44 = vsel %vm1187_vm9, %v1003_v0, 0.0  ;;  %vm1186_vm10 = vcmp.eq.s32.totalorder %v7482_v42, 1  ;;  %v7671_v28 = vld [vmem:[#allocation2 + $0x4] ss:$12 sps:$4 sm:$0xff]  }
 0x133   : > { %v728_v9 = vsel %vm710_vm4, %v689_v25, %v690_v24  ;;  %v729_v19 = vsel %vm710_vm4, %v688_v5, %v689_v25  ;;  %1525 = vst [vmem:[#allocation2 + $0xa0] sm:$0xf] %v5370_v60  ;;  %v705_v10 = vrot.slane %v7595_v20, 7  ;;  %v996_v13 = vrot.slane %v7595_v20, 1  ;;  %2249 = vmatprep.mubr.bf16.mxu1 %v7671_v28  ;;  %v6220_v60 = vld [vmem:[%s8729_s4 + $0xa8] sm:$0xff]  }
 0x134   : > { %1352 = vst [vmem:[#allocation2] sm:$0xf] %v5325_v41  ;;  %v1017_v18 = vsel %vm999_vm8, %v980_v38, %v981_v43  ;;  %v1018_v6 = vsel %vm999_vm8, %v979_v30, %v980_v38  ;;  %v916_v37 = vsel %vm884_vm2, %v729_v19, 0.0  ;;  %v917_v24 = vsel %vm885_vm3, %v728_v9, 0.0  ;;  %v6183_v30 = vld [vmem:[#allocation2 + $0x80] ss:$12 sps:$4 sm:$0xff]  }
 0x135   : > { %v1204_v5 = vsel %vm1172_vm7, %v1018_v6, 0.0  ;;  %v1205_v45 = vsel %vm1173_vm6, %v1017_v18, 0.0  ;;  %v5338_v43 = vpack.c.bf16 %v916_v37, %v916_v37  ;;  %v5339_v57 = vpack.c.bf16 %v917_v24, %v917_v24  ;;  %5915 = vmatmul.mubr.bf16.gmra.mxu0 %v6183_v30  ;;  %v6192_v38 = vld [vmem:[#allocation2 + $0xc8] ss:$12 sps:$4 sm:$0xff]   ;;  %v6198_v9 = vld [vmem:[#allocation2 + $0xf8] ss:$12 sps:$4 sm:$0xff]  }
 0x136   : > { %v5401_v55 = vpack.c.bf16 %v1204_v5, %v1204_v5  ;;  %v5402_v39 = vpack.c.bf16 %v1205_v45, %v1205_v45  ;;  %v5386_v50 = vpack.c.bf16 %v7595_v20, %v7595_v20  ;;  %v5416_v14 = vpack.c.bf16 %v1219_v44, %v1219_v44  ;;  %v7700_v20 = vld [vmem:[#allocation2 + $0x34] ss:$12 sps:$4 sm:$0xff]   ;;  %v6241_v19 = vld [vmem:[%s8729_s4 + $0x98] sm:$0xff]   ;;  %v6255_v45 = vld [vmem:[%s8729_s4 + $0x88] sm:$0xff]  }
 0x137   : > { %1365 = vst [vmem:[#allocation2 + $0x9c] sm:$0xf] %v5338_v43  ;;  %1366 = vst [vmem:[#allocation2 + $0xa8] sm:$0xf] %v5339_v57  ;;  %v1218_v11 = vsel %vm1186_vm10, %v1004_v36, 0.0  ;;  %vm900_vm11 = vcmp.eq.s32.totalorder %v7521_v26, 1  ;;  %v713_v42 = vsel %vm710_vm4, %v704_v48, %v705_v10  ;;  %v1001_v58 = vsel %vm999_vm8, %v996_v13, %v997_v4  ;;  %v870_v48 = vpop.permute.xlu1 %869 }
 0x138   : > { %1684 = vst [vmem:[#allocation2 + $0x98] sm:$0xf] %v5401_v55  ;;  %1685 = vst [vmem:[#allocation2 + $0xa4] sm:$0xf] %v5402_v39  ;;  %vm899_vm12 = vcmp.eq.s32.totalorder %v7537_v1, 1  ;;  %v706_v63 = vrot.slane %v7471_v34, 7  ;;  %v5415_v31 = vpack.c.bf16 %v1218_v11, %v1218_v11  ;;  %v1002_v32 = vsel %vm999_vm8, %v995_v53, %v996_v13  ;;  %v867_v53 = vpop.permute.xlu0 %866 }
 0x139   : > { %1541 = vst [vmem:[#allocation2 + $0x160] sm:$0xf] %v5386_v50  ;;  %1699 = vst [vmem:[#allocation2 + $0x14c] sm:$0xf] %v5416_v14  ;;  %v931_v26 = vsel %vm899_vm12, %v714_v35, 0.0  ;;  %v932_v29 = vsel %vm900_vm11, %v713_v42, 0.0  ;;  %v1000_v51 = vsel %vm999_vm8, %v997_v4, %v998_v49 }
 0x13a   : > { %v5353_v17 = vpack.c.bf16 %v931_v26, %v931_v26  ;;  %vm1189_vm13 = vcmp.eq.s32.totalorder %v7572_v46, 1  ;;  %1698 = vst [vmem:[#allocation2 + $0x140] sm:$0xf] %v5415_v31  ;;  %v5354_v1 = vpack.c.bf16 %v932_v29, %v932_v29  ;;  %vm1188_vm14 = vcmp.eq.s32.totalorder %v7583_v54, 1  ;;  %v7684_v54 = vld [vmem:[#allocation2 + $0x1c] ss:$12 sps:$4 sm:$0xff]  }
 0x13b   : > { %v1221_v2 = vsel %vm1189_vm13, %v1001_v58, 0.0  ;;  %v7660_v62 = vld [vmem:[#allocation2] ss:$12 sps:$4 sm:$0xff]   ;;  %v1220_v52 = vsel %vm1188_vm14, %v1002_v32, 0.0  ;;  %v8784_v59 = vrot.slane %v6940_v56, 1  ;;  %vm1191_vm15 = vcmp.eq.s32.totalorder %v1159_v12, 1 }
 0x13c   : > { %1380 = vst [vmem:[#allocation2 + $0x150] sm:$0xf] %v5353_v17  ;;  %v5418_v23 = vpack.c.bf16 %v1221_v2, %v1221_v2  ;;  %1381 = vst [vmem:[#allocation2 + $0x15c] sm:$0xf] %v5354_v1  ;;  %v5417_v46 = vpack.c.bf16 %v1220_v52, %v1220_v52  ;;  %vm1190_vm0 = vcmp.eq.s32.totalorder %v1156_v8, 1  ;;  %v711_v21 = vsel %vm710_vm4, %v706_v63, %v707_v47  ;;  %v6201_v34 = vld [vmem:[%s8729_s4 + $0xb0] sm:$0xff]  }
 0x13d   : > { %v1031_v40 = vsel %vm999_vm8, %v998_v49, %v8784_v59  ;;  %v1222_v22 = vsel %vm1190_vm0, %v1000_v51, 0.0  ;;  %vm902_vm1 = vcmp.eq.s32.totalorder %v870_v48, 1  ;;  %v712_v33 = vsel %vm710_vm4, %v705_v10, %v706_v63  ;;  %2250 = vmatmul.mubr.bf16.vlgmr.msra.gmra.mxu1 %v7660_v62  ;;  %v6191_v41 = vld [vmem:[#allocation2 + $0xb0] ss:$12 sps:$4 sm:$0xff]   ;;  %v6234_v44 = vld [vmem:[%s8729_s4 + $0xa0] sm:$0xff]   ;;  %v6273_v63 = vld [vmem:[%s8729_s4 + $0x1e8] sm:$0xff]  }
 0x13e   : > { %v1223_v7 = vsel %vm1191_vm15, %v1031_v40, 0.0  ;;  %1701 = vst [vmem:[#allocation2 + $0x164] sm:$0xf] %v5418_v23  ;;  %1700 = vst [vmem:[#allocation2 + $0x158] sm:$0xf] %v5417_v46  ;;  %v5419_v4 = vpack.c.bf16 %v1222_v22, %v1222_v22  ;;  %v934_v49 = vsel %vm902_vm1, %v711_v21, 0.0  ;;  %5939 = vmatpush3.bf16.msra.mxu1 %v6187_v3  ;;  %2257 = vmatprep.mubr.bf16.mxu1 %v7684_v54 }
 0x13f   : > { %v5420_v56 = vpack.c.bf16 %v1223_v7, %v1223_v7  ;;  %vm901_vm8 = vcmp.eq.s32.totalorder %v867_v53, 1  ;;  %v5356_v15 = vpack.c.bf16 %v934_v49, %v934_v49  ;;  %v6190_v16 = vld [vmem:[#allocation2 + $0x98] ss:$12 sps:$4 sm:$0xff]   ;;  %v8785_v25 = vmov 0.0   ;;  %v6196_v36 = vld [vmem:[#allocation2 + $0xe0] ss:$12 sps:$4 sm:$0xff]  }
 0x140   : > { %v933_v47 = vsel %vm901_vm8, %v712_v33, 0.0  ;;  %1702 = vst [vmem:[#allocation2 + $0x170] sm:$0xf] %v5419_v4  ;;  %5940 = vmatprep.subr.bf16.mxu1 %v8785_v25  ;;  %5918 = vmatprep.mubr.bf16.mxu0 %v6190_v16  ;;  %v7711_v18 = vld [vmem:[#allocation2 + $0x30] ss:$12 sps:$4 sm:$0xff]   ;;  %v6262_v57 = vld [vmem:[%s8729_s4 + $0x80] sm:$0xff]  }
 0x141   : > { %1703 = vst [vmem:[#allocation2 + $0x17c] sm:$0xf] %v5420_v56  ;;  %v5355_v0 = vpack.c.bf16 %v933_v47, %v933_v47  ;;  %1383 = vst [vmem:[#allocation2 + $0x174] sm:$0xf] %v5356_v15  ;;  %5919 = vmatmul.mubr.bf16.gmra.mxu0 %v6191_v41  ;;  %v7714_v6 = vld [vmem:[#allocation2 + $0x4c] ss:$12 sps:$4 sm:$0xff]  }
 0x142   : > { %5922 = vmatprep.mubr.bf16.mxu0 %v6192_v38  ;;  %5941 = vmatpush3.bf16.msra.mxu1 %v6201_v34  ;;  %v6248_v37 = vld [vmem:[%s8729_s4 + $0x90] sm:$0xff]   ;;  %v6215_v55 = vld [vmem:[#allocation2 + $0x140] ss:$12 sps:$4 sm:$0xff]   ;;  %v7739_v30 = vld [vmem:[#allocation2 + $0x7c] ss:$12 sps:$4 sm:$0xff]   ;;  %vm6339_vm4 = vmmov 0  }
 0x143   : > { %1382 = vst [vmem:[#allocation2 + $0x168] sm:$0xf] %v5355_v0  ;;  %5942 = vmatprep.subr.bf16.mxu1 %v8785_v25  ;;  %v6206_v24 = vld [vmem:[#allocation2 + $0x110] ss:$12 sps:$4 sm:$0xff]   ;;  %v6208_v5 = vld [vmem:[#allocation2 + $0x128] ss:$12 sps:$4 sm:$0xff]  }
 0x144   : > { %v7725_v12 = vld [vmem:[#allocation2 + $0x48] ss:$12 sps:$4 sm:$0xff]   ;;  %v7728_v43 = vld [vmem:[#allocation2 + $0x64] ss:$12 sps:$4 sm:$0xff]   ;;  %v7736_v8 = vld [vmem:[#allocation2 + $0x60] ss:$12 sps:$4 sm:$0xff]  }
 0x145   : > { %2258 = vmatmul.mubr.bf16.gmra.mxu1 %v7694_v27  ;;  %v6217_v39 = vld [vmem:[#allocation2 + $0x158] ss:$12 sps:$4 sm:$0xff]   ;;  %v7746_v50 = vld [vmem:[#allocation2 + $0x94] ss:$12 sps:$4 sm:$0xff]   ;;  %v7761_v35 = vld [vmem:[#allocation2 + $0x90] ss:$12 sps:$4 sm:$0xff]  }
 0x146   : > { %2265 = vmatprep.mubr.bf16.mxu1 %v7700_v20  ;;  %5943 = vmatpush3.bf16.msra.mxu1 %v6220_v60  ;;  %v7744_v13 = vld [vmem:[#allocation2 + $0x78] ss:$12 sps:$4 sm:$0xff]   ;;  %v6272_v11 = vld [vmem:[%s8729_s4 + $0x1b0] sm:$0xff]   ;;  %v6274_v42 = vld [vmem:[%s8729_s4 + $0x1a8] sm:$0xff]  }
 0x147   : > { %5944 = vmatprep.subr.bf16.mxu1 %v8785_v25  ;;  %v6267_v14 = vld [vmem:[%s8729_s4 + $0x1b8] sm:$0xff]   ;;  %v6277_v26 = vld [vmem:[%s8729_s4 + $0x1e0] sm:$0xff]   ;;  %v7781_v17 = vld [vmem:[#allocation2 + $0xa8] ss:$12 sps:$4 sm:$0xff]  }
 0x148   : > { %v6225_v10 = vld [vmem:[#allocation2 + $0x170] ss:$12 sps:$4 sm:$0xff]   ;;  %v7766_v31 = vld [vmem:[#allocation2 + $0xac] ss:$12 sps:$4 sm:$0xff]   ;;  %v6278_v29 = vld [vmem:[%s8729_s4 + $0x1a0] sm:$0xff]  }
 0x149   : > { %5923 = vmatmul.mubr.bf16.gmra.mxu0 %v6196_v36  ;;  %v6279_v58 = vld [vmem:[%s8729_s4 + $0x1d8] sm:$0xff]   ;;  %v7786_v1 = vld [vmem:[#allocation2 + $0xc4] ss:$12 sps:$4 sm:$0xff]   ;;  %v6284_v3 = vld [vmem:[%s8729_s4 + $0x1c8] sm:$0xff]  }
 0x14a   : > { %5926 = vmatprep.mubr.bf16.mxu0 %v6198_v9  ;;  %5945 = vmatpush3.bf16.msra.mxu1 %v6234_v44  ;;  %v6280_v2 = vld [vmem:[%s8729_s4 + $0x198] sm:$0xff]   ;;  %v6282_v32 = vld [vmem:[%s8729_s4 + $0x1d0] sm:$0xff]   ;;  %v6285_v52 = vld [vmem:[%s8729_s4 + $0x188] sm:$0xff]  }
 0x14b   : > { %5946 = vmatprep.subr.bf16.mxu1 %v8785_v25  ;;  %v6283_v48 = vld [vmem:[%s8729_s4 + $0x190] sm:$0xff]   ;;  %v7806_v23 = vld [vmem:[#allocation2 + $0xdc] ss:$12 sps:$4 sm:$0xff]   ;;  %v6288_v59 = vld [vmem:[%s8729_s4 + $0x1c0] sm:$0xff]  }
 0x14c   : > { %v6289_v40 = vld [vmem:[%s8729_s4 + $0x180] sm:$0xff]   ;;  %v7829_v46 = vld [vmem:[#allocation2 + $0xf0] ss:$12 sps:$4 sm:$0xff]   ;;  %v7831_v7 = vld [vmem:[#allocation2 + $0x10c] ss:$12 sps:$4 sm:$0xff]  }
 0x14d   : > { %2266 = vmatmul.mubr.bf16.gmra.mxu1 %v7711_v18  ;;  %v7821_v53 = vld [vmem:[#allocation2 + $0xd8] ss:$12 sps:$4 sm:$0xff]   ;;  %v7837_v51 = vld [vmem:[#allocation2 + $0x108] ss:$12 sps:$4 sm:$0xff]   ;;  %v7845_v22 = vld [vmem:[#allocation2 + $0x120] ss:$12 sps:$4 sm:$0xff]  }
 0x14e   : > { %2273 = vmatprep.mubr.bf16.mxu1 %v7714_v6  ;;  %5947 = vmatpush3.bf16.msra.mxu1 %v6241_v19  ;;  %v7839_v56 = vld [vmem:[#allocation2 + $0x124] ss:$12 sps:$4 sm:$0xff]   ;;  %v7847_v21 = vld [vmem:[#allocation2 + $0x13c] ss:$12 sps:$4 sm:$0xff]   ;;  %v7855_v4 = vld [vmem:[#allocation2 + $0x154] ss:$12 sps:$4 sm:$0xff]  }
 0x14f   : > { %5948 = vmatprep.subr.bf16.mxu1 %v8785_v25  ;;  %v7853_v34 = vld [vmem:[#allocation2 + $0x138] ss:$12 sps:$4 sm:$0xff]   ;;  %v7861_v49 = vld [vmem:[#allocation2 + $0x150] ss:$12 sps:$4 sm:$0xff]   ;;  %v7869_v15 = vld [vmem:[#allocation2 + $0x168] ss:$12 sps:$4 sm:$0xff]  }
 0x150   : > { %v7863_v33 = vld [vmem:[#allocation2 + $0x16c] ss:$12 sps:$4 sm:$0xff]   ;;  %v6268_v16 = vld [vmem:[#allocation2 + $0x8] ss:$12 sps:$4 sm:$0xff]   ;;  %v6291_v60 = vld [vmem:[%s8729_s4 + $0x220] sm:$0xff]  }
 0x151   : > { %5927 = vmatmul.mubr.bf16.gmra.mxu0 %v6206_v24  ;;  %v6269_v47 = vld [vmem:[%s8729_s4 + $0x238] sm:$0xff]   ;;  %v6275_v0 = vld [vmem:[%s8729_s4 + $0x230] sm:$0xff]   ;;  %v6286_v41 = vld [vmem:[%s8729_s4 + $0x228] sm:$0xff]  }
 0x152   : > { %5930 = vmatprep.mubr.bf16.mxu0 %v6208_v5  ;;  %5949 = vmatpush3.bf16.msra.mxu1 %v6248_v37  ;;  %v6270_v38 = vld [vmem:[#allocation2 + $0x20] ss:$12 sps:$4 sm:$0xff]   ;;  %v6294_v44 = vld [vmem:[%s8729_s4 + $0x218] sm:$0xff]   ;;  %v6297_v9 = vld [vmem:[%s8729_s4 + $0x210] sm:$0xff]  }
 0x153   : > { %5950 = vmatprep.subr.bf16.mxu1 %v8785_v25  ;;  %v6276_v36 = vld [vmem:[#allocation2 + $0x38] ss:$12 sps:$4 sm:$0xff]   ;;  %v6300_v19 = vld [vmem:[%s8729_s4 + $0x208] sm:$0xff]   ;;  %v6281_v37 = vld [vmem:[#allocation2 + $0x50] ss:$12 sps:$4 sm:$0xff]  }
 0x154   : > { %v6303_v5 = vld [vmem:[%s8729_s4 + $0x200] sm:$0xff]  }
 0x155   : > { %2274 = vmatmul.mubr.bf16.gmra.mxu1 %v7725_v12 }
 0x156   : > { %2281 = vmatprep.mubr.bf16.mxu1 %v7728_v43  ;;  %5951 = vmatpush3.bf16.msra.mxu1 %v6255_v45 }
 0x157   : > { %5952 = vmatprep.subr.bf16.mxu1 %v8785_v25 }
 0x159   : > { %5931 = vmatmul.mubr.bf16.gmra.mxu0 %v6215_v55 }
 0x15a   : > { %5934 = vmatprep.mubr.bf16.mxu0 %v6217_v39  ;;  %5953 = vmatpush3.bf16.msra.mxu1 %v6262_v57  ;;  %v6287_v57 = vld [vmem:[#allocation2 + $0x68] ss:$12 sps:$4 sm:$0xff]  }
 0x15b   : > { %6014 = vmatprep.subr.bf16.mxu1 %v8785_v25 }
 0x15d   : > { %2282 = vmatmul.mubr.bf16.gmra.mxu1 %v7736_v8 }
 0x15e   : > { %2289 = vmatprep.mubr.bf16.mxu1 %v7739_v30 }
 0x161   : > { %5935 = vmatmul.mubr.bf16.gmra.mxu0 %v6225_v10  ;;  %v6290_v10 = vld [vmem:[#allocation2 + $0x80] ss:$12 sps:$4 sm:$0xff]  }
 0x162   : > { %3125 = vmatprep.mubr.bf16.mxu0 %v7671_v28  ;;  %v7823_v28 = vld [vmem:[#allocation2 + $0xf4] ss:$12 sps:$4 sm:$0xff]  }
 0x165   : > { %2290 = vmatmul.mubr.bf16.gmra.mxu1 %v7744_v13 }
 0x166   : > { %2297 = vmatprep.mubr.bf16.mxu1 %v7746_v50 }
 0x169   : > { %3126 = vmatmul.mubr.bf16.vlgmr.msra.gmra.mxu0 %v7660_v62  ;;  %v7801_v62 = vld [vmem:[#allocation2 + $0xc0] ss:$12 sps:$4 sm:$0xff]  }
 0x16a   : > { %3133 = vmatprep.mubr.bf16.mxu0 %v7684_v54  ;;  %5704 = vmatpush3.bf16.msra.mxu0 %v6267_v14 }
 0x16b   : > { %5705 = vmatprep.subr.bf16.mxu0 %v6271_v61  ;;  %v6292_v61 = vld [vmem:[#allocation2 + $0x98] ss:$12 sps:$4 sm:$0xff]  }
 0x16d   : > { %2298 = vmatmul.mubr.bf16.gmra.mxu1 %v7761_v35 }
 0x16e   : > { %2305 = vmatprep.mubr.bf16.mxu1 %v7766_v31  ;;  %5706 = vmatpush3.bf16.msra.mxu0 %v6272_v11  ;;  %v6293_v11 = vld [vmem:[#allocation2 + $0xb0] ss:$12 sps:$4 sm:$0xff]  }
 0x16f   : > { %5707 = vmatprep.subr.bf16.mxu0 %v6273_v63 }
 0x171   : > { %3134 = vmatmul.mubr.bf16.gmra.mxu0 %v7694_v27 }
 0x172   : > { %3141 = vmatprep.mubr.bf16.mxu0 %v7700_v20  ;;  %5708 = vmatpush3.bf16.msra.mxu0 %v6274_v42  ;;  %v6295_v42 = vld [vmem:[#allocation2 + $0xc8] ss:$12 sps:$4 sm:$0xff]  }
 0x173   : > { %5709 = vmatprep.subr.bf16.mxu0 %v6277_v26 }
 0x175   : > { %2306 = vmatmul.mubr.bf16.gmra.mxu1 %v7781_v17 }
 0x176   : > { %2313 = vmatprep.mubr.bf16.mxu1 %v7786_v1  ;;  %5710 = vmatpush3.bf16.msra.mxu0 %v6278_v29 }
 0x177   : > { %5711 = vmatprep.subr.bf16.mxu0 %v6279_v58 }
 0x179   : > { %3142 = vmatmul.mubr.bf16.gmra.mxu0 %v7711_v18 }
 0x17a   : > { %3149 = vmatprep.mubr.bf16.mxu0 %v7714_v6  ;;  %5712 = vmatpush3.bf16.msra.mxu0 %v6280_v2 }
 0x17b   : > { %5713 = vmatprep.subr.bf16.mxu0 %v6282_v32 }
 0x17d   : > { %2314 = vmatmul.mubr.bf16.gmra.mxu1 %v7801_v62 }
 0x17e   : > { %2321 = vmatprep.mubr.bf16.mxu1 %v7806_v23  ;;  %5714 = vmatpush3.bf16.msra.mxu0 %v6283_v48  ;;  %v6296_v48 = vld [vmem:[#allocation2 + $0xe0] ss:$12 sps:$4 sm:$0xff]  }
 0x17f   : > { %5715 = vmatprep.subr.bf16.mxu0 %v6284_v3 }
 0x181   : > { %3150 = vmatmul.mubr.bf16.gmra.mxu0 %v7725_v12 }
 0x182   : > { %3157 = vmatprep.mubr.bf16.mxu0 %v7728_v43  ;;  %5716 = vmatpush3.bf16.msra.mxu0 %v6285_v52 }
 0x183   : > { %5717 = vmatprep.subr.bf16.mxu0 %v6288_v59 }
 0x185   : > { %2322 = vmatmul.mubr.bf16.gmra.mxu1 %v7821_v53 }
 0x186   : > { %2329 = vmatprep.mubr.bf16.mxu1 %v7823_v28  ;;  %5718 = vmatpush3.bf16.msra.mxu0 %v6289_v40 }
 0x189   : > { %3158 = vmatmul.mubr.bf16.gmra.mxu0 %v7736_v8 }
 0x18a   : > { %3165 = vmatprep.mubr.bf16.mxu0 %v7739_v30 }
 0x18d   : > { %2330 = vmatmul.mubr.bf16.gmra.mxu1 %v7829_v46 }
 0x18e   : > { %2337 = vmatprep.mubr.bf16.mxu1 %v7831_v7 }
 0x191   : > { %3166 = vmatmul.mubr.bf16.gmra.mxu0 %v7744_v13 }
 0x192   : > { %3173 = vmatprep.mubr.bf16.mxu0 %v7746_v50 }
 0x195   : > { %2338 = vmatmul.mubr.bf16.gmra.mxu1 %v7837_v51 }
 0x196   : > { %2345 = vmatprep.mubr.bf16.mxu1 %v7839_v56 }
 0x199   : > { %3174 = vmatmul.mubr.bf16.gmra.mxu0 %v7761_v35 }
 0x19a   : > { %3181 = vmatprep.mubr.bf16.mxu0 %v7766_v31 }
 0x19d   : > { %2346 = vmatmul.mubr.bf16.gmra.mxu1 %v7845_v22 }
 0x19e   : > { %2353 = vmatprep.mubr.bf16.mxu1 %v7847_v21 }
 0x1a1   : > { %3182 = vmatmul.mubr.bf16.gmra.mxu0 %v7781_v17 }
 0x1a2   : > { %3189 = vmatprep.mubr.bf16.mxu0 %v7786_v1 }
 0x1a5   : > { %2354 = vmatmul.mubr.bf16.gmra.mxu1 %v7853_v34 }
 0x1a6   : > { %2361 = vmatprep.mubr.bf16.mxu1 %v7855_v4 }
 0x1a9   : > { %3190 = vmatmul.mubr.bf16.gmra.mxu0 %v7801_v62 }
 0x1aa   : > { %3197 = vmatprep.mubr.bf16.mxu0 %v7806_v23 }
 0x1ad   : > { %2362 = vmatmul.mubr.bf16.gmra.mxu1 %v7861_v49 }
 0x1ae   : > { %2369 = vmatprep.mubr.bf16.mxu1 %v7863_v33 }
 0x1b1   : > { %3198 = vmatmul.mubr.bf16.gmra.mxu0 %v7821_v53 }
 0x1b2   : > { %3205 = vmatprep.mubr.bf16.mxu0 %v7823_v28 }
 0x1b5   : > { %2370 = vmatmul.mubr.bf16.gmra.mxu1 %v7869_v15 }
 0x1b6   : > { %5954 = vmatprep.mubr.msk.bf16.mxu1 %vm6339_vm4, %v8785_v25 }
 0x1b9   : > { %3206 = vmatmul.mubr.bf16.gmra.mxu0 %v7829_v46 }
 0x1ba   : > { %3213 = vmatprep.mubr.bf16.mxu0 %v7831_v7 }
 0x1bd   : > { %5955 = vmatmul.mubr.bf16.vlgmr.msra.gmra.mxu1 %v6268_v16 }
 0x1be   : > { %6015 = vmatpush3.bf16.msra.mxu1 %v6269_v47  ;;  %5958 = vmatprep.mubr.msk.bf16.mxu1 %vm6339_vm4, %v8785_v25 }
 0x1bf   : > { %6016 = vmatprep.subr.bf16.mxu1 %v8785_v25 }
 0x1c1   : > { %3214 = vmatmul.mubr.bf16.gmra.mxu0 %v7837_v51 }
 0x1c2   : > { %3221 = vmatprep.mubr.bf16.mxu0 %v7839_v56  ;;  %6017 = vmatpush3.bf16.msra.mxu1 %v6275_v0  ;;  %v7917_v24 = vpop.f32.mrf.mxu0 }
 0x1c3   : > { %6018 = vmatprep.subr.bf16.mxu1 %v8785_v25 }
 0x1c4   : > { %v2412_v45 = vpop.f32.mrf.mxu0 }
 0x1c5   : > { %5959 = vmatmul.mubr.bf16.gmra.mxu1 %v6270_v38 }
 0x1c6   : > { %5962 = vmatprep.mubr.msk.bf16.mxu1 %vm6339_vm4, %v8785_v25  ;;  %6019 = vmatpush3.bf16.msra.mxu1 %v6286_v41  ;;  %v5909_v55 = vpop.f32.mrf.mxu0 }
 0x1c7   : > { %6020 = vmatprep.subr.bf16.mxu1 %v8785_v25 }
 0x1c8   : > { %v2415_v39 = vpop.f32.mrf.mxu0 }
 0x1c9   : > { %3222 = vmatmul.mubr.bf16.gmra.mxu0 %v7845_v22 }
 0x1ca   : > { %3229 = vmatprep.mubr.bf16.mxu0 %v7847_v21  ;;  %6021 = vmatpush3.bf16.msra.mxu1 %v6291_v60 }
 0x1cb   : > { %6022 = vmatprep.subr.bf16.mxu1 %v8785_v25 }
 0x1cd   : > { %5963 = vmatmul.mubr.bf16.gmra.mxu1 %v6276_v36 }
 0x1ce   : > { %5966 = vmatprep.mubr.msk.bf16.mxu1 %vm6339_vm4, %v8785_v25  ;;  %6023 = vmatpush3.bf16.msra.mxu1 %v6294_v44  ;;  %v6298_v44 = vld [vmem:[#allocation2 + $0xf8] ss:$12 sps:$4 sm:$0xff]  }
 0x1cf   : > { %6024 = vmatprep.subr.bf16.mxu1 %v8785_v25 }
 0x1d1   : > { %3230 = vmatmul.mubr.bf16.gmra.mxu0 %v7853_v34 }
 0x1d2   : > { %3237 = vmatprep.mubr.bf16.mxu0 %v7855_v4  ;;  %6025 = vmatpush3.bf16.msra.mxu1 %v6297_v9 }
 0x1d3   : > { %6026 = vmatprep.subr.bf16.mxu1 %v8785_v25 }
 0x1d5   : > { %5967 = vmatmul.mubr.bf16.gmra.mxu1 %v6281_v37 }
 0x1d6   : > { %5970 = vmatprep.mubr.msk.bf16.mxu1 %vm6339_vm4, %v8785_v25  ;;  %6027 = vmatpush3.bf16.msra.mxu1 %v6300_v19 }
 0x1d7   : > { %6028 = vmatprep.subr.bf16.mxu1 %v8785_v25 }
 0x1d9   : > { %3238 = vmatmul.mubr.bf16.gmra.mxu0 %v7861_v49  ;;  %v7931_v14 = vpop.f32.mrf.mxu0 }
 0x1da   : > { %4014 = vmatprep.mubr.bf16.mxu0 %v7684_v54  ;;  %6029 = vmatpush3.bf16.msra.mxu1 %v6303_v5 }
 0x1db   : > { %v2428_v54 = vpop.f32.mrf.mxu0 }
 0x1dd   : > { %5971 = vmatmul.mubr.bf16.gmra.mxu1 %v6287_v57 }
 0x1de   : > { %5974 = vmatprep.mubr.msk.bf16.mxu1 %vm6339_vm4, %v8785_v25 }
 0x1e1   : > { %4015 = vmatmul.mubr.bf16.vlgmr.msra.gmra.mxu0 %v7694_v27  ;;  %v7937_v27 = vpop.f32.mrf.mxu0 }
 0x1e2   : > { %4022 = vmatprep.mubr.bf16.mxu0 %v7700_v20 }
 0x1e3   : > { %v2431_v20 = vpop.f32.mrf.mxu0 }
 0x1e5   : > { %5975 = vmatmul.mubr.bf16.gmra.mxu1 %v6290_v10 }
 0x1e6   : > { %5978 = vmatprep.mubr.msk.bf16.mxu1 %vm6339_vm4, %v8785_v25 }
 0x1e9   : > { %4023 = vmatmul.mubr.bf16.gmra.mxu0 %v7711_v18 }
 0x1ea   : > { %4030 = vmatprep.mubr.bf16.mxu0 %v7714_v6 }
 0x1ed   : > { %5979 = vmatmul.mubr.bf16.gmra.mxu1 %v6292_v61 }
 0x1ee   : > { %5982 = vmatprep.mubr.msk.bf16.mxu1 %vm6339_vm4, %v8785_v25 }
 0x1f1   : > { %4031 = vmatmul.mubr.bf16.gmra.mxu0 %v7725_v12 }
 0x1f2   : > { %4038 = vmatprep.mubr.bf16.mxu0 %v7728_v43 }
 0x1f5   : > { %5983 = vmatmul.mubr.bf16.gmra.mxu1 %v6293_v11  ;;  %v7941_v63 = vpop.f32.mrf.mxu0 }
 0x1f6   : > { %5986 = vmatprep.mubr.msk.bf16.mxu1 %vm6339_vm4, %v8785_v25 }
 0x1f7   : > { %v7945_v18 = vpop.f32.mrf.mxu0 }
 0x1f9   : > { %4039 = vmatmul.mubr.bf16.gmra.mxu0 %v7736_v8  ;;  %v7949_v6 = vpop.f32.mrf.mxu0 }
 0x1fa   : > { %4046 = vmatprep.mubr.bf16.mxu0 %v7739_v30 }
 0x1fb   : > { %v7951_v43 = vpop.f32.mrf.mxu0 }
 0x1fd   : > { %v5454_v12 = vpop.f32.mrf.mxu1  ;;  %5987 = vmatmul.mubr.bf16.gmra.mxu1 %v6295_v42 }
 0x1fe   : > { %5990 = vmatprep.mubr.msk.bf16.mxu1 %vm6339_vm4, %v8785_v25 }
 0x1ff   : > { %v5455_v26 = vpop.f32.mrf.mxu1 }
 0x200   : > { %v5456_v29 = vadd.f32 %v5455_v26, %v5454_v12 }
 0x201   : > { %v5457_v58 = vpop.f32.mrf.mxu1  ;;  %v7955_v2 = vpop.f32.mrf.mxu0  ;;  %4047 = vmatmul.mubr.bf16.gmra.mxu0 %v7744_v13 }
 0x202   : > { %v7958_v8 = vadd.f32 %v5456_v29, %v2412_v45  ;;  %4054 = vmatprep.mubr.bf16.mxu0 %v7746_v50 }
 0x203   : > { %v5458_v30 = vpop.f32.mrf.mxu1  ;;  %v7961_v32 = vpop.f32.mrf.mxu0 }
 0x204   : > { %8786 = vst [vmem:[#allocation6_spill] sm:$0xff] %v7958_v8  ;;  %v5459_v3 = vadd.f32 %v5458_v30, %v5457_v58 }
 0x205   : > { %v5460_v52 = vpop.f32.mrf.mxu1  ;;  %5991 = vmatmul.mubr.bf16.gmra.mxu1 %v6296_v48  ;;  %v7963_v59 = vpop.f32.mrf.mxu0  ;;  %v6301_v48 = vld [vmem:[#allocation2 + $0x128] ss:$12 sps:$4 sm:$0xff]  }
 0x206   : > { %v7965_v40 = vadd.f32 %v5459_v3, %v2415_v39  ;;  %5994 = vmatprep.mubr.msk.bf16.mxu1 %vm6339_vm4, %v8785_v25 }
 0x207   : > { %v5461_v47 = vpop.f32.mrf.mxu1  ;;  %v7969_v13 = vpop.f32.mrf.mxu0 }
 0x208   : > { %8787 = vst [vmem:[#allocation8_spill] sm:$0xff] %v7965_v40  ;;  %v5462_v16 = vadd.f32 %v5461_v47, %v5460_v52 }
 0x209   : > { %v5463_v0 = vpop.f32.mrf.mxu1  ;;  %v7971_v50 = vpop.f32.mrf.mxu0  ;;  %4055 = vmatmul.mubr.bf16.gmra.mxu0 %v7761_v35 }
 0x20a   : > { %v7975_v41 = vadd.f32 %v7917_v24, %v5462_v16  ;;  %4062 = vmatprep.mubr.bf16.mxu0 %v7766_v31 }
 0x20b   : > { %v5464_v38 = vpop.f32.mrf.mxu1  ;;  %v7978_v60 = vpop.f32.mrf.mxu0 }
 0x20c   : > { %v5465_v36 = vadd.f32 %v5464_v38, %v5463_v0 }
 0x20d   : > { %v5466_v9 = vpop.f32.mrf.mxu1  ;;  %5995 = vmatmul.mubr.bf16.gmra.mxu1 %v6298_v44  ;;  %v7980_v19 = vpop.f32.mrf.mxu0 }
 0x20e   : > { %v7982_v37 = vadd.f32 %v5909_v55, %v5465_v36  ;;  %5998 = vmatprep.mubr.msk.bf16.mxu1 %vm6339_vm4, %v8785_v25  ;;  %v6299_v55 = vld [vmem:[#allocation2 + $0x110] ss:$12 sps:$4 sm:$0xff]  }
 0x20f   : > { %v5467_v35 = vpop.f32.mrf.mxu1  ;;  %v7986_v5 = vpop.f32.mrf.mxu0 }
 0x210   : > { %v5468_v24 = vadd.f32 %v5467_v35, %v5466_v9  ;;  %v6302_v9 = vld [vmem:[#allocation2 + $0x140] ss:$12 sps:$4 sm:$0xff]  }
 0x211   : > { %v5469_v45 = vpop.f32.mrf.mxu1  ;;  %v7988_v31 = vpop.f32.mrf.mxu0  ;;  %4063 = vmatmul.mubr.bf16.gmra.mxu0 %v7781_v17 }
 0x212   : > { %8788 = vst [vmem:[#allocation12_spill] sm:$0xff] %v7988_v31  ;;  %v7991_v57 = vadd.f32 %v5468_v24, %v2428_v54  ;;  %4070 = vmatprep.mubr.bf16.mxu0 %v7786_v1 }
 0x213   : > { %v5470_v39 = vpop.f32.mrf.mxu1  ;;  %v7994_v10 = vpop.f32.mrf.mxu0 }
 0x214   : > { %v5471_v61 = vadd.f32 %v5470_v39, %v5469_v45 }
 0x215   : > { %v5472_v11 = vpop.f32.mrf.mxu1  ;;  %5999 = vmatmul.mubr.bf16.gmra.mxu1 %v6299_v55  ;;  %v7996_v42 = vpop.f32.mrf.mxu0 }
 0x216   : > { %8789 = vst [vmem:[#allocation11_spill] sm:$0xff] %v7996_v42  ;;  %v7998_v12 = vadd.f32 %v5471_v61, %v2431_v20  ;;  %6002 = vmatprep.mubr.msk.bf16.mxu1 %vm6339_vm4, %v8785_v25 }
 0x217   : > { %v5473_v26 = vpop.f32.mrf.mxu1  ;;  %v8002_v17 = vpop.f32.mrf.mxu0 }
 0x218   : > { %v5474_v54 = vadd.f32 %v5473_v26, %v5472_v11 }
 0x219   : > { %v5475_v29 = vpop.f32.mrf.mxu1  ;;  %v8004_v1 = vpop.f32.mrf.mxu0  ;;  %4071 = vmatmul.mubr.bf16.gmra.mxu0 %v7801_v62 }
 0x21a   : > { %8790 = vst [vmem:[#allocation4_spill] sm:$0xff] %v8004_v1  ;;  %v8008_v58 = vadd.f32 %v7931_v14, %v5474_v54  ;;  %4078 = vmatprep.mubr.bf16.mxu0 %v7806_v23 }
 0x21b   : > { %v5476_v30 = vpop.f32.mrf.mxu1  ;;  %v8011_v20 = vpop.f32.mrf.mxu0 }
 0x21c   : > { %8791 = vst [vmem:[#allocation5_spill] sm:$0xff] %v8011_v20  ;;  %v5477_v3 = vadd.f32 %v5476_v30, %v5475_v29 }
 0x21d   : > { %v5478_v52 = vpop.f32.mrf.mxu1  ;;  %6003 = vmatmul.mubr.bf16.gmra.mxu1 %v6301_v48  ;;  %v8013_v47 = vpop.f32.mrf.mxu0 }
 0x21e   : > { %8792 = vst [vmem:[#allocation7_spill] sm:$0xff] %v8013_v47  ;;  %v8016_v16 = vadd.f32 %v7937_v27, %v5477_v3  ;;  %6006 = vmatprep.mubr.msk.bf16.mxu1 %vm6339_vm4, %v8785_v25 }
 0x21f   : > { %v5479_v62 = vpop.f32.mrf.mxu1  ;;  %v8020_v14 = vpop.f32.mrf.mxu0 }
 0x220   : > { %8793 = vst [vmem:[#allocation9_spill] sm:$0xff] %v8020_v14  ;;  %v5480_v0 = vadd.f32 %v5479_v62, %v5478_v52 }
 0x221   : > { %v5481_v23 = vpop.f32.mrf.mxu1  ;;  %v8022_v38 = vpop.f32.mrf.mxu0  ;;  %4079 = vmatmul.mubr.bf16.gmra.mxu0 %v7821_v53 }
 0x222   : > { %8794 = vst [vmem:[#allocation10_spill] sm:$0xff] %v8022_v38  ;;  %v8026_v44 = vadd.f32 %v5480_v0, %v7945_v18  ;;  %4086 = vmatprep.mubr.bf16.mxu0 %v7823_v28 }
 0x223   : > { %v5482_v36 = vpop.f32.mrf.mxu1  ;;  %v8029_v27 = vpop.f32.mrf.mxu0 }
 0x224   : > { %8795 = vst [vmem:[#allocation13_spill] sm:$0xff] %v8029_v27  ;;  %v5483_v35 = vadd.f32 %v5482_v36, %v5481_v23 }
 0x225   : > { %v5484_v24 = vpop.f32.mrf.mxu1  ;;  %6007 = vmatmul.mubr.bf16.gmra.mxu1 %v6302_v9  ;;  %v8031_v45 = vpop.f32.mrf.mxu0 }
 0x226   : > { %8796 = vst [vmem:[#allocation14_spill] sm:$0xff] %v8031_v45  ;;  %v8034_v39 = vadd.f32 %v5483_v35, %v7951_v43  ;;  %6010 = vmatprep.mubr.msk.bf16.mxu1 %vm6339_vm4, %v8785_v25  ;;  %v6304_v43 = vld [vmem:[#allocation2 + $0x158] ss:$12 sps:$4 sm:$0xff]   ;;  %v6305_v35 = vld [vmem:[#allocation2 + $0x20] ss:$12 sps:$4 sm:$0xff]  }
 0x227   : > { %v5485_v53 = vpop.f32.mrf.mxu1  ;;  %v8038_v18 = vpop.f32.mrf.mxu0 }
 0x228   : > { %8797 = vst [vmem:[#allocation15_spill] sm:$0xff] %v8038_v18  ;;  %v5486_v55 = vadd.f32 %v5485_v53, %v5484_v24  ;;  %v6312_v18 = vld [vmem:[#allocation2 + $0xc8] ss:$12 sps:$4 sm:$0xff]  }
 0x229   : > { %v5487_v28 = vpop.f32.mrf.mxu1  ;;  %v5590_v61 = vpop.f32.mrf.mxu0  ;;  %4087 = vmatmul.mubr.bf16.gmra.mxu0 %v7829_v46 }
 0x22a   : > { %v8042_v11 = vadd.f32 %v7941_v63, %v5486_v55  ;;  %4094 = vmatprep.mubr.bf16.mxu0 %v7831_v7 }
 0x22b   : > { %v5488_v26 = vpop.f32.mrf.mxu1  ;;  %v5591_v54 = vpop.f32.mrf.mxu0 }
 0x22c   : > { %v5489_v29 = vadd.f32 %v5488_v26, %v5487_v28  ;;  %v8045_v30 = vadd.f32 %v5591_v54, %v5590_v61 }
 0x22d   : > { %v5490_v48 = vpop.f32.mrf.mxu1  ;;  %6011 = vmatmul.mubr.bf16.gmra.mxu1 %v6304_v43  ;;  %v5593_v3 = vpop.f32.mrf.mxu0 }
 0x22e   : > { %v8048_v52 = vadd.f32 %v7949_v6, %v5489_v29  ;;  %6030 = vmatprep.mubr.msk.bf16.mxu1 %vm6339_vm4, %v8785_v25 }
 0x22f   : > { %v5491_v46 = vpop.f32.mrf.mxu1  ;;  %v5594_v63 = vpop.f32.mrf.mxu0 }
 0x230   : > { %v5492_v62 = vadd.f32 %v5491_v46, %v5490_v48  ;;  %v8052_v0 = vadd.f32 %v5594_v63, %v5593_v3  ;;  %v6306_v3 = vld [vmem:[#allocation2 + $0x38] ss:$12 sps:$4 sm:$0xff]  }
 0x231   : > { %v5493_v7 = vpop.f32.mrf.mxu1  ;;  %v5596_v23 = vpop.f32.mrf.mxu0  ;;  %4095 = vmatmul.mubr.bf16.gmra.mxu0 %v7837_v51 }
 0x232   : > { %v8056_v36 = vadd.f32 %v5492_v62, %v7961_v32  ;;  %4102 = vmatprep.mubr.bf16.mxu0 %v7839_v56 }
 0x233   : > { %v5494_v9 = vpop.f32.mrf.mxu1  ;;  %v5597_v6 = vpop.f32.mrf.mxu0 }
 0x234   : > { %v5495_v24 = vadd.f32 %v5494_v9, %v5493_v7  ;;  %v8059_v53 = vadd.f32 %v5597_v6, %v5596_v23 }
 0x235   : > { %v5496_v55 = vpop.f32.mrf.mxu1  ;;  %6031 = vmatmul.mubr.bf16.vlgmr.msra.gmra.mxu1 %v6305_v35  ;;  %v5599_v28 = vpop.f32.mrf.mxu0 }
 0x236   : > { %v8062_v61 = vadd.f32 %v5495_v24, %v7969_v13  ;;  %6034 = vmatprep.mubr.msk.bf16.mxu1 %vm6339_vm4, %v8785_v25 }
 0x237   : > { %v5497_v51 = vpop.f32.mrf.mxu1  ;;  %v5600_v32 = vpop.f32.mrf.mxu0 }
 0x238   : > { %v5498_v26 = vadd.f32 %v5497_v51, %v5496_v55  ;;  %v8066_v54 = vadd.f32 %v5600_v32, %v5599_v28  ;;  %v6320_v32 = vld [vmem:[%s8731_s6 + $0x38] sm:$0xff]  }
 0x239   : > { %v5499_v56 = vpop.f32.mrf.mxu1  ;;  %v5602_v43 = vpop.f32.mrf.mxu0  ;;  %4103 = vmatmul.mubr.bf16.gmra.mxu0 %v7845_v22  ;;  %6090 = vmatprep.subr.bf16.mxu0 %v6320_v32 }
 0x23a   : > { %v8070_v29 = vadd.f32 %v7955_v2, %v5498_v26  ;;  %4110 = vmatprep.mubr.bf16.mxu0 %v7847_v21  ;;  %6091 = vmatpush3.bf16.msra.mxu0 %v6320_v32 }
 0x23b   : > { %v5500_v48 = vpop.f32.mrf.mxu1  ;;  %v5603_v13 = vpop.f32.mrf.mxu0 }
 0x23c   : > { %v5501_v46 = vadd.f32 %v5500_v48, %v5499_v56  ;;  %v8073_v63 = vadd.f32 %v5603_v13, %v5602_v43 }
 0x23d   : > { %v5502_v62 = vpop.f32.mrf.mxu1  ;;  %6035 = vmatmul.mubr.bf16.gmra.mxu1 %v6306_v3  ;;  %v8075_v7 = vpop.f32.mrf.mxu0 }
 0x23e   : > { %v8078_v23 = vadd.f32 %v7963_v59, %v5501_v46  ;;  %6038 = vmatprep.mubr.msk.bf16.mxu1 %vm6339_vm4, %v8785_v25  ;;  %v6307_v59 = vld [vmem:[#allocation2 + $0x50] ss:$12 sps:$4 sm:$0xff]  }
 0x23f   : > { %v5503_v22 = vpop.f32.mrf.mxu1  ;;  %v8082_v2 = vpop.f32.mrf.mxu0 }
 0x240   : > { %v5504_v21 = vadd.f32 %v5503_v22, %v5502_v62  ;;  %v6308_v62 = vld [vmem:[#allocation2 + $0x68] ss:$12 sps:$4 sm:$0xff]  }
 0x241   : > { %v5505_v9 = vpop.f32.mrf.mxu1  ;;  %v5608_v6 = vpop.f32.mrf.mxu0  ;;  %4111 = vmatmul.mubr.bf16.gmra.mxu0 %v7853_v34 }
 0x242   : > { %v8086_v35 = vadd.f32 %v5504_v21, %v7978_v60  ;;  %4118 = vmatprep.mubr.bf16.mxu0 %v7855_v4 }
 0x243   : > { %v5506_v24 = vpop.f32.mrf.mxu1  ;;  %v5609_v55 = vpop.f32.mrf.mxu0 }
 0x244   : > { %v5507_v28 = vadd.f32 %v5506_v24, %v5505_v9  ;;  %v8089_v51 = vadd.f32 %v5609_v55, %v5608_v6 }
 0x245   : > { %v5508_v26 = vpop.f32.mrf.mxu1  ;;  %6039 = vmatmul.mubr.bf16.gmra.mxu1 %v6307_v59  ;;  %v8094_v56 = vpop.f32.mrf.mxu0 }
 0x246   : > { %v8097_v34 = vadd.f32 %v5507_v28, %v7986_v5  ;;  %6042 = vmatprep.mubr.msk.bf16.mxu1 %vm6339_vm4, %v8785_v25 }
 0x247   : > { %v5509_v4 = vpop.f32.mrf.mxu1  ;;  %v8101_v60 = vpop.f32.mrf.mxu0 }
 0x248   : > { %v5510_v43 = vadd.f32 %v5509_v4, %v5508_v26  ;;  %v6309_v4 = vld [vmem:[#allocation2 + $0x80] ss:$12 sps:$4 sm:$0xff]  }
 0x249   : > { %v5511_v48 = vpop.f32.mrf.mxu1  ;;  %v5614_v13 = vpop.f32.mrf.mxu0  ;;  %4119 = vmatmul.mubr.bf16.gmra.mxu0 %v7861_v49 }
 0x24a   : > { %v8105_v3 = vadd.f32 %v7971_v50, %v5510_v43  ;;  %4126 = vmatprep.mubr.bf16.mxu0 %v7863_v33 }
 0x24b   : > { %v5512_v5 = vpop.f32.mrf.mxu1  ;;  %v5615_v46 = vpop.f32.mrf.mxu0 }
 0x24c   : > { %v5513_v22 = vadd.f32 %v5512_v5, %v5511_v48  ;;  %v8108_v21 = vadd.f32 %v5615_v46, %v5614_v13  ;;  %v6321_v48 = vld [vmem:[%s8731_s6 + $0x30] sm:$0xff]  }
 0x24d   : > { %v5514_v9 = vpop.f32.mrf.mxu1  ;;  %6043 = vmatmul.mubr.bf16.gmra.mxu1 %v6308_v62  ;;  %v8110_v6 = vpop.f32.mrf.mxu0  ;;  %6092 = vmatprep.subr.bf16.mxu0 %v6321_v48 }
 0x24e   : > { %v8113_v24 = vadd.f32 %v7980_v19, %v5513_v22  ;;  %6046 = vmatprep.mubr.msk.bf16.mxu1 %vm6339_vm4, %v8785_v25  ;;  %6093 = vmatpush3.bf16.msra.mxu0 %v6321_v48 }
 0x24f   : > { %v5515_v49 = vpop.f32.mrf.mxu1  ;;  %v8117_v50 = vpop.f32.mrf.mxu0 }
 0x250   : > { %v5516_v33 = vadd.f32 %v5515_v49, %v5514_v9 }
 0x251   : > { %v5517_v55 = vpop.f32.mrf.mxu1  ;;  %v5620_v59 = vpop.f32.mrf.mxu0  ;;  %4127 = vmatmul.mubr.bf16.gmra.mxu0 %v7869_v15 }
 0x252   : > { %v8121_v28 = vadd.f32 %v5516_v33, %v7994_v10 }
 0x253   : > { %v5518_v32 = vpop.f32.mrf.mxu1  ;;  %v5621_v26 = vpop.f32.mrf.mxu0 }
 0x254   : > { %v5519_v43 = vadd.f32 %v5518_v32, %v5517_v55  ;;  %v8123_v19 = vadd.f32 %v5621_v26, %v5620_v59  ;;  %v6310_v55 = vld [vmem:[#allocation2 + $0x98] ss:$12 sps:$4 sm:$0xff]  }
 0x255   : > { %v5520_v13 = vpop.f32.mrf.mxu1  ;;  %6047 = vmatmul.mubr.bf16.gmra.mxu1 %v6309_v4  ;;  %v8128_v5 = vpop.f32.mrf.mxu0 }
 0x256   : > { %v8131_v46 = vadd.f32 %v5519_v43, %v8002_v17  ;;  %6050 = vmatprep.mubr.msk.bf16.mxu1 %vm6339_vm4, %v8785_v25 }
 0x257   : > { %v5521_v15 = vpop.f32.mrf.mxu1  ;;  %v8135_v10 = vpop.f32.mrf.mxu0 }
 0x258   : > { %v8137_v62 = vadd.f32 %v5521_v15, %v5520_v13 }
 0x259   : > { %v5523_v22 = vpop.f32.mrf.mxu1  ;;  %v5626_v9 = vpop.f32.mrf.mxu0 }
 0x25a   : > { %8798 = vst [vmem:[#allocation16_spill] sm:$0xff] %v8137_v62 }
 0x25b   : > { %v5524_v49 = vpop.f32.mrf.mxu1  ;;  %v5627_v33 = vpop.f32.mrf.mxu0 }
 0x25c   : > { %v8139_v59 = vadd.f32 %v5524_v49, %v5523_v22  ;;  %v8141_v32 = vadd.f32 %v5627_v33, %v5626_v9  ;;  %v6311_v22 = vld [vmem:[#allocation2 + $0xb0] ss:$12 sps:$4 sm:$0xff]   ;;  %v6322_v33 = vld [vmem:[%s8731_s6 + $0x28] sm:$0xff]  }
 0x25d   : > { %v5526_v17 = vpop.f32.mrf.mxu1  ;;  %6051 = vmatmul.mubr.bf16.gmra.mxu1 %v6310_v55  ;;  %v8143_v26 = vpop.f32.mrf.mxu0  ;;  %6094 = vmatprep.subr.bf16.mxu0 %v6322_v33 }
 0x25e   : > { %8799 = vst [vmem:[#allocation17_spill] sm:$0xff] %v8139_v59  ;;  %6054 = vmatprep.mubr.msk.bf16.mxu1 %vm6339_vm4, %v8785_v25  ;;  %6095 = vmatpush3.bf16.msra.mxu0 %v6322_v33 }
 0x25f   : > { %v5527_v4 = vpop.f32.mrf.mxu1  ;;  %v8147_v43 = vpop.f32.mrf.mxu0 }
 0x260   : > { %v8149_v48 = vadd.f32 %v5527_v4, %v5526_v17 }
 0x261   : > { %v5529_v13 = vpop.f32.mrf.mxu1  ;;  %v5632_v15 = vpop.f32.mrf.mxu0 }
 0x262   : > { %8800 = vst [vmem:[#allocation18_spill] sm:$0xff] %v8149_v48 }
 0x263   : > { %v5530_v40 = vpop.f32.mrf.mxu1  ;;  %v5633_v8 = vpop.f32.mrf.mxu0 }
 0x264   : > { %v8151_v49 = vadd.f32 %v5530_v40, %v5529_v13  ;;  %v8153_v9 = vadd.f32 %v5633_v8, %v5632_v15 }
 0x265   : > { %v5532_v55 = vpop.f32.mrf.mxu1  ;;  %6055 = vmatmul.mubr.bf16.gmra.mxu1 %v6311_v22  ;;  %v8158_v45 = vpop.f32.mrf.mxu0 }
 0x266   : > { %8801 = vst [vmem:[#allocation19_spill] sm:$0xff] %v8151_v49  ;;  %6058 = vmatprep.mubr.msk.bf16.mxu1 %vm6339_vm4, %v8785_v25 }
 0x267   : > { %v5533_v17 = vpop.f32.mrf.mxu1  ;;  %v8162_v4 = vpop.f32.mrf.mxu0 }
 0x268   : > { %v8164_v40 = vadd.f32 %v5533_v17, %v5532_v55 }
 0x269   : > { %v5535_v8 = vpop.f32.mrf.mxu1  ;;  %v5638_v13 = vpop.f32.mrf.mxu0 }
 0x26a   : > { %8802 = vst [vmem:[#allocation20_spill] sm:$0xff] %v8164_v40 }
 0x26b   : > { %v5536_v15 = vpop.f32.mrf.mxu1  ;;  %v5639_v38 = vpop.f32.mrf.mxu0 }
 0x26c   : > { %v8166_v27 = vadd.f32 %v5536_v15, %v5535_v8  ;;  %v8168_v22 = vadd.f32 %v5639_v38, %v5638_v13  ;;  %v6313_v8 = vld [vmem:[#allocation2 + $0xe0] ss:$12 sps:$4 sm:$0xff]  }
 0x26d   : > { %v5538_v47 = vpop.f32.mrf.mxu1  ;;  %6059 = vmatmul.mubr.bf16.gmra.mxu1 %v6312_v18  ;;  %v8170_v1 = vpop.f32.mrf.mxu0 }
 0x26e   : > { %8803 = vst [vmem:[#allocation21_spill] sm:$0xff] %v8166_v27  ;;  %6062 = vmatprep.mubr.msk.bf16.mxu1 %vm6339_vm4, %v8785_v25 }
 0x26f   : > { %v5539_v49 = vpop.f32.mrf.mxu1  ;;  %v8174_v33 = vpop.f32.mrf.mxu0 }
 0x270   : > { %v8176_v55 = vadd.f32 %v5539_v49, %v5538_v47 }
 0x271   : > { %v5541_v17 = vpop.f32.mrf.mxu1  ;;  %v5644_v40 = vpop.f32.mrf.mxu0 }
 0x272   : > { %8804 = vst [vmem:[#allocation22_spill] sm:$0xff] %v8176_v55 }
 0x273   : > { %v5542_v14 = vpop.f32.mrf.mxu1  ;;  %v5645_v48 = vpop.f32.mrf.mxu0 }
 0x274   : > { %v8178_v15 = vadd.f32 %v5542_v14, %v5541_v17  ;;  %v8180_v38 = vadd.f32 %v5645_v48, %v5644_v40  ;;  %v6323_v14 = vld [vmem:[%s8731_s6 + $0x20] sm:$0xff]  }
 0x275   : > { %v5544_v18 = vpop.f32.mrf.mxu1  ;;  %6063 = vmatmul.mubr.bf16.gmra.mxu1 %v6313_v8  ;;  %v8182_v13 = vpop.f32.mrf.mxu0  ;;  %v6314_v17 = vld [vmem:[#allocation2 + $0xf8] ss:$12 sps:$4 sm:$0xff]   ;;  %6096 = vmatprep.subr.bf16.mxu0 %v6323_v14 }
 0x276   : > { %8805 = vst [vmem:[#allocation23_spill] sm:$0xff] %v8178_v15  ;;  %6066 = vmatprep.mubr.msk.bf16.mxu1 %vm6339_vm4, %v8785_v25  ;;  %6097 = vmatpush3.bf16.msra.mxu0 %v6323_v14 }
 0x277   : > { %v5545_v27 = vpop.f32.mrf.mxu1  ;;  %v8186_v20 = vpop.f32.mrf.mxu0 }
 0x278   : > { %v8188_v47 = vadd.f32 %v5545_v27, %v5544_v18 }
 0x279   : > { %v5547_v49 = vpop.f32.mrf.mxu1  ;;  %v5650_v55 = vpop.f32.mrf.mxu0 }
 0x27a   : > { %8806 = vst [vmem:[#allocation24_spill] sm:$0xff] %v8188_v47 }
 0x27b   : > { %v5548_v48 = vpop.f32.mrf.mxu1  ;;  %v5651_v40 = vpop.f32.mrf.mxu0 }
 0x27c   : > { %v8193_v8 = vadd.f32 %v5548_v48, %v5547_v49  ;;  %v8195_v15 = vadd.f32 %v5651_v40, %v5650_v55  ;;  %v6324_v55 = vld [vmem:[%s8731_s6 + $0x18] sm:$0xff]  }
 0x27d   : > { %v3280_v42 = vpop.f32.mrf.mxu1  ;;  %6067 = vmatmul.mubr.bf16.gmra.mxu1 %v6314_v17  ;;  %v5653_v59 = vpop.f32.mrf.mxu0  ;;  %6098 = vmatprep.subr.bf16.mxu0 %v6324_v55  ;;  %v6315_v40 = vld [vmem:[#allocation2 + $0x110] ss:$12 sps:$4 sm:$0xff]  }
 0x27e   : > { %v3281_v27 = vadd.f32 %v8045_v30, %v3280_v42  ;;  %6070 = vmatprep.mubr.msk.bf16.mxu1 %vm6339_vm4, %v8785_v25  ;;  %6099 = vmatpush3.bf16.msra.mxu0 %v6324_v55 }
 0x27f   : > { %v5956_v18 = vpop.f32.mrf.mxu1  ;;  %v5654_v47 = vpop.f32.mrf.mxu0 }
 0x280   : > { %v8201_v31 = vadd.f32 %v3281_v27, %v7975_v41  ;;  %v8203_v62 = vadd.f32 %v5654_v47, %v5653_v59  ;;  %v6325_v59 = vld [vmem:[%s8731_s6 + $0x10] sm:$0xff]  }
 0x281   : > { %v3283_v49 = vpop.f32.mrf.mxu1  ;;  %v5656_v48 = vpop.f32.mrf.mxu0  ;;  %6100 = vmatprep.subr.bf16.mxu0 %v6325_v59 }
 0x282   : > { %v3284_v14 = vadd.f32 %v8052_v0, %v3283_v49  ;;  %6101 = vmatpush3.bf16.msra.mxu0 %v6325_v59 }
 0x283   : > { %v5957_v42 = vpop.f32.mrf.mxu1  ;;  %v5657_v30 = vpop.f32.mrf.mxu0 }
 0x284   : > { %v8210_v17 = vadd.f32 %v3284_v14, %v7982_v37  ;;  %v8212_v41 = vadd.f32 %v5657_v30, %v5656_v48 }
 0x285   : > { %v3288_v47 = vpop.f32.mrf.mxu1  ;;  %6071 = vmatmul.mubr.bf16.gmra.mxu1 %v6315_v40  ;;  %v5659_v27 = vpop.f32.mrf.mxu0 }
 0x286   : > { %v3289_v18 = vadd.f32 %v8059_v53, %v3288_v47  ;;  %6074 = vmatprep.mubr.msk.bf16.mxu1 %vm6339_vm4, %v8785_v25  ;;  %v6326_v53 = vld [vmem:[%s8731_s6 + $0x8] sm:$0xff]  }
 0x287   : > { %v5960_v0 = vpop.f32.mrf.mxu1  ;;  %v5660_v55 = vpop.f32.mrf.mxu0  ;;  %v6316_v47 = vld [vmem:[#allocation2 + $0x128] ss:$12 sps:$4 sm:$0xff]   ;;  %6102 = vmatprep.subr.bf16.mxu0 %v6326_v53 }
 0x288   : > { %v8221_v37 = vadd.f32 %v3289_v18, %v7991_v57  ;;  %v8223_v49 = vadd.f32 %v5660_v55, %v5659_v27  ;;  %v6327_v57 = vld [vmem:[%s8731_s6] sm:$0xff]   ;;  %6103 = vmatpush3.bf16.msra.mxu0 %v6326_v53 }
 0x289   : > { %v3291_v48 = vpop.f32.mrf.mxu1  ;;  %v5662_v14 = vpop.f32.mrf.mxu0  ;;  %6104 = vmatprep.subr.bf16.mxu0 %v6327_v57 }
 0x28a   : > { %8807 = vst [vmem:[#allocation25_spill] sm:$0xff] %v8221_v37  ;;  %v3292_v42 = vadd.f32 %v8066_v54, %v3291_v48  ;;  %v5607_v48 = vadd.f32 %v8082_v2, %v8075_v7 }
 0x28b   : > { %v5961_v30 = vpop.f32.mrf.mxu1  ;;  %v5663_v40 = vpop.f32.mrf.mxu0 }
 0x28c   : > { %v8230_v0 = vadd.f32 %v3292_v42, %v7998_v12  ;;  %v8232_v59 = vadd.f32 %v5663_v40, %v5662_v14  ;;  %6105 = vmatpush3.bf16.msra.mxu0 %v6327_v57  ;;  %v5613_v57 = vadd.f32 %v8101_v60, %v8094_v56 }
 0x28d   : > { %v3296_v27 = vpop.f32.mrf.mxu1  ;;  %6075 = vmatmul.mubr.bf16.gmra.mxu1 %v6316_v47  ;;  %v5665_v54 = vpop.f32.mrf.mxu0 }
 0x28e   : > { %8808 = vst [vmem:[#allocation26_spill] sm:$0xff] %v8230_v0  ;;  %v3297_v18 = vadd.f32 %v8073_v63, %v3296_v27  ;;  %6078 = vmatprep.mubr.msk.bf16.mxu1 %vm6339_vm4, %v8785_v25  ;;  %v6317_v27 = vld [vmem:[#allocation2 + $0x140] ss:$12 sps:$4 sm:$0xff]  }
 0x28f   : > { %v5964_v55 = vpop.f32.mrf.mxu1  ;;  %v5666_v12 = vpop.f32.mrf.mxu0 }
 0x290   : > { %v8243_v14 = vadd.f32 %v3297_v18, %v8008_v58  ;;  %v8245_v42 = vadd.f32 %v5666_v12, %v5665_v54 }
 0x291   : > { %v3299_v30 = vpop.f32.mrf.mxu1  ;;  %v5668_v40 = vpop.f32.mrf.mxu0 }
 0x292   : > { %v3300_v53 = vadd.f32 %v5607_v48, %v3299_v30 }
 0x293   : > { %v5965_v47 = vpop.f32.mrf.mxu1  ;;  %v5669_v63 = vpop.f32.mrf.mxu0 }
 0x294   : > { %v8248_v0 = vadd.f32 %v3300_v53, %v8016_v16  ;;  %v8250_v55 = vadd.f32 %v5669_v63, %v5668_v40  ;;  %v6318_v47 = vld [vmem:[#allocation2 + $0x158] ss:$12 sps:$4 sm:$0xff]  }
 0x295   : > { %v3304_v37 = vpop.f32.mrf.mxu1  ;;  %6079 = vmatmul.mubr.bf16.gmra.mxu1 %v6317_v27  ;;  %v5671_v7 = vpop.f32.mrf.mxu0 }
 0x296   : > { %v3305_v58 = vadd.f32 %v8089_v51, %v3304_v37  ;;  %6082 = vmatprep.mubr.msk.bf16.mxu1 %vm6339_vm4, %v8785_v25 }
 0x297   : > { %v5968_v2 = vpop.f32.mrf.mxu1  ;;  %v5672_v54 = vpop.f32.mrf.mxu0 }
 0x298   : > { %v8258_v18 = vadd.f32 %v3305_v58, %v8026_v44  ;;  %v8260_v16 = vadd.f32 %v5672_v54, %v5671_v7  ;;  %v5619_v7 = vadd.f32 %v8117_v50, %v8110_v6 }
 0x299   : > { %v3307_v12 = vpop.f32.mrf.mxu1  ;;  %v5674_v48 = vpop.f32.mrf.mxu0 }
 0x29a   : > { %v3308_v30 = vadd.f32 %v5613_v57, %v3307_v12 }
 0x29b   : > { %v5969_v40 = vpop.f32.mrf.mxu1  ;;  %v5675_v53 = vpop.f32.mrf.mxu0 }
 0x29c   : > { %v8263_v51 = vadd.f32 %v3308_v30, %v8034_v39  ;;  %v8265_v37 = vadd.f32 %v5675_v53, %v5674_v48  ;;  %v5625_v53 = vadd.f32 %v8135_v10, %v8128_v5 }
 0x29d   : > { %v3312_v63 = vpop.f32.mrf.mxu1  ;;  %6083 = vmatmul.mubr.bf16.gmra.mxu1 %v6318_v47  ;;  %v5677_v27 = vpop.f32.mrf.mxu0 }
 0x29e   : > { %v3313_v56 = vadd.f32 %v8108_v21, %v3312_v63  ;;  %6086 = vmatprep.mubr.msk.bf16.mxu1 %vm6339_vm4, %v8785_v25  ;;  %v6319_v21 = vld [vmem:[#allocation2 + $0x170] ss:$12 sps:$4 sm:$0xff]  }
 0x29f   : > { %v5972_v44 = vpop.f32.mrf.mxu1  ;;  %v5678_v60 = vpop.f32.mrf.mxu0 }
 0x2a0   : > { %v8273_v58 = vadd.f32 %v3313_v56, %v8042_v11  ;;  %v8275_v39 = vadd.f32 %v5678_v60, %v5677_v27 }
 0x2a1   : > { %v3315_v2 = vpop.f32.mrf.mxu1  ;;  %v8277_v54 = vpop.f32.mrf.mxu0 }
 0x2a2   : > { %v3316_v57 = vadd.f32 %v5619_v7, %v3315_v2 }
 0x2a3   : > { %v5973_v12 = vpop.f32.mrf.mxu1  ;;  %v8279_v48 = vpop.f32.mrf.mxu0 }
 0x2a4   : > { %v8282_v25 = vadd.f32 %v3316_v57, %v8048_v52 }
 0x2a5   : > { %v3320_v30 = vpop.f32.mrf.mxu1  ;;  %6087 = vmatmul.mubr.bf16.gmra.mxu1 %v6319_v21  ;;  %v8284_v40 = vpop.f32.mrf.mxu0 }
 0x2a6   : > { %v3321_v11 = vadd.f32 %v8123_v19, %v3320_v30 }
 0x2a7   : > { %v5976_v6 = vpop.f32.mrf.mxu1  ;;  %v8287_v50 = vpop.f32.mrf.mxu0 }
 0x2a8   : > { %v8292_v47 = vadd.f32 %v3321_v11, %v8056_v36  ;;  %v5631_v36 = vadd.f32 %v8147_v43, %v8143_v26 }
 0x2a9   : > { %v3323_v63 = vpop.f32.mrf.mxu1  ;;  %v8294_v27 = vpop.f32.mrf.mxu0 }
 0x2aa   : > { %v3324_v52 = vadd.f32 %v5625_v53, %v3323_v63 }
 0x2ab   : > { %v5977_v56 = vpop.f32.mrf.mxu1  ;;  %v8296_v44 = vpop.f32.mrf.mxu0 }
 0x2ac   : > { %v8299_v60 = vadd.f32 %v3324_v52, %v8062_v61 }
 0x2ad   : > { %v3328_v19 = vpop.f32.mrf.mxu1  ;;  %v8301_v7 = vpop.f32.mrf.mxu0 }
 0x2ae   : > { %v3329_v2 = vadd.f32 %v8141_v32, %v3328_v19 }
 0x2af   : > { %v5980_v57 = vpop.f32.mrf.mxu1  ;;  %v8304_v5 = vpop.f32.mrf.mxu0 }
 0x2b0   : > { %v8309_v10 = vadd.f32 %v3329_v2, %v8070_v29  ;;  %v5637_v29 = vadd.f32 %v8162_v4, %v8158_v45 }
 0x2b1   : > { %v3331_v12 = vpop.f32.mrf.mxu1  ;;  %v8311_v21 = vpop.f32.mrf.mxu0 }
 0x2b2   : > { %v3332_v30 = vadd.f32 %v5631_v36, %v3331_v12 }
 0x2b3   : > { %v5981_v61 = vpop.f32.mrf.mxu1  ;;  %v8313_v11 = vpop.f32.mrf.mxu0 }
 0x2b4   : > { %v8316_v6 = vadd.f32 %v3332_v30, %v8078_v23 }
 0x2b5   : > { %v3336_v32 = vpop.f32.mrf.mxu1  ;;  %v8318_v53 = vpop.f32.mrf.mxu0 }
 0x2b6   : > { %v3337_v63 = vadd.f32 %v8153_v9, %v3336_v32 }
 0x2b7   : > { %v5984_v52 = vpop.f32.mrf.mxu1  ;;  %v8321_v26 = vpop.f32.mrf.mxu0 }
 0x2b8   : > { %v8326_v43 = vadd.f32 %v3337_v63, %v8086_v35  ;;  %v5643_v35 = vadd.f32 %v8174_v33, %v8170_v1 }
 0x2b9   : > { %v3339_v56 = vpop.f32.mrf.mxu1  ;;  %v8328_v19 = vpop.f32.mrf.mxu0 }
 0x2ba   : > { %v3340_v2 = vadd.f32 %v5637_v29, %v3339_v56 }
 0x2bb   : > { %v5985_v23 = vpop.f32.mrf.mxu1  ;;  %v8330_v57 = vpop.f32.mrf.mxu0 }
 0x2bc   : > { %v8333_v36 = vadd.f32 %v3340_v2, %v8097_v34 }
 0x2bd   : > { %v3344_v9 = vpop.f32.mrf.mxu1  ;;  %v8335_v12 = vpop.f32.mrf.mxu0 }
 0x2be   : > { %v3345_v30 = vadd.f32 %v8168_v22, %v3344_v9 }
 0x2bf   : > { %v5988_v61 = vpop.f32.mrf.mxu1  ;;  %v8338_v45 = vpop.f32.mrf.mxu0 }
 0x2c0   : > { %v8343_v4 = vadd.f32 %v3345_v30, %v8105_v3  ;;  %v5649_v3 = vadd.f32 %v8186_v20, %v8182_v13 }
 0x2c1   : > { %v3347_v32 = vpop.f32.mrf.mxu1  ;;  %v8345_v63 = vpop.f32.mrf.mxu0 }
 0x2c2   : > { %8809 = vst [vmem:[#allocation27_spill] sm:$0xff] %v8343_v4  ;;  %v3348_v52 = vadd.f32 %v5643_v35, %v3347_v32 }
 0x2c3   : > { %v5989_v34 = vpop.f32.mrf.mxu1  ;;  %v8347_v29 = vpop.f32.mrf.mxu0 }
 0x2c4   : > { %v8350_v56 = vadd.f32 %v3348_v52, %v8113_v24  ;;  %v8813_v34 = vld [vmem:[#allocation16_spill] sm:$0xff] }
 0x2c5   : > { %v3352_v22 = vpop.f32.mrf.mxu1  ;;  %v8352_v2 = vpop.f32.mrf.mxu0 }
 0x2c6   : > { %8810 = vst [vmem:[#allocation28_spill] sm:$0xff] %v8350_v56  ;;  %v3353_v23 = vadd.f32 %v8180_v38, %v3352_v22  ;;  %v8814_v22 = vld [vmem:[#allocation12_spill] sm:$0xff] }
 0x2c7   : > { %v5992_v9 = vpop.f32.mrf.mxu1  ;;  %v8355_v1 = vpop.f32.mrf.mxu0 }
 0x2c8   : > { %v8360_v33 = vadd.f32 %v3353_v23, %v8121_v28  ;;  %v2501_v9 = vadd.f32 %v8814_v22, %v8813_v34  ;;  %v8819_v34 = vld [vmem:[#allocation5_spill] sm:$0xff]  ;;  %v8820_v22 = vld [vmem:[#allocation18_spill] sm:$0xff] }
 0x2c9   : > { %v3355_v30 = vpop.f32.mrf.mxu1  ;;  %v8362_v61 = vpop.f32.mrf.mxu0 }
 0x2ca   : > { %8811 = vst [vmem:[#allocation29_spill] sm:$0xff] %v8360_v33  ;;  %v3356_v35 = vadd.f32 %v5649_v3, %v3355_v30  ;;  %v8816_v33 = vld [vmem:[#allocation17_spill] sm:$0xff]  ;;  %v8817_v3 = vld [vmem:[#allocation11_spill] sm:$0xff] }
 0x2cb   : > { %v5993_v24 = vpop.f32.mrf.mxu1  ;;  %v8367_v52 = vpop.f32.mrf.mxu0  ;;  %v2504_v30 = vadd.f32 %v8817_v3, %v8816_v33  ;;  %v8822_v33 = vld [vmem:[#allocation9_spill] sm:$0xff]  ;;  %v8823_v3 = vld [vmem:[#allocation19_spill] sm:$0xff] }
 0x2cc   : > { %v8365_v32 = vadd.f32 %v3356_v35, %v8131_v46 }
 0x2cd   : > { %v3360_v38 = vpop.f32.mrf.mxu1  ;;  %v8374_v28 = vpop.f32.mrf.mxu0 }
 0x2ce   : > { %8812 = vst [vmem:[#allocation30_spill] sm:$0xff] %v8365_v32  ;;  %v3361_v56 = vadd.f32 %v8195_v15, %v3360_v38  ;;  %v2509_v15 = vadd.f32 %v8820_v22, %v8819_v34  ;;  %v8825_v34 = vld [vmem:[#allocation20_spill] sm:$0xff] }
 0x2cf   : > { %v5996_v20 = vpop.f32.mrf.mxu1  ;;  %v8381_v32 = vpop.f32.mrf.mxu0  ;;  %v8826_v22 = vld [vmem:[#allocation4_spill] sm:$0xff] }
 0x2d0   : > { %v8372_v13 = vadd.f32 %v3361_v56, %v2501_v9 }
 0x2d1   : > { %v3363_v23 = vpop.f32.mrf.mxu1  ;;  %v8388_v20 = vpop.f32.mrf.mxu0 }
 0x2d2   : > { %8815 = vst [vmem:[#allocation16_spill] sm:$0xff] %v8372_v13  ;;  %v3364_v46 = vadd.f32 %v8203_v62, %v3363_v23  ;;  %v2512_v62 = vadd.f32 %v8823_v3, %v8822_v33  ;;  %v8828_v33 = vld [vmem:[#allocation21_spill] sm:$0xff]  ;;  %v8829_v3 = vld [vmem:[#allocation7_spill] sm:$0xff] }
 0x2d3   : > { %v5997_v35 = vpop.f32.mrf.mxu1 }
 0x2d4   : > { %v8379_v24 = vadd.f32 %v3364_v46, %v2504_v30  ;;  %v8395_v35 = vpop.f32.mrf.mxu0 }
 0x2d5   : > { %v3368_v4 = vpop.f32.mrf.mxu1 }
 0x2d6   : > { %8818 = vst [vmem:[#allocation12_spill] sm:$0xff] %v8379_v24  ;;  %v3369_v56 = vadd.f32 %v8212_v41, %v3368_v4  ;;  %v2517_v41 = vadd.f32 %v8826_v22, %v8825_v34  ;;  %v8831_v34 = vld [vmem:[#allocation13_spill] sm:$0xff]  ;;  %v8832_v22 = vld [vmem:[#allocation22_spill] sm:$0xff] }
 0x2d7   : > { %v6000_v38 = vpop.f32.mrf.mxu1 }
 0x2d8   : > { %v8386_v9 = vadd.f32 %v3369_v56, %v2509_v15  ;;  %v8402_v38 = vpop.f32.mrf.mxu0 }
 0x2d9   : > { %v3371_v13 = vpop.f32.mrf.mxu1 }
 0x2da   : > { %8821 = vst [vmem:[#allocation17_spill] sm:$0xff] %v8386_v9  ;;  %v3372_v23 = vadd.f32 %v8223_v49, %v3371_v13  ;;  %v2520_v49 = vadd.f32 %v8829_v3, %v8828_v33  ;;  %v8833_v33 = vld [vmem:[#allocation15_spill] sm:$0xff] }
 0x2db   : > { %v6001_v30 = vpop.f32.mrf.mxu1  ;;  %v8834_v3 = vld [vmem:[#allocation23_spill] sm:$0xff] }
 0x2dc   : > { %v8393_v46 = vadd.f32 %v3372_v23, %v2512_v62  ;;  %v8409_v30 = vpop.f32.mrf.mxu0 }
 0x2dd   : > { %v3376_v24 = vpop.f32.mrf.mxu1 }
 0x2de   : > { %8824 = vst [vmem:[#allocation11_spill] sm:$0xff] %v8393_v46  ;;  %v3377_v4 = vadd.f32 %v8232_v59, %v3376_v24  ;;  %v2525_v59 = vadd.f32 %v8832_v22, %v8831_v34  ;;  %v8836_v34 = vld [vmem:[#allocation24_spill] sm:$0xff]  ;;  %v8837_v22 = vld [vmem:[#allocation10_spill] sm:$0xff] }
 0x2df   : > { %v6004_v15 = vpop.f32.mrf.mxu1 }
 0x2e0   : > { %v8400_v56 = vadd.f32 %v3377_v4, %v2517_v41  ;;  %v8416_v15 = vpop.f32.mrf.mxu0 }
 0x2e1   : > { %v3379_v9 = vpop.f32.mrf.mxu1 }
 0x2e2   : > { %8827 = vst [vmem:[#allocation5_spill] sm:$0xff] %v8400_v56  ;;  %v3380_v13 = vadd.f32 %v8245_v42, %v3379_v9  ;;  %v2528_v42 = vadd.f32 %v8834_v3, %v8833_v33  ;;  %v8433_v33 = vld [vmem:[%s8730_s5] ss:$0 sm:$0xff] }
 0x2e3   : > { %v6005_v62 = vpop.f32.mrf.mxu1 }
 0x2e4   : > { %v8407_v23 = vadd.f32 %v3380_v13, %v2520_v49  ;;  %v8423_v62 = vpop.f32.mrf.mxu0 }
 0x2e5   : > { %v3384_v46 = vpop.f32.mrf.mxu1 }
 0x2e6   : > { %8830 = vst [vmem:[#allocation18_spill] sm:$0xff] %v8407_v23  ;;  %v3385_v24 = vadd.f32 %v8250_v55, %v3384_v46  ;;  %v2533_v55 = vadd.f32 %v8837_v22, %v8836_v34 }
 0x2e7   : > { %v6008_v41 = vpop.f32.mrf.mxu1 }
 0x2e8   : > { %v8414_v4 = vadd.f32 %v3385_v24, %v2525_v59  ;;  %v8428_v41 = vpop.f32.mrf.mxu0 }
 0x2e9   : > { %v3387_v56 = vpop.f32.mrf.mxu1 }
 0x2ea   : > { %v3388_v9 = vadd.f32 %v8260_v16, %v3387_v56  ;;  %v8838_v56 = vld [vmem:[#allocation14_spill] sm:$0xff]  ;;  %v8441_v34 = vpop.f32.mrf.mxu0 }
 0x2eb   : > { %v6009_v49 = vpop.f32.mrf.mxu1  ;;  %v2536_v3 = vadd.f32 %v8838_v56, %v8193_v8 }
 0x2ec   : > { %v8421_v13 = vadd.f32 %v3388_v9, %v2528_v42  ;;  %v5721_v49 = vadd.f32 %v8279_v48, %v8277_v54 }
 0x2ed   : > { %v3392_v23 = vpop.f32.mrf.mxu1 }
 0x2ee   : > { %8835 = vst [vmem:[#allocation9_spill] sm:$0xff] %v8421_v13  ;;  %v3393_v46 = vadd.f32 %v8265_v37, %v3392_v23  ;;  %v5724_v13 = vadd.f32 %v8287_v50, %v8284_v40 }
 0x2ef   : > { %v6012_v59 = vpop.f32.mrf.mxu1 }
 0x2f0   : > { %v3427_v24 = vadd.f32 %v3393_v46, %v2533_v55 }
 0x2f1   : > { %v3395_v16 = vpop.f32.mrf.mxu1 }
 0x2f2   : > { %v3396_v42 = vadd.f32 %v8275_v39, %v3395_v16  ;;  %v4417_v37 = vadd.f32 %v8433_v33, %v3427_v24  ;;  %v8839_v39 = vld [vmem:[#allocation6_spill] sm:$0xff] }
 0x2f3   : > { %v6013_v9 = vpop.f32.mrf.mxu1 }
 0x2f4   : > { %v3428_v23 = vadd.f32 %v3396_v42, %v2536_v3  ;;  %v4449_v8 = vmax.f32 %v4417_v37, 0.0  ;;  %v8447_v9 = vpop.f32.mrf.mxu0  ;;  %v5727_v42 = vadd.f32 %v8296_v44, %v8294_v27 }
 0x2f5   : > { %v4169_v22 = vpop.f32.mrf.mxu1 }
 0x2f6   : > { %v4418_v55 = vadd.f32 %v8433_v33, %v3428_v23  ;;  %v4170_v46 = vadd.f32 %v5721_v49, %v4169_v22  ;;  %v8840_v23 = vld [vmem:[#allocation8_spill] sm:$0xff] }
 0x2f7   : > { %v6032_v59 = vpop.f32.mrf.mxu1 }
 0x2f8   : > { %v4450_v56 = vmax.f32 %v4418_v55, 0.0  ;;  %v4288_v16 = vadd.f32 %v4170_v46, %v8839_v39  ;;  %v8455_v59 = vpop.f32.mrf.mxu0  ;;  %v5730_v46 = vadd.f32 %v8304_v5, %v8301_v7 }
 0x2f9   : > { %v4172_v54 = vpop.f32.mrf.mxu1 }
 0x2fa   : > { %v8449_v48 = vpack.c.bf16 %v4450_v56, %v4449_v8  ;;  %v4173_v24 = vadd.f32 %v5724_v13, %v4172_v54  ;;  %v4387_v49 = vadd.f32 %v8433_v33, %v4288_v16  ;;  %v8461_v39 = vpop.f32.mrf.mxu0 }
 0x2fb   : > { %v6033_v3 = vpop.f32.mrf.mxu1 }
 0x2fc   : > { %v4289_v22 = vadd.f32 %v4173_v24, %v8840_v23  ;;  %v4419_v8 = vmax.f32 %v4387_v49, 0.0  ;;  %v5733_v24 = vadd.f32 %v8313_v11, %v8311_v21  ;;  %v8467_v23 = vpop.f32.mrf.mxu0 }
 0x2fd   : > { %v4177_v40 = vpop.f32.mrf.mxu1 }
 0x2fe   : > { %v4388_v50 = vadd.f32 %v8433_v33, %v4289_v22  ;;  %v4178_v37 = vadd.f32 %v5727_v42, %v4177_v40  ;;  %v5736_v22 = vadd.f32 %v8321_v26, %v8318_v53  ;;  %v8473_v21 = vpop.f32.mrf.mxu0 }
 0x2ff   : > { %v6036_v55 = vpop.f32.mrf.mxu1 }
 0x300   : > { %v4420_v13 = vmax.f32 %v4388_v50, 0.0  ;;  %v4290_v56 = vadd.f32 %v4178_v37, %v8201_v31  ;;  %v8841_v37 = vld [vmem:[#allocation25_spill] sm:$0xff] }
 0x301   : > { %v4180_v27 = vpop.f32.mrf.mxu1 }
 0x302   : > { %v4181_v44 = vadd.f32 %v5730_v46, %v4180_v27  ;;  %v4451_v16 = vpack.c.bf16 %v4420_v13, %v4419_v8  ;;  %v4389_v3 = vadd.f32 %v8433_v33, %v4290_v56  ;;  %v5739_v13 = vadd.f32 %v8330_v57, %v8328_v19  ;;  %v8842_v27 = vld [vmem:[#allocation26_spill] sm:$0xff] }
 0x303   : > { %v6037_v54 = vpop.f32.mrf.mxu1 }
 0x304   : > { %v4291_v42 = vadd.f32 %v4181_v44, %v8210_v17  ;;  %6106 = vmatprep.mubr.bf16.mxu0 %v4451_v16  ;;  %v4421_v40 = vmax.f32 %v4389_v3, 0.0  ;;  %v8479_v16 = vpop.f32.mrf.mxu0  ;;  %v5742_v3 = vadd.f32 %v8338_v45, %v8335_v12 }
 0x305   : > { %v4185_v7 = vpop.f32.mrf.mxu1 }
 0x306   : > { %v4390_v5 = vadd.f32 %v8433_v33, %v4291_v42  ;;  %v4186_v31 = vadd.f32 %v5733_v24, %v4185_v7  ;;  %v8485_v19 = vpop.f32.mrf.mxu0 }
 0x307   : > { %v6040_v49 = vpop.f32.mrf.mxu1 }
 0x308   : > { %v4422_v50 = vmax.f32 %v4390_v5, 0.0  ;;  %v4292_v55 = vadd.f32 %v4186_v31, %v8841_v37 }
 0x309   : > { %v4188_v11 = vpop.f32.mrf.mxu1 }
 0x30a   : > { %v4452_v46 = vpack.c.bf16 %v4422_v50, %v4421_v40  ;;  %v4189_v17 = vadd.f32 %v5736_v22, %v4188_v11  ;;  %v4391_v56 = vadd.f32 %v8433_v33, %v4292_v55  ;;  %v5745_v40 = vadd.f32 %v8347_v29, %v8345_v63  ;;  %v8491_v55 = vpop.f32.mrf.mxu0 }
 0x30b   : > { %v6041_v8 = vpop.f32.mrf.mxu1 }
 0x30c   : > { %v4293_v44 = vadd.f32 %v4189_v17, %v8842_v27  ;;  %6107 = vmatmul.mubr.bf16.vlgmr.msra.gmra.mxu0 %v4452_v46  ;;  %v4423_v42 = vmax.f32 %v4391_v56, 0.0  ;;  %v5748_v46 = vadd.f32 %v8355_v1, %v8352_v2  ;;  %v8497_v63 = vpop.f32.mrf.mxu0 }
 0x30d   : > { %v4193_v53 = vpop.f32.mrf.mxu1 }
 0x30e   : > { %v4392_v26 = vadd.f32 %v8433_v33, %v4293_v44  ;;  %v4194_v54 = vadd.f32 %v5739_v13, %v4193_v53  ;;  %v5751_v44 = vadd.f32 %v8367_v52, %v8362_v61 }
 0x30f   : > { %v6044_v24 = vpop.f32.mrf.mxu1 }
 0x310   : > { %v4424_v7 = vmax.f32 %v4392_v26, 0.0  ;;  %v4294_v5 = vadd.f32 %v4194_v54, %v8243_v14  ;;  %v8503_v54 = vpop.f32.mrf.mxu0 }
 0x311   : > { %v4196_v57 = vpop.f32.mrf.mxu1 }
 0x312   : > { %v4197_v31 = vadd.f32 %v5742_v3, %v4196_v57  ;;  %v4453_v49 = vpack.c.bf16 %v4424_v7, %v4423_v42  ;;  %v4393_v50 = vadd.f32 %v8433_v33, %v4294_v5  ;;  %v5754_v3 = vadd.f32 %v8381_v32, %v8374_v28  ;;  %v8509_v61 = vpop.f32.mrf.mxu0 }
 0x313   : > { %v6045_v22 = vpop.f32.mrf.mxu1 }
 0x314   : > { %v4295_v37 = vadd.f32 %v4197_v31, %v8248_v0  ;;  %6110 = vmatprep.mubr.bf16.mxu0 %v4453_v49  ;;  %v4425_v17 = vmax.f32 %v4393_v50, 0.0  ;;  %v5757_v49 = vadd.f32 %v8395_v35, %v8388_v20  ;;  %v8515_v50 = vpop.f32.mrf.mxu0 }
 0x315   : > { %v4201_v12 = vpop.f32.mrf.mxu1 }
 0x316   : > { %v4394_v45 = vadd.f32 %v8433_v33, %v4295_v37  ;;  %v4202_v14 = vadd.f32 %v5745_v40, %v4201_v12  ;;  %v5760_v12 = vadd.f32 %v8409_v30, %v8402_v38  ;;  %v8521_v20 = vpop.f32.mrf.mxu0 }
 0x317   : > { %v6048_v11 = vpop.f32.mrf.mxu1 }
 0x318   : > { %v4426_v8 = vmax.f32 %v4394_v45, 0.0  ;;  %v4296_v13 = vadd.f32 %v4202_v14, %v8258_v18 }
 0x319   : > { %v4204_v29 = vpop.f32.mrf.mxu1 }
 0x31a   : > { %v4454_v56 = vpack.c.bf16 %v4426_v8, %v4425_v17  ;;  %v4205_v0 = vadd.f32 %v5748_v46, %v4204_v29  ;;  %v4395_v53 = vadd.f32 %v8433_v33, %v4296_v13  ;;  %v5763_v8 = vadd.f32 %v8423_v62, %v8416_v15 }
 0x31b   : > { %v6049_v27 = vpop.f32.mrf.mxu1 }
 0x31c   : > { %v4297_v26 = vadd.f32 %v4205_v0, %v8263_v51  ;;  %6111 = vmatmul.mubr.bf16.gmra.mxu0 %v4454_v56  ;;  %v4427_v42 = vmax.f32 %v4395_v53, 0.0  ;;  %v8527_v56 = vpop.f32.mrf.mxu0  ;;  %v5766_v27 = vadd.f32 %v8441_v34, %v8428_v41 }
 0x31d   : > { %v4209_v2 = vpop.f32.mrf.mxu1 }
 0x31e   : > { %v4396_v1 = vadd.f32 %v8433_v33, %v4297_v26  ;;  %v4210_v18 = vadd.f32 %v5751_v44, %v4209_v2  ;;  %v8533_v15 = vpop.f32.mrf.mxu0 }
 0x31f   : > { %v6052_v24 = vpop.f32.mrf.mxu1 }
 0x320   : > { %v4428_v7 = vmax.f32 %v4396_v1, 0.0  ;;  %v4298_v5 = vadd.f32 %v4210_v18, %v8273_v58  ;;  %v5769_v18 = vadd.f32 %v8455_v59, %v8447_v9 }
 0x321   : > { %v4212_v52 = vpop.f32.mrf.mxu1 }
 0x322   : > { %v4213_v57 = vadd.f32 %v5754_v3, %v4212_v52  ;;  %v4455_v51 = vpack.c.bf16 %v4428_v7, %v4427_v42  ;;  %v4397_v22 = vadd.f32 %v8433_v33, %v4298_v5  ;;  %v5789_v42 = vpop.f32.mrf.mxu0  ;;  %v5772_v5 = vadd.f32 %v8467_v23, %v8461_v39 }
 0x323   : > { %v6053_v31 = vpop.f32.mrf.mxu1 }
 0x324   : > { %v4299_v40 = vadd.f32 %v4213_v57, %v8282_v25  ;;  %6114 = vmatprep.mubr.bf16.mxu0 %v4455_v51  ;;  %v4429_v45 = vmax.f32 %v4397_v22, 0.0  ;;  %v5791_v31 = vpop.f32.mrf.mxu0 }
 0x325   : > { %v4217_v32 = vpop.f32.mrf.mxu1 }
 0x326   : > { %v4398_v28 = vadd.f32 %v8433_v33, %v4299_v40  ;;  %v4218_v58 = vadd.f32 %v5757_v49, %v4217_v32 }
 0x327   : > { %v6056_v37 = vpop.f32.mrf.mxu1 }
 0x328   : > { %v4430_v14 = vmax.f32 %v4398_v28, 0.0  ;;  %v4300_v11 = vadd.f32 %v4218_v58, %v8292_v47  ;;  %v5792_v28 = vpop.f32.mrf.mxu0 }
 0x329   : > { %v4220_v35 = vpop.f32.mrf.mxu1 }
 0x32a   : > { %v4456_v46 = vpack.c.bf16 %v4430_v14, %v4429_v45  ;;  %v4221_v25 = vadd.f32 %v5760_v12, %v4220_v35  ;;  %v4399_v13 = vadd.f32 %v8433_v33, %v4300_v11  ;;  %v8843_v14 = vld [vmem:[#allocation27_spill] sm:$0xff]  ;;  %v5794_v35 = vpop.f32.mrf.mxu0 }
 0x32b   : > { %v6057_v17 = vpop.f32.mrf.mxu1 }
 0x32c   : > { %v4301_v29 = vadd.f32 %v4221_v25, %v8299_v60  ;;  %6115 = vmatmul.mubr.bf16.gmra.mxu0 %v4456_v46  ;;  %v4431_v44 = vmax.f32 %v4399_v13, 0.0 }
 0x32d   : > { %v4225_v38 = vpop.f32.mrf.mxu1 }
 0x32e   : > { %v4400_v30 = vadd.f32 %v8433_v33, %v4301_v29  ;;  %v4226_v47 = vadd.f32 %v5763_v8, %v4225_v38  ;;  %v8844_v8 = vld [vmem:[#allocation28_spill] sm:$0xff]  ;;  %v5795_v29 = vpop.f32.mrf.mxu0 }
 0x32f   : > { %v6060_v0 = vpop.f32.mrf.mxu1 }
 0x330   : > { %v4432_v53 = vmax.f32 %v4400_v30, 0.0  ;;  %v4302_v26 = vadd.f32 %v4226_v47, %v8309_v10  ;;  %v5784_v47 = vadd.f32 %v8515_v50, %v8509_v61 }
 0x331   : > { %v4228_v62 = vpop.f32.mrf.mxu1 }
 0x332   : > { %v4229_v2 = vadd.f32 %v5766_v27, %v4228_v62  ;;  %v4457_v60 = vpack.c.bf16 %v4432_v53, %v4431_v44  ;;  %v4401_v24 = vadd.f32 %v8433_v33, %v4302_v26  ;;  %v8845_v44 = vld [vmem:[#allocation29_spill] sm:$0xff]  ;;  %v5797_v26 = vpop.f32.mrf.mxu0 }
 0x333   : > { %v6061_v1 = vpop.f32.mrf.mxu1 }
 0x334   : > { %v4303_v3 = vadd.f32 %v4229_v2, %v8316_v6  ;;  %6118 = vmatprep.mubr.bf16.mxu0 %v4457_v60  ;;  %v4433_v52 = vmax.f32 %v4401_v24, 0.0  ;;  %v5775_v6 = vadd.f32 %v8479_v16, %v8473_v21  ;;  %v5787_v60 = vadd.f32 %v8527_v56, %v8521_v20 }
 0x335   : > { %v4233_v41 = vpop.f32.mrf.mxu1 }
 0x336   : > { %v4402_v34 = vadd.f32 %v8433_v33, %v4303_v3  ;;  %v4234_v7 = vadd.f32 %v5769_v18, %v4233_v41  ;;  %v8846_v18 = vld [vmem:[#allocation30_spill] sm:$0xff]  ;;  %v5798_v3 = vpop.f32.mrf.mxu0 }
 0x337   : > { %v6064_v10 = vpop.f32.mrf.mxu1 }
 0x338   : > { %v4434_v57 = vmax.f32 %v4402_v34, 0.0  ;;  %v4304_v51 = vadd.f32 %v4234_v7, %v8326_v43  ;;  %v5778_v43 = vadd.f32 %v8491_v55, %v8485_v19  ;;  %v5790_v7 = vadd.f32 %v5789_v42, %v8533_v15 }
 0x339   : > { %v4236_v9 = vpop.f32.mrf.mxu1 }
 0x33a   : > { %v4458_v59 = vpack.c.bf16 %v4434_v57, %v4433_v52  ;;  %v4237_v49 = vadd.f32 %v5772_v5, %v4236_v9  ;;  %v4403_v40 = vadd.f32 %v8433_v33, %v4304_v51  ;;  %v8847_v52 = vld [vmem:[#allocation16_spill] sm:$0xff]  ;;  %v5800_v51 = vpop.f32.mrf.mxu0 }
 0x33b   : > { %v6065_v22 = vpop.f32.mrf.mxu1 }
 0x33c   : > { %v4305_v32 = vadd.f32 %v4237_v49, %v8333_v36  ;;  %6119 = vmatmul.mubr.bf16.gmra.mxu0 %v4458_v59  ;;  %v4435_v12 = vmax.f32 %v4403_v40, 0.0  ;;  %v5781_v36 = vadd.f32 %v8503_v54, %v8497_v63  ;;  %v5793_v49 = vadd.f32 %v5792_v28, %v5791_v31 }
 0x33d   : > { %v4241_v58 = vpop.f32.mrf.mxu1 }
 0x33e   : > { %v4404_v39 = vadd.f32 %v8433_v33, %v4305_v32  ;;  %v4242_v23 = vadd.f32 %v5775_v6, %v4241_v58  ;;  %v8848_v6 = vld [vmem:[#allocation12_spill] sm:$0xff]  ;;  %v5801_v32 = vpop.f32.mrf.mxu0 }
 0x33f   : > { %v6068_v37 = vpop.f32.mrf.mxu1 }
 0x340   : > { %v4436_v45 = vmax.f32 %v4404_v39, 0.0  ;;  %v4306_v11 = vadd.f32 %v4242_v23, %v8843_v14  ;;  %v5796_v23 = vadd.f32 %v5795_v29, %v5794_v35  ;;  %v5803_v14 = vpop.f32.mrf.mxu0 }
 0x341   : > { %v4244_v21 = vpop.f32.mrf.mxu1 }
 0x342   : > { %v4245_v16 = vadd.f32 %v5778_v43, %v4244_v21  ;;  %v4459_v46 = vpack.c.bf16 %v4436_v45, %v4435_v12  ;;  %v4405_v17 = vadd.f32 %v8433_v33, %v4306_v11  ;;  %v8849_v12 = vld [vmem:[#allocation17_spill] sm:$0xff] }
 0x343   : > { %v6069_v25 = vpop.f32.mrf.mxu1 }
 0x344   : > { %v4307_v13 = vadd.f32 %v4245_v16, %v8844_v8  ;;  %6122 = vmatprep.mubr.bf16.mxu0 %v4459_v46  ;;  %v4437_v0 = vmax.f32 %v4405_v17, 0.0  ;;  %v5799_v16 = vadd.f32 %v5798_v3, %v5797_v26  ;;  %v8850_v25 = vld [vmem:[#allocation11_spill] sm:$0xff]  ;;  %v5804_v17 = vpop.f32.mrf.mxu0 }
 0x345   : > { %v4249_v38 = vpop.f32.mrf.mxu1 }
 0x346   : > { %v4406_v19 = vadd.f32 %v8433_v33, %v4307_v13  ;;  %v4250_v55 = vadd.f32 %v5781_v36, %v4249_v38  ;;  %v5802_v38 = vadd.f32 %v5801_v32, %v5800_v51  ;;  %v8853_v51 = vld [vmem:[#allocation9_spill] sm:$0xff] }
 0x347   : > { %v6072_v30 = vpop.f32.mrf.mxu1 }
 0x348   : > { %v4438_v27 = vmax.f32 %v4406_v19, 0.0  ;;  %v4308_v53 = vadd.f32 %v4250_v55, %v8845_v44  ;;  %v8851_v30 = vld [vmem:[#allocation5_spill] sm:$0xff] }
 0x349   : > { %v4252_v63 = vpop.f32.mrf.mxu1 }
 0x34a   : > { %v4460_v54 = vpack.c.bf16 %v4438_v27, %v4437_v0  ;;  %v4253_v62 = vadd.f32 %v5784_v47, %v4252_v63  ;;  %v4407_v1 = vadd.f32 %v8433_v33, %v4308_v53  ;;  %v5806_v0 = vpop.f32.mrf.mxu0  ;;  %v5805_v63 = vadd.f32 %v5804_v17, %v5803_v14  ;;  %v4703_v17 = vld [vmem:[%s6444_s24 + $0x20] sm:$0xff] }
 0x34b   : > { %v6073_v2 = vpop.f32.mrf.mxu1 }
 0x34c   : > { %v4309_v24 = vadd.f32 %v4253_v62, %v8846_v18  ;;  %6123 = vmatmul.mubr.bf16.gmra.mxu0 %v4460_v54  ;;  %v4439_v10 = vmax.f32 %v4407_v1, 0.0  ;;  %v8852_v62 = vld [vmem:[#allocation18_spill] sm:$0xff] }
 0x34d   : > { %v4257_v41 = vpop.f32.mrf.mxu1 }
 0x34e   : > { %v4408_v61 = vadd.f32 %v8433_v33, %v4309_v24  ;;  %v4258_v50 = vadd.f32 %v5787_v60, %v4257_v41  ;;  %v5807_v60 = vpop.f32.mrf.mxu0 }
 0x34f   : > { %v6076_v34 = vpop.f32.mrf.mxu1  ;;  %v5808_v41 = vadd.f32 %v5807_v60, %v5806_v0 }
 0x350   : > { %v4440_v5 = vmax.f32 %v4408_v61, 0.0  ;;  %v4310_v57 = vadd.f32 %v4258_v50, %v8847_v52 }
 0x351   : > { %v4260_v9 = vpop.f32.mrf.mxu1 }
 0x352   : > { %v4261_v20 = vadd.f32 %v5790_v7, %v4260_v9  ;;  %v4461_v56 = vpack.c.bf16 %v4440_v5, %v4439_v10  ;;  %v4409_v22 = vadd.f32 %v8433_v33, %v4310_v57 }
 0x353   : > { %v6077_v59 = vpop.f32.mrf.mxu1 }
 0x354   : > { %v4311_v40 = vadd.f32 %v4261_v20, %v8848_v6  ;;  %6126 = vmatprep.mubr.bf16.mxu0 %v4461_v56  ;;  %v4441_v37 = vmax.f32 %v4409_v22, 0.0  ;;  %v4701_v6 = vld [vmem:[%s6444_s24 + $0x10] sm:$0xff] }
 0x355   : > { %v4265_v58 = vpop.f32.mrf.mxu1 }
 0x356   : > { %v4410_v39 = vadd.f32 %v8433_v33, %v4311_v40  ;;  %v4266_v15 = vadd.f32 %v5793_v49, %v4265_v58  ;;  %v4699_v58 = vld [vmem:[%s6444_s24] sm:$0xff] }
 0x357   : > { %v6080_v42 = vpop.f32.mrf.mxu1 }
 0x358   : > { %v4442_v43 = vmax.f32 %v4410_v39, 0.0  ;;  %v4312_v45 = vadd.f32 %v4266_v15, %v8849_v12  ;;  %v4702_v15 = vld [vmem:[%s6444_s24 + $0x18] sm:$0xff]  ;;  %v4700_v12 = vld [vmem:[%s6444_s24 + $0x8] sm:$0xff] }
 0x359   : > { %v4268_v11 = vpop.f32.mrf.mxu1 }
 0x35a   : > { %v4462_v21 = vpack.c.bf16 %v4442_v43, %v4441_v37  ;;  %v4269_v31 = vadd.f32 %v5796_v23, %v4268_v11  ;;  %v4411_v46 = vadd.f32 %v8433_v33, %v4312_v45 }
 0x35b   : > { %v6081_v28 = vpop.f32.mrf.mxu1 }
 0x35c   : > { %v4313_v36 = vadd.f32 %v4269_v31, %v8850_v25  ;;  %6127 = vmatmul.mubr.bf16.gmra.mxu0 %v4462_v21  ;;  %v4443_v19 = vmax.f32 %v4411_v46, 0.0  ;;  %v4705_v46 = vld [vmem:[%s6444_s24 + $0x30] sm:$0xff] }
 0x35d   : > { %v4273_v8 = vpop.f32.mrf.mxu1 }
 0x35e   : > { %v4412_v13 = vadd.f32 %v8433_v33, %v4313_v36  ;;  %v4274_v35 = vadd.f32 %v5799_v16, %v4273_v8 }
 0x35f   : > { %v6084_v29 = vpop.f32.mrf.mxu1 }
 0x360   : > { %v4444_v55 = vmax.f32 %v4412_v13, 0.0  ;;  %v4314_v47 = vadd.f32 %v4274_v35, %v8851_v30  ;;  %v4706_v29 = vld [vmem:[%s6444_s24 + $0x38] sm:$0xff] }
 0x361   : > { %v4276_v27 = vpop.f32.mrf.mxu1 }
 0x362   : > { %v4277_v44 = vadd.f32 %v5802_v38, %v4276_v27  ;;  %v4463_v53 = vpack.c.bf16 %v4444_v55, %v4443_v19  ;;  %v4413_v54 = vadd.f32 %v8433_v33, %v4314_v47  ;;  %v4704_v47 = vld [vmem:[%s6444_s24 + $0x28] sm:$0xff] }
 0x363   : > { %v6085_v26 = vpop.f32.mrf.mxu1 }
 0x364   : > { %v4315_v2 = vadd.f32 %v4277_v44, %v8852_v62  ;;  %6130 = vmatprep.mubr.bf16.mxu0 %v4463_v53  ;;  %v4445_v61 = vmax.f32 %v4413_v54, 0.0  ;;  %v4709_v62 = vld [vmem:[%s6444_s24 + $0x50] sm:$0xff] }
 0x365   : > { %v4281_v1 = vpop.f32.mrf.mxu1 }
 0x366   : > { %v4414_v18 = vadd.f32 %v8433_v33, %v4315_v2  ;;  %v4282_v24 = vadd.f32 %v5805_v63, %v4281_v1  ;;  %v4707_v1 = vld [vmem:[%s6444_s24 + $0x40] sm:$0xff] }
 0x367   : > { %v6088_v3 = vpop.f32.mrf.mxu1 }
 0x368   : > { %v4446_v50 = vmax.f32 %v4414_v18, 0.0  ;;  %v4316_v34 = vadd.f32 %v4282_v24, %v8414_v4  ;;  %v8585_v4 = vld [vmem:[%s8732_s7] ss:$0 sm:$0xff] }
 0x369   : > { %v4284_v7 = vpop.f32.mrf.mxu1 }
 0x36a   : > { %v4464_v10 = vpack.c.bf16 %v4446_v50, %v4445_v61  ;;  %v4285_v5 = vadd.f32 %v5808_v41, %v4284_v7  ;;  %v4415_v57 = vadd.f32 %v8433_v33, %v4316_v34  ;;  %v4710_v41 = vld [vmem:[%s6444_s24 + $0x58] sm:$0xff] }
 0x36b   : > { %v6089_v52 = vpop.f32.mrf.mxu1 }
 0x36c   : > { %v4317_v9 = vadd.f32 %v4285_v5, %v8853_v51  ;;  %6131 = vmatmul.mubr.bf16.gmra.mxu0 %v4464_v10  ;;  %v4447_v56 = vmax.f32 %v4415_v57, 0.0  ;;  %v4708_v10 = vld [vmem:[%s6444_s24 + $0x48] sm:$0xff] }
 0x36e   : > { %v4416_v20 = vadd.f32 %v8433_v33, %v4317_v9 }
 0x370   : > { %v4448_v59 = vmax.f32 %v4416_v20, 0.0 }
 0x372   : > { %v4465_v49 = vpack.c.bf16 %v4448_v59, %v4447_v56  ;;  %v4713_v59 = vld [vmem:[%s6444_s24 + $0x70] sm:$0xff] }
 0x374   : > { %6134 = vmatprep.mubr.bf16.mxu0 %v4465_v49 }
 0x375   : > { %6135 = vmatmul.mubr.bf16.gmra.mxu0 %v8449_v48 }
 0x3cc   : > { %v6108_v22 = vpop.f32.mrf.mxu0 }
 0x3cd   : > { %v4581_v40 = vadd.f32 %v6108_v22, %v8585_v4 }
 0x3ce   : > { %v4572_v32 = vpop.f32.mrf.mxu0 }
 0x3cf   : > { %v4733_v33 = vadd.f32 %v4701_v6, %v4581_v40  ;;  %v4573_v39 = vadd.f32 %v8585_v4, %v4572_v32  ;;  %v4711_v6 = vld [vmem:[%s6444_s24 + $0x60] sm:$0xff] }
 0x3d0   : > { %v6109_v48 = vpop.f32.mrf.mxu0 }
 0x3d1   : > { %v4765_v42 = vmax.f32 %v4733_v33, 0.0  ;;  %v4731_v23 = vadd.f32 %v4699_v58, %v4573_v39  ;;  %v4584_v37 = vadd.f32 %v6109_v48, %v8585_v4  ;;  %v4714_v33 = vld [vmem:[%s6444_s24 + $0x78] sm:$0xff] }
 0x3d2   : > { %v4575_v43 = vpop.f32.mrf.mxu0 }
 0x3d3   : > { %4797 = vst.msk [vmem:[%s8596_s11 + $0x10] sm:$0xff] %vm370_vm5, %v4765_v42  ;;  %v4763_v45 = vmax.f32 %v4731_v23, 0.0  ;;  %v4734_v14 = vadd.f32 %v4702_v15, %v4584_v37  ;;  %v4576_v11 = vadd.f32 %v8585_v4, %v4575_v43  ;;  %v4712_v23 = vld [vmem:[%s6444_s24 + $0x68] sm:$0xff] }
 0x3d5   : > { %4795 = vst.msk [vmem:[%s8596_s11] sm:$0xff] %vm370_vm5, %v4763_v45  ;;  %v4766_v21 = vmax.f32 %v4734_v14, 0.0  ;;  %v4732_v31 = vadd.f32 %v4700_v12, %v4576_v11 }
 0x3d7   : > { %4798 = vst.msk [vmem:[%s8596_s11 + $0x18] sm:$0xff] %vm370_vm5, %v4766_v21  ;;  %v4764_v28 = vmax.f32 %v4732_v31, 0.0  ;;  %v4717_v31 = vld [vmem:[%s6444_s24 + $0x90] sm:$0xff] }
 0x3d9   : > { %4796 = vst.msk [vmem:[%s8596_s11 + $0x8] sm:$0xff] %vm370_vm5, %v4764_v28 }
 0x3dc   : > { %v6112_v16 = vpop.f32.mrf.mxu0 }
 0x3dd   : > { %v4597_v25 = vadd.f32 %v6112_v16, %v8585_v4 }
 0x3de   : > { %v4588_v36 = vpop.f32.mrf.mxu0 }
 0x3df   : > { %v4737_v8 = vadd.f32 %v4705_v46, %v4597_v25  ;;  %v4589_v13 = vadd.f32 %v8585_v4, %v4588_v36  ;;  %v4715_v46 = vld [vmem:[%s6444_s24 + $0x80] sm:$0xff] }
 0x3e0   : > { %v6113_v35 = vpop.f32.mrf.mxu0 }
 0x3e1   : > { %v4769_v38 = vmax.f32 %v4737_v8, 0.0  ;;  %v4735_v19 = vadd.f32 %v4703_v17, %v4589_v13  ;;  %v4600_v55 = vadd.f32 %v6113_v35, %v8585_v4  ;;  %v4718_v8 = vld [vmem:[%s6444_s24 + $0x98] sm:$0xff] }
 0x3e2   : > { %v4591_v30 = vpop.f32.mrf.mxu0 }
 0x3e3   : > { %4801 = vst.msk [vmem:[%s8596_s11 + $0x30] sm:$0xff] %vm370_vm5, %v4769_v38  ;;  %v4767_v0 = vmax.f32 %v4735_v19, 0.0  ;;  %v4738_v27 = vadd.f32 %v4706_v29, %v4600_v55  ;;  %v4592_v44 = vadd.f32 %v8585_v4, %v4591_v30  ;;  %v4716_v19 = vld [vmem:[%s6444_s24 + $0x88] sm:$0xff] }
 0x3e5   : > { %4799 = vst.msk [vmem:[%s8596_s11 + $0x20] sm:$0xff] %vm370_vm5, %v4767_v0  ;;  %v4770_v53 = vmax.f32 %v4738_v27, 0.0  ;;  %v4736_v26 = vadd.f32 %v4704_v47, %v4592_v44 }
 0x3e7   : > { %4802 = vst.msk [vmem:[%s8596_s11 + $0x38] sm:$0xff] %vm370_vm5, %v4770_v53  ;;  %v4768_v63 = vmax.f32 %v4736_v26, 0.0  ;;  %v4721_v26 = vld [vmem:[%s6444_s24 + $0xb0] sm:$0xff] }
 0x3e9   : > { %4800 = vst.msk [vmem:[%s8596_s11 + $0x28] sm:$0xff] %vm370_vm5, %v4768_v63 }
 0x3ec   : > { %v6116_v54 = vpop.f32.mrf.mxu0 }
 0x3ed   : > { %v4613_v2 = vadd.f32 %v6116_v54, %v8585_v4 }
 0x3ee   : > { %v4604_v60 = vpop.f32.mrf.mxu0 }
 0x3ef   : > { %v4741_v18 = vadd.f32 %v4709_v62, %v4613_v2  ;;  %v4605_v24 = vadd.f32 %v8585_v4, %v4604_v60  ;;  %v4719_v62 = vld [vmem:[%s6444_s24 + $0xa0] sm:$0xff] }
 0x3f0   : > { %v6117_v3 = vpop.f32.mrf.mxu0 }
 0x3f1   : > { %v4773_v61 = vmax.f32 %v4741_v18, 0.0  ;;  %v4739_v50 = vadd.f32 %v4707_v1, %v4605_v24  ;;  %v4616_v34 = vadd.f32 %v6117_v3, %v8585_v4  ;;  %v4722_v18 = vld [vmem:[%s6444_s24 + $0xb8] sm:$0xff] }
 0x3f2   : > { %v4607_v7 = vpop.f32.mrf.mxu0 }
 0x3f3   : > { %4805 = vst.msk [vmem:[%s8596_s11 + $0x50] sm:$0xff] %vm370_vm5, %v4773_v61  ;;  %v4771_v5 = vmax.f32 %v4739_v50, 0.0  ;;  %v4742_v52 = vadd.f32 %v4710_v41, %v4616_v34  ;;  %v4608_v57 = vadd.f32 %v8585_v4, %v4607_v7  ;;  %v4720_v50 = vld [vmem:[%s6444_s24 + $0xa8] sm:$0xff] }
 0x3f5   : > { %4803 = vst.msk [vmem:[%s8596_s11 + $0x40] sm:$0xff] %vm370_vm5, %v4771_v5  ;;  %v4774_v51 = vmax.f32 %v4742_v52, 0.0  ;;  %v4740_v9 = vadd.f32 %v4708_v10, %v4608_v57 }
 0x3f7   : > { %4806 = vst.msk [vmem:[%s8596_s11 + $0x58] sm:$0xff] %vm370_vm5, %v4774_v51  ;;  %v4772_v20 = vmax.f32 %v4740_v9, 0.0  ;;  %v4725_v9 = vld [vmem:[%s6444_s24 + $0xd0] sm:$0xff] }
 0x3f9   : > { %4804 = vst.msk [vmem:[%s8596_s11 + $0x48] sm:$0xff] %vm370_vm5, %v4772_v20 }
 0x3fc   : > { %v6120_v56 = vpop.f32.mrf.mxu0 }
 0x3fd   : > { %v4629_v49 = vadd.f32 %v6120_v56, %v8585_v4 }
 0x3fe   : > { %v4620_v22 = vpop.f32.mrf.mxu0 }
 0x3ff   : > { %v4745_v40 = vadd.f32 %v4713_v59, %v4629_v49  ;;  %v4621_v32 = vadd.f32 %v8585_v4, %v4620_v22  ;;  %v4723_v59 = vld [vmem:[%s6444_s24 + $0xc0] sm:$0xff] }
 0x400   : > { %v6121_v58 = vpop.f32.mrf.mxu0 }
 0x401   : > { %v4777_v39 = vmax.f32 %v4745_v40, 0.0  ;;  %v4743_v48 = vadd.f32 %v4711_v6, %v4621_v32  ;;  %v4632_v15 = vadd.f32 %v6121_v58, %v8585_v4  ;;  %v4726_v40 = vld [vmem:[%s6444_s24 + $0xd8] sm:$0xff] }
 0x402   : > { %v4623_v42 = vpop.f32.mrf.mxu0 }
 0x403   : > { %4809 = vst.msk [vmem:[%s8596_s11 + $0x70] sm:$0xff] %vm370_vm5, %v4777_v39  ;;  %v4775_v37 = vmax.f32 %v4743_v48, 0.0  ;;  %v4746_v43 = vadd.f32 %v4714_v33, %v4632_v15  ;;  %v4624_v12 = vadd.f32 %v8585_v4, %v4623_v42  ;;  %v4724_v48 = vld [vmem:[%s6444_s24 + $0xc8] sm:$0xff] }
 0x405   : > { %4807 = vst.msk [vmem:[%s8596_s11 + $0x60] sm:$0xff] %vm370_vm5, %v4775_v37  ;;  %v4778_v45 = vmax.f32 %v4746_v43, 0.0  ;;  %v4744_v14 = vadd.f32 %v4712_v23, %v4624_v12 }
 0x407   : > { %4810 = vst.msk [vmem:[%s8596_s11 + $0x78] sm:$0xff] %vm370_vm5, %v4778_v45  ;;  %v4776_v11 = vmax.f32 %v4744_v14, 0.0  ;;  %v4729_v45 = vld [vmem:[%s6444_s24 + $0xf0] sm:$0xff] }
 0x409   : > { %4808 = vst.msk [vmem:[%s8596_s11 + $0x68] sm:$0xff] %vm370_vm5, %v4776_v11 }
 0x40c   : > { %v6124_v21 = vpop.f32.mrf.mxu0 }
 0x40d   : > { %v4645_v28 = vadd.f32 %v6124_v21, %v8585_v4 }
 0x40e   : > { %v4636_v16 = vpop.f32.mrf.mxu0 }
 0x40f   : > { %v4749_v25 = vadd.f32 %v4717_v31, %v4645_v28  ;;  %v4637_v36 = vadd.f32 %v8585_v4, %v4636_v16  ;;  %v4727_v31 = vld [vmem:[%s6444_s24 + $0xe0] sm:$0xff] }
 0x410   : > { %v6125_v17 = vpop.f32.mrf.mxu0 }
 0x411   : > { %v4781_v13 = vmax.f32 %v4749_v25, 0.0  ;;  %v4747_v35 = vadd.f32 %v4715_v46, %v4637_v36  ;;  %v4648_v29 = vadd.f32 %v6125_v17, %v8585_v4  ;;  %v4730_v25 = vld [vmem:[%s6444_s24 + $0xf8] sm:$0xff] }
 0x412   : > { %v4639_v38 = vpop.f32.mrf.mxu0 }
 0x413   : > { %4813 = vst.msk [vmem:[%s8596_s11 + $0x90] sm:$0xff] %vm370_vm5, %v4781_v13  ;;  %v4779_v55 = vmax.f32 %v4747_v35, 0.0  ;;  %v4750_v30 = vadd.f32 %v4718_v8, %v4648_v29  ;;  %v4640_v47 = vadd.f32 %v8585_v4, %v4639_v38  ;;  %v4728_v35 = vld [vmem:[%s6444_s24 + $0xe8] sm:$0xff] }
 0x415   : > { %4811 = vst.msk [vmem:[%s8596_s11 + $0x80] sm:$0xff] %vm370_vm5, %v4779_v55  ;;  %v4782_v0 = vmax.f32 %v4750_v30, 0.0  ;;  %v4748_v27 = vadd.f32 %v4716_v19, %v4640_v47 }
 0x417   : > { %4814 = vst.msk [vmem:[%s8596_s11 + $0x98] sm:$0xff] %vm370_vm5, %v4782_v0  ;;  %v4780_v44 = vmax.f32 %v4748_v27, 0.0 }
 0x419   : > { %4812 = vst.msk [vmem:[%s8596_s11 + $0x88] sm:$0xff] %vm370_vm5, %v4780_v44 }
 0x41c   : > { %v6128_v53 = vpop.f32.mrf.mxu0 }
 0x41d   : > { %v4661_v63 = vadd.f32 %v6128_v53, %v8585_v4 }
 0x41e   : > { %v4652_v54 = vpop.f32.mrf.mxu0 }
 0x41f   : > { %v4753_v2 = vadd.f32 %v4721_v26, %v4661_v63  ;;  %v4653_v60 = vadd.f32 %v8585_v4, %v4652_v54 }
 0x420   : > { %v6129_v1 = vpop.f32.mrf.mxu0 }
 0x421   : > { %v4785_v24 = vmax.f32 %v4753_v2, 0.0  ;;  %v4751_v3 = vadd.f32 %v4719_v62, %v4653_v60  ;;  %v4664_v41 = vadd.f32 %v6129_v1, %v8585_v4 }
 0x422   : > { %v4655_v61 = vpop.f32.mrf.mxu0 }
 0x423   : > { %4817 = vst.msk [vmem:[%s8596_s11 + $0xb0] sm:$0xff] %vm370_vm5, %v4785_v24  ;;  %v4783_v34 = vmax.f32 %v4751_v3, 0.0  ;;  %v4754_v7 = vadd.f32 %v4722_v18, %v4664_v41  ;;  %v4656_v10 = vadd.f32 %v8585_v4, %v4655_v61 }
 0x425   : > { %4815 = vst.msk [vmem:[%s8596_s11 + $0xa0] sm:$0xff] %vm370_vm5, %v4783_v34  ;;  %v4786_v5 = vmax.f32 %v4754_v7, 0.0  ;;  %v4752_v52 = vadd.f32 %v4720_v50, %v4656_v10 }
 0x427   : > { %4818 = vst.msk [vmem:[%s8596_s11 + $0xb8] sm:$0xff] %vm370_vm5, %v4786_v5  ;;  %v4784_v57 = vmax.f32 %v4752_v52, 0.0 }
 0x429   : > { %4816 = vst.msk [vmem:[%s8596_s11 + $0xa8] sm:$0xff] %vm370_vm5, %v4784_v57 }
 0x42c   : > { %v6132_v51 = vpop.f32.mrf.mxu0 }
 0x42d   : > { %v4677_v20 = vadd.f32 %v6132_v51, %v8585_v4 }
 0x42e   : > { %v4668_v56 = vpop.f32.mrf.mxu0 }
 0x42f   : > { %v4757_v49 = vadd.f32 %v4725_v9, %v4677_v20  ;;  %v4669_v22 = vadd.f32 %v8585_v4, %v4668_v56 }
 0x430   : > { %v6133_v6 = vpop.f32.mrf.mxu0 }
 0x431   : > { %v4789_v32 = vmax.f32 %v4757_v49, 0.0  ;;  %v4755_v58 = vadd.f32 %v4723_v59, %v4669_v22  ;;  %v4680_v33 = vadd.f32 %v6133_v6, %v8585_v4 }
 0x432   : > { %v4671_v39 = vpop.f32.mrf.mxu0 }
 0x433   : > { %4821 = vst.msk [vmem:[%s8596_s11 + $0xd0] sm:$0xff] %vm370_vm5, %v4789_v32  ;;  %v4787_v15 = vmax.f32 %v4755_v58, 0.0  ;;  %v4758_v42 = vadd.f32 %v4726_v40, %v4680_v33  ;;  %v4672_v23 = vadd.f32 %v8585_v4, %v4671_v39 }
 0x435   : > { %4819 = vst.msk [vmem:[%s8596_s11 + $0xc0] sm:$0xff] %vm370_vm5, %v4787_v15  ;;  %v4790_v37 = vmax.f32 %v4758_v42, 0.0  ;;  %v4756_v43 = vadd.f32 %v4724_v48, %v4672_v23  ;;  %v6136_v12 = vpop.f32.mrf.mxu0 }
 0x436   : > { %v4693_v14 = vadd.f32 %v6136_v12, %v8585_v4 }
 0x437   : > { %4822 = vst.msk [vmem:[%s8596_s11 + $0xd8] sm:$0xff] %vm370_vm5, %v4790_v37  ;;  %v4788_v11 = vmax.f32 %v4756_v43, 0.0  ;;  %v4684_v21 = vpop.f32.mrf.mxu0 }
 0x438   : > { %v4761_v28 = vadd.f32 %v4729_v45, %v4693_v14  ;;  %v4685_v16 = vadd.f32 %v8585_v4, %v4684_v21 }
 0x439   : > { %4820 = vst.msk [vmem:[%s8596_s11 + $0xc8] sm:$0xff] %vm370_vm5, %v4788_v11  ;;  %v6137_v46 = vpop.f32.mrf.mxu0 }
 0x43a   : > { %v4793_v36 = vmax.f32 %v4761_v28, 0.0  ;;  %v4759_v17 = vadd.f32 %v4727_v31, %v4685_v16  ;;  %v4696_v8 = vadd.f32 %v6137_v46, %v8585_v4 }
 0x43b   : > { %v4687_v13 = vpop.f32.mrf.mxu0 }
 0x43c   : > { %4825 = vst.msk [vmem:[%s8596_s11 + $0xf0] sm:$0xff] %vm370_vm5, %v4793_v36  ;;  %v4791_v29 = vmax.f32 %v4759_v17, 0.0  ;;  %v4762_v38 = vadd.f32 %v4730_v25, %v4696_v8  ;;  %v4688_v19 = vadd.f32 %v8585_v4, %v4687_v13 }
 0x43e   : > { %4823 = vst.msk [vmem:[%s8596_s11 + $0xe0] sm:$0xff] %vm370_vm5, %v4791_v29  ;;  %v4794_v55 = vmax.f32 %v4762_v38, 0.0  ;;  %v4760_v30 = vadd.f32 %v4728_v35, %v4688_v19 }
 0x440   : > { %4826 = vst.msk [vmem:[%s8596_s11 + $0xf8] sm:$0xff] %vm370_vm5, %v4794_v55  ;;  %v4792_v47 = vmax.f32 %v4760_v30, 0.0 }
 0x442   : > { %4824 = vst.msk [vmem:[%s8596_s11 + $0xe8] sm:$0xff] %vm370_vm5, %v4792_v47 }
 0x443 PF: > { %s18_s27 = sadd.s32 1, %s6335_s27  }
 0x444   : > { %p15_p4 = scmp.ge.s32.totalorder %s18_s27, 4  }
 0x446   :  { %17 = sbr.rel (!%p15_p4) target bundleno = 1 (0x1), region = 84 }

</bundles_post_ra>
